<compile_context>
chip_gen: v7x
topology: tpu7x:2x2x1
jax: 0.10.0
libtpu: 0.0.40
codegen_flags: <defaults>
</compile_context>

<pallas_src>
import functools

import jax
import jax.numpy as jnp
from jax.experimental import pallas as pl
from jax.experimental.pallas import tpu as pltpu


_LANE = 128
_ROW_TILE_CAP = 512                     # ~85% of HBM roofline per tile sweeps
_VMEM_LIMIT = 32 * 1024 * 1024          # > default scoped VMEM, safe on v5e/v6e/v7x


def _round_up(x, m):
    return (x + m - 1) // m * m


def _pick_rows(m, cap=_ROW_TILE_CAP):
    """Pad row count and pick a row tile (multiple of 16 for bf16 tiling)."""
    m_pad = _round_up(m, 16)
    if m_pad <= cap:
        return m_pad, m_pad
    return _round_up(m_pad, cap), cap


# ----------------------------- Pallas kernels -----------------------------

def _conv_bn_pool_kernel(p_ref, w_ref, scale_ref, shift_ref, o_ref, *, apply_relu):
    """Fused (patches @ W) * scale + shift [+ ReLU] + 2x2 max-pool.

    p_ref:  [4, TM, K]  bf16  -- quadrant-major im2col patches
    w_ref:  [K, 128]    bf16  -- weights, out-channels zero-padded to 128 lanes
    scale_ref/shift_ref: [1, 128] f32 -- folded BatchNorm affine (+ conv bias)
    o_ref:  [TM, 128]   bf16  -- pooled activation (lane-dense store)
    """
    w = w_ref[...]
    scale = scale_ref[...]
    shift = shift_ref[...]
    pooled = None
    for q in range(4):                       # static unroll over the 2x2 window
        y = jnp.dot(p_ref[q], w, preferred_element_type=jnp.float32)
        y = y * scale + shift                # BN epilogue in f32
        if apply_relu:
            y = jnp.maximum(y, 0.0)
        pooled = y if pooled is None else jnp.maximum(pooled, y)
    o_ref[...] = pooled.astype(o_ref.dtype)


def _mlp_kernel(x_ref, w1_ref, b1_ref, w2_ref, b2_ref, o_ref):
    """Fused fc1 + ReLU + (Dropout eval = identity) + fc2.

    The [TM, 640] hidden activation stays in VMEM/vregs (no HBM round trip).
    """
    h = jnp.dot(x_ref[...], w1_ref[...], preferred_element_type=jnp.float32)
    h = jnp.maximum(h + b1_ref[...], 0.0)
    # TODO(synk): train-mode dropout (random mask + 1/(1-p) scaling) not implemented.
    out = jnp.dot(h.astype(jnp.bfloat16), w2_ref[...],
                  preferred_element_type=jnp.float32)
    o_ref[...] = out + b2_ref[...]


# ----------------------------- Pallas wrappers -----------------------------

def conv_bn_pool(patches, w, scale, shift, *, apply_relu):
    """patches: [4, M, K] bf16 ; w: [K, Cout] ; scale/shift: [Cout] f32.

    Returns fused conv+BN(+ReLU)+2x2-maxpool output, [M, Cout] bf16.
    """
    _, m, k = patches.shape
    cout = w.shape[1]
    cpad = _round_up(cout, _LANE)

    w_p = jnp.pad(w.astype(jnp.bfloat16), ((0, 0), (0, cpad - cout)))
    scale_p = jnp.pad(scale.astype(jnp.float32), (0, cpad - cout)).reshape(1, cpad)
    shift_p = jnp.pad(shift.astype(jnp.float32), (0, cpad - cout)).reshape(1, cpad)

    m_pad, tm = _pick_rows(m)
    if m_pad != m:
        patches = jnp.pad(patches, ((0, 0), (0, m_pad - m), (0, 0)))

    kernel = functools.partial(_conv_bn_pool_kernel, apply_relu=apply_relu)
    out = pl.pallas_call(
        kernel,
        out_shape=jax.ShapeDtypeStruct((m_pad, cpad), jnp.bfloat16),
        grid=(m_pad // tm,),
        in_specs=[
            pl.BlockSpec((4, tm, k), lambda i: (0, i, 0)),
            pl.BlockSpec((k, cpad), lambda i: (0, 0)),
            pl.BlockSpec((1, cpad), lambda i: (0, 0)),
            pl.BlockSpec((1, cpad), lambda i: (0, 0)),
        ],
        out_specs=pl.BlockSpec((tm, cpad), lambda i: (i, 0)),
        compiler_params=pltpu.CompilerParams(
            dimension_semantics=("parallel",),
            vmem_limit_bytes=_VMEM_LIMIT),
    )(patches, w_p, scale_p, shift_p)
    return out[:m, :cout]


def fused_mlp(x, w1, b1, w2, b2):
    """x: [M, K] bf16 ; w1: [K, N1] bf16 ; b1: [1, N1] f32 ;
    w2: [N1, N2] bf16 ; b2: [1, N2] f32  ->  [M, N2] f32."""
    m, k = x.shape
    n1 = w1.shape[1]
    n2 = w2.shape[1]
    m_pad, tm = _pick_rows(m)
    if m_pad != m:
        x = jnp.pad(x, ((0, m_pad - m), (0, 0)))
    out = pl.pallas_call(
        _mlp_kernel,
        out_shape=jax.ShapeDtypeStruct((m_pad, n2), jnp.float32),
        grid=(m_pad // tm,),
        in_specs=[
            pl.BlockSpec((tm, k), lambda i: (i, 0)),
            pl.BlockSpec((k, n1), lambda i: (0, 0)),
            pl.BlockSpec((1, n1), lambda i: (0, 0)),
            pl.BlockSpec((n1, n2), lambda i: (0, 0)),
            pl.BlockSpec((1, n2), lambda i: (0, 0)),
        ],
        out_specs=pl.BlockSpec((tm, n2), lambda i: (i, 0)),
        compiler_params=pltpu.CompilerParams(
            dimension_semantics=("parallel",),
            vmem_limit_bytes=_VMEM_LIMIT),
    )(x, w1, b1, w2, b2)
    return out[:m]


# ------------------------------- glue (JAX) --------------------------------

def build_pool_patches(x, kh, kw, pad, pool=2):
    """x: [N, H, W, C] (stride-1 'same' conv followed by 2x2 max-pool).

    Returns quadrant-major im2col patches
    [pool*pool, N*(H/pool)*(W/pool), kh*kw*C], so the max-pool becomes a
    running max over the leading axis inside the fused conv kernel.
    TODO(synk): build the patches inside the Pallas kernel (from an NHWC tile
    with halo) to avoid materializing the K-expanded patches in HBM.
    """
    n, h, w, c = x.shape
    h2, w2 = h // pool, w // pool
    xp = jnp.pad(x, ((0, 0), (pad, pad + pool - 1), (pad, pad + pool - 1), (0, 0)))
    quads = []
    for dh in range(pool):
        for dw in range(pool):
            taps = []
            for i in range(kh):
                for j in range(kw):
                    a, b = dh + i, dw + j
                    taps.append(xp[:, a:a + pool * h2:pool, b:b + pool * w2:pool, :])
            t = jnp.stack(taps, axis=3)                 # [N, h2, w2, kh*kw, C]
            quads.append(t.reshape(n * h2 * w2, kh * kw * c))
    return jnp.stack(quads, axis=0)                     # [4, N*h2*w2, kh*kw*C]


def init_params(key):
    ks = jax.random.split(key, 16)
    p = {}
    # conv1: 1 -> 8, 3x3, pad 1   (weight stored as [Kh, Kw, Cin, Cout])
    p["w1"] = 0.1 * jax.random.normal(ks[0], (3, 3, 1, 8), jnp.float32)
    p["b1"] = 0.1 * jax.random.normal(ks[1], (8,), jnp.float32)
    # batchnorm1(8)
    p["bn1_gamma"] = 1.0 + 0.1 * jax.random.normal(ks[2], (8,), jnp.float32)
    p["bn1_beta"] = 0.1 * jax.random.normal(ks[3], (8,), jnp.float32)
    p["bn1_mean"] = 0.1 * jax.random.normal(ks[4], (8,), jnp.float32)
    p["bn1_var"] = 0.5 + jnp.abs(jax.random.normal(ks[5], (8,), jnp.float32))
    # conv2: 8 -> 32, 5x5, pad 2
    p["w2"] = 0.05 * jax.random.normal(ks[6], (5, 5, 8, 32), jnp.float32)
    p["b2"] = 0.1 * jax.random.normal(ks[7], (32,), jnp.float32)
    # batchnorm2(32)
    p["bn2_gamma"] = 1.0 + 0.1 * jax.random.normal(ks[8], (32,), jnp.float32)
    p["bn2_beta"] = 0.1 * jax.random.normal(ks[9], (32,), jnp.float32)
    p["bn2_mean"] = 0.1 * jax.random.normal(ks[10], (32,), jnp.float32)
    p["bn2_var"] = 0.5 + jnp.abs(jax.random.normal(ks[11], (32,), jnp.float32))
    # fc1: 1568 -> 600   ([in, out], "in" in PyTorch NCHW flatten order)
    p["fc1_w"] = 0.02 * jax.random.normal(ks[12], (1568, 600), jnp.float32)
    p["fc1_b"] = 0.1 * jax.random.normal(ks[13], (600,), jnp.float32)
    # fc2: 600 -> 10
    p["fc2_w"] = 0.05 * jax.random.normal(ks[14], (600, 10), jnp.float32)
    p["fc2_b"] = 0.1 * jax.random.normal(ks[15], (10,), jnp.float32)
    return p


def cnn_forward(params, x_nchw):
    eps = 1e-5
    x = jnp.transpose(x_nchw, (0, 2, 3, 1)).astype(jnp.bfloat16)   # NCHW -> NHWC
    n = x.shape[0]

    # conv1(3x3, 1->8) + batchnorm1 + relu + maxpool(2x2): one fused kernel
    p1 = build_pool_patches(x, 3, 3, 1)                  # [4, N*196, 9]  bf16
    w1 = params["w1"].reshape(9, 8)
    scale1 = params["bn1_gamma"] / jnp.sqrt(params["bn1_var"] + eps)
    shift1 = (params["b1"] - params["bn1_mean"]) * scale1 + params["bn1_beta"]
    y1 = conv_bn_pool(p1, w1, scale1, shift1, apply_relu=True)     # [N*196, 8]
    y1 = y1.reshape(n, 14, 14, 8)

    # conv2(5x5, 8->32) + batchnorm2 + maxpool(2x2): one fused kernel
    # (no ReLU here -- matches the PyTorch forward)
    p2 = build_pool_patches(y1, 5, 5, 2)                 # [4, N*49, 200] bf16
    w2 = params["w2"].reshape(200, 32)
    scale2 = params["bn2_gamma"] / jnp.sqrt(params["bn2_var"] + eps)
    shift2 = (params["b2"] - params["bn2_mean"]) * scale2 + params["bn2_beta"]
    y2 = conv_bn_pool(p2, w2, scale2, shift2, apply_relu=False)    # [N*49, 32]

    # Flatten directly in NHWC order (no runtime transpose); fc1's weight rows
    # are statically permuted so the math matches PyTorch's NCHW flatten.
    flat = y2.reshape(n, 7 * 7 * 32)                     # [N, 1568] bf16
    # Lane-align the fc1 contraction dim: 1568 -> 1664 (= 13 * 128) with zero
    # columns / zero weight rows (padding contributes nothing to the dot).
    k_pad = _round_up(7 * 7 * 32, _LANE)                 # 1664
    flat = jnp.pad(flat, ((0, 0), (0, k_pad - 1568)))

    perm = (jnp.arange(1568) % 32) * 49 + (jnp.arange(1568) // 32)
    fc1_w = params["fc1_w"][perm].astype(jnp.bfloat16)   # rows: NCHW -> NHWC order
    fc1_w = jnp.pad(fc1_w, ((0, k_pad - 1568), (0, 40))) # 1568x600 -> 1664x640
    fc1_b = jnp.pad(params["fc1_b"], (0, 40)).reshape(1, 640).astype(jnp.float32)
    fc2_w = jnp.pad(params["fc2_w"].astype(jnp.bfloat16), ((0, 40), (0, 118)))
    fc2_b = jnp.pad(params["fc2_b"], (0, 118)).reshape(1, 128).astype(jnp.float32)

    # fc1 + relu + dropout(eval: identity) + fc2: one fused kernel
    logits = fused_mlp(flat, fc1_w, fc1_b, fc2_w, fc2_b)           # [N, 128] f32
    return logits[:, :10]


if __name__ == "__main__":
    key = jax.random.PRNGKey(0)
    pkey, xkey = jax.random.split(key)
    params = init_params(pkey)
    # MNIST-style input implied by fc1(1568) = 32*7*7: [batch=2, 1, 28, 28]
    x = jax.random.normal(xkey, (2, 1, 28, 28), jnp.float32)
    out = jax.jit(cnn_forward)(params, x)
    out = jax.block_until_ready(out)
    assert out.shape == (2, 10) and out.dtype == jnp.float32
    print("KERNEL_OK")
</pallas_src>

<mosaic_0001>
module attributes {stable_mosaic.version = 11 : i64} {
  func.func @_conv_bn_pool_kernel(%arg0: i32, %arg1: memref<4x400x9xbf16, #tpu.memory_space<vmem>>, %arg2: memref<9x128xbf16, #tpu.memory_space<vmem>>, %arg3: memref<1x128xf32, #tpu.memory_space<vmem>>, %arg4: memref<1x128xf32, #tpu.memory_space<vmem>>, %arg5: memref<400x128xbf16, #tpu.memory_space<vmem>>) attributes {dimension_semantics = [#tpu.dimension_semantics<parallel>], iteration_bounds = array<i64: 1>, scalar_prefetch = 0 : i64, scratch_operands = 0 : i64, tpu.core_type = #tpu.core_type<tc>, window_params = [{transform_indices = @transform_0, window_bounds = array<i64: 4, 400, 9>}, {pipeline_mode = #tpu.pipeline_mode<synchronous>, transform_indices = @transform_1, window_bounds = array<i64: 9, 128>}, {pipeline_mode = #tpu.pipeline_mode<synchronous>, transform_indices = @transform_2, window_bounds = array<i64: 1, 128>}, {pipeline_mode = #tpu.pipeline_mode<synchronous>, transform_indices = @transform_3, window_bounds = array<i64: 1, 128>}, {transform_indices = @transform_4, window_bounds = array<i64: 400, 128>}]} {
    %c0 = arith.constant 0 : index
    %c0_0 = arith.constant 0 : index
    %0 = vector.load %arg2[%c0, %c0_0] : memref<9x128xbf16, #tpu.memory_space<vmem>>, vector<9x128xbf16>
    %c0_1 = arith.constant 0 : index
    %c0_2 = arith.constant 0 : index
    %1 = vector.load %arg3[%c0_1, %c0_2] : memref<1x128xf32, #tpu.memory_space<vmem>>, vector<1x128xf32>
    %c0_3 = arith.constant 0 : index
    %c0_4 = arith.constant 0 : index
    %2 = vector.load %arg4[%c0_3, %c0_4] : memref<1x128xf32, #tpu.memory_space<vmem>>, vector<1x128xf32>
    %c0_5 = arith.constant 0 : index
    %c0_6 = arith.constant 0 : index
    %c0_7 = arith.constant 0 : index
    %3 = vector.load %arg1[%c0_5, %c0_6, %c0_7] : memref<4x400x9xbf16, #tpu.memory_space<vmem>>, vector<1x400x9xbf16>
    %4 = vector.shape_cast %3 : vector<1x400x9xbf16> to vector<400x9xbf16>
    %cst = arith.constant dense<0.000000e+00> : vector<400x128xf32>
    %5 = tpu.matmul %4, %0, %cst {dimension_numbers = #tpu.dot_dimension_numbers<[1], [0], [0], [1], [0, 0, 1, 1], [], []>} : vector<400x9xbf16>, vector<9x128xbf16>, vector<400x128xf32> -> vector<400x128xf32>
    %6 = vector.broadcast %1 : vector<1x128xf32> to vector<400x128xf32>
    %7 = arith.mulf %5, %6 : vector<400x128xf32>
    %8 = vector.broadcast %2 : vector<1x128xf32> to vector<400x128xf32>
    %9 = arith.addf %7, %8 : vector<400x128xf32>
    %cst_8 = arith.constant 0.000000e+00 : f32
    %10 = vector.broadcast %cst_8 : f32 to vector<400x128xf32>
    %11 = arith.maximumf %9, %10 : vector<400x128xf32>
    %c1 = arith.constant 1 : index
    %c0_9 = arith.constant 0 : index
    %c0_10 = arith.constant 0 : index
    %12 = vector.load %arg1[%c1, %c0_9, %c0_10] : memref<4x400x9xbf16, #tpu.memory_space<vmem>>, vector<1x400x9xbf16>
    %13 = vector.shape_cast %12 : vector<1x400x9xbf16> to vector<400x9xbf16>
    %cst_11 = arith.constant dense<0.000000e+00> : vector<400x128xf32>
    %14 = tpu.matmul %13, %0, %cst_11 {dimension_numbers = #tpu.dot_dimension_numbers<[1], [0], [0], [1], [0, 0, 1, 1], [], []>} : vector<400x9xbf16>, vector<9x128xbf16>, vector<400x128xf32> -> vector<400x128xf32>
    %15 = vector.broadcast %1 : vector<1x128xf32> to vector<400x128xf32>
    %16 = arith.mulf %14, %15 : vector<400x128xf32>
    %17 = vector.broadcast %2 : vector<1x128xf32> to vector<400x128xf32>
    %18 = arith.addf %16, %17 : vector<400x128xf32>
    %cst_12 = arith.constant 0.000000e+00 : f32
    %19 = vector.broadcast %cst_12 : f32 to vector<400x128xf32>
    %20 = arith.maximumf %18, %19 : vector<400x128xf32>
    %21 = arith.maximumf %11, %20 : vector<400x128xf32>
    %c2 = arith.constant 2 : index
    %c0_13 = arith.constant 0 : index
    %c0_14 = arith.constant 0 : index
    %22 = vector.load %arg1[%c2, %c0_13, %c0_14] : memref<4x400x9xbf16, #tpu.memory_space<vmem>>, vector<1x400x9xbf16>
    %23 = vector.shape_cast %22 : vector<1x400x9xbf16> to vector<400x9xbf16>
    %cst_15 = arith.constant dense<0.000000e+00> : vector<400x128xf32>
    %24 = tpu.matmul %23, %0, %cst_15 {dimension_numbers = #tpu.dot_dimension_numbers<[1], [0], [0], [1], [0, 0, 1, 1], [], []>} : vector<400x9xbf16>, vector<9x128xbf16>, vector<400x128xf32> -> vector<400x128xf32>
    %25 = vector.broadcast %1 : vector<1x128xf32> to vector<400x128xf32>
    %26 = arith.mulf %24, %25 : vector<400x128xf32>
    %27 = vector.broadcast %2 : vector<1x128xf32> to vector<400x128xf32>
    %28 = arith.addf %26, %27 : vector<400x128xf32>
    %cst_16 = arith.constant 0.000000e+00 : f32
    %29 = vector.broadcast %cst_16 : f32 to vector<400x128xf32>
    %30 = arith.maximumf %28, %29 : vector<400x128xf32>
    %31 = arith.maximumf %21, %30 : vector<400x128xf32>
    %c3 = arith.constant 3 : index
    %c0_17 = arith.constant 0 : index
    %c0_18 = arith.constant 0 : index
    %32 = vector.load %arg1[%c3, %c0_17, %c0_18] : memref<4x400x9xbf16, #tpu.memory_space<vmem>>, vector<1x400x9xbf16>
    %33 = vector.shape_cast %32 : vector<1x400x9xbf16> to vector<400x9xbf16>
    %cst_19 = arith.constant dense<0.000000e+00> : vector<400x128xf32>
    %34 = tpu.matmul %33, %0, %cst_19 {dimension_numbers = #tpu.dot_dimension_numbers<[1], [0], [0], [1], [0, 0, 1, 1], [], []>} : vector<400x9xbf16>, vector<9x128xbf16>, vector<400x128xf32> -> vector<400x128xf32>
    %35 = vector.broadcast %1 : vector<1x128xf32> to vector<400x128xf32>
    %36 = arith.mulf %34, %35 : vector<400x128xf32>
    %37 = vector.broadcast %2 : vector<1x128xf32> to vector<400x128xf32>
    %38 = arith.addf %36, %37 : vector<400x128xf32>
    %cst_20 = arith.constant 0.000000e+00 : f32
    %39 = vector.broadcast %cst_20 : f32 to vector<400x128xf32>
    %40 = arith.maximumf %38, %39 : vector<400x128xf32>
    %41 = arith.maximumf %31, %40 : vector<400x128xf32>
    %42 = arith.truncf %41 : vector<400x128xf32> to vector<400x128xbf16>
    %c0_21 = arith.constant 0 : index
    %c0_22 = arith.constant 0 : index
    %43 = vector.load %arg5[%c0_21, %c0_22] : memref<400x128xbf16, #tpu.memory_space<vmem>>, vector<400x128xbf16>
    tpu.vector_store %arg5[%c0_21, %c0_22], %42 {strides = array<i32>} : memref<400x128xbf16, #tpu.memory_space<vmem>>, vector<400x128xbf16>,
    return
  }
  func.func @transform_0(%arg0: i32) -> (i32, i32, i32) {
    %c0_i32 = arith.constant 0 : i32
    %c0_i32_0 = arith.constant 0 : i32
    %c0_i32_1 = arith.constant 0 : i32
    return %c0_i32, %arg0, %c0_i32_0 : i32, i32, i32
  }
  func.func @transform_1(%arg0: i32) -> (i32, i32) {
    %c0_i32 = arith.constant 0 : i32
    %c0_i32_0 = arith.constant 0 : i32
    %c0_i32_1 = arith.constant 0 : i32
    return %c0_i32, %c0_i32_0 : i32, i32
  }
  func.func @transform_2(%arg0: i32) -> (i32, i32) {
    %c0_i32 = arith.constant 0 : i32
    %c0_i32_0 = arith.constant 0 : i32
    %c0_i32_1 = arith.constant 0 : i32
    return %c0_i32, %c0_i32_0 : i32, i32
  }
  func.func @transform_3(%arg0: i32) -> (i32, i32) {
    %c0_i32 = arith.constant 0 : i32
    %c0_i32_0 = arith.constant 0 : i32
    %c0_i32_1 = arith.constant 0 : i32
    return %c0_i32, %c0_i32_0 : i32, i32
  }
  func.func @transform_4(%arg0: i32) -> (i32, i32) {
    %c0_i32 = arith.constant 0 : i32
    %c0_i32_0 = arith.constant 0 : i32
    return %arg0, %c0_i32 : i32, i32
  }
}

module attributes {stable_mosaic.version = 11 : i64} {
  func.func @_conv_bn_pool_kernel(%arg0: i32, %arg1: memref<4x112x200xbf16, #tpu.memory_space<vmem>>, %arg2: memref<200x128xbf16, #tpu.memory_space<vmem>>, %arg3: memref<1x128xf32, #tpu.memory_space<vmem>>, %arg4: memref<1x128xf32, #tpu.memory_space<vmem>>, %arg5: memref<112x128xbf16, #tpu.memory_space<vmem>>) attributes {dimension_semantics = [#tpu.dimension_semantics<parallel>], iteration_bounds = array<i64: 1>, scalar_prefetch = 0 : i64, scratch_operands = 0 : i64, tpu.core_type = #tpu.core_type<tc>, window_params = [{transform_indices = @transform_0, window_bounds = array<i64: 4, 112, 200>}, {pipeline_mode = #tpu.pipeline_mode<synchronous>, transform_indices = @transform_1, window_bounds = array<i64: 200, 128>}, {pipeline_mode = #tpu.pipeline_mode<synchronous>, transform_indices = @transform_2, window_bounds = array<i64: 1, 128>}, {pipeline_mode = #tpu.pipeline_mode<synchronous>, transform_indices = @transform_3, window_bounds = array<i64: 1, 128>}, {transform_indices = @transform_4, window_bounds = array<i64: 112, 128>}]} {
    %c0 = arith.constant 0 : index
    %c0_0 = arith.constant 0 : index
    %0 = vector.load %arg2[%c0, %c0_0] : memref<200x128xbf16, #tpu.memory_space<vmem>>, vector<200x128xbf16>
    %c0_1 = arith.constant 0 : index
    %c0_2 = arith.constant 0 : index
    %1 = vector.load %arg3[%c0_1, %c0_2] : memref<1x128xf32, #tpu.memory_space<vmem>>, vector<1x128xf32>
    %c0_3 = arith.constant 0 : index
    %c0_4 = arith.constant 0 : index
    %2 = vector.load %arg4[%c0_3, %c0_4] : memref<1x128xf32, #tpu.memory_space<vmem>>, vector<1x128xf32>
    %c0_5 = arith.constant 0 : index
    %c0_6 = arith.constant 0 : index
    %c0_7 = arith.constant 0 : index
    %3 = vector.load %arg1[%c0_5, %c0_6, %c0_7] : memref<4x112x200xbf16, #tpu.memory_space<vmem>>, vector<1x112x200xbf16>
    %4 = vector.shape_cast %3 : vector<1x112x200xbf16> to vector<112x200xbf16>
    %cst = arith.constant dense<0.000000e+00> : vector<112x128xf32>
    %5 = tpu.matmul %4, %0, %cst {dimension_numbers = #tpu.dot_dimension_numbers<[1], [0], [0], [1], [0, 0, 1, 1], [], []>} : vector<112x200xbf16>, vector<200x128xbf16>, vector<112x128xf32> -> vector<112x128xf32>
    %6 = vector.broadcast %1 : vector<1x128xf32> to vector<112x128xf32>
    %7 = arith.mulf %5, %6 : vector<112x128xf32>
    %8 = vector.broadcast %2 : vector<1x128xf32> to vector<112x128xf32>
    %9 = arith.addf %7, %8 : vector<112x128xf32>
    %c1 = arith.constant 1 : index
    %c0_8 = arith.constant 0 : index
    %c0_9 = arith.constant 0 : index
    %10 = vector.load %arg1[%c1, %c0_8, %c0_9] : memref<4x112x200xbf16, #tpu.memory_space<vmem>>, vector<1x112x200xbf16>
    %11 = vector.shape_cast %10 : vector<1x112x200xbf16> to vector<112x200xbf16>
    %cst_10 = arith.constant dense<0.000000e+00> : vector<112x128xf32>
    %12 = tpu.matmul %11, %0, %cst_10 {dimension_numbers = #tpu.dot_dimension_numbers<[1], [0], [0], [1], [0, 0, 1, 1], [], []>} : vector<112x200xbf16>, vector<200x128xbf16>, vector<112x128xf32> -> vector<112x128xf32>
    %13 = vector.broadcast %1 : vector<1x128xf32> to vector<112x128xf32>
    %14 = arith.mulf %12, %13 : vector<112x128xf32>
    %15 = vector.broadcast %2 : vector<1x128xf32> to vector<112x128xf32>
    %16 = arith.addf %14, %15 : vector<112x128xf32>
    %17 = arith.maximumf %9, %16 : vector<112x128xf32>
    %c2 = arith.constant 2 : index
    %c0_11 = arith.constant 0 : index
    %c0_12 = arith.constant 0 : index
    %18 = vector.load %arg1[%c2, %c0_11, %c0_12] : memref<4x112x200xbf16, #tpu.memory_space<vmem>>, vector<1x112x200xbf16>
    %19 = vector.shape_cast %18 : vector<1x112x200xbf16> to vector<112x200xbf16>
    %cst_13 = arith.constant dense<0.000000e+00> : vector<112x128xf32>
    %20 = tpu.matmul %19, %0, %cst_13 {dimension_numbers = #tpu.dot_dimension_numbers<[1], [0], [0], [1], [0, 0, 1, 1], [], []>} : vector<112x200xbf16>, vector<200x128xbf16>, vector<112x128xf32> -> vector<112x128xf32>
    %21 = vector.broadcast %1 : vector<1x128xf32> to vector<112x128xf32>
    %22 = arith.mulf %20, %21 : vector<112x128xf32>
    %23 = vector.broadcast %2 : vector<1x128xf32> to vector<112x128xf32>
    %24 = arith.addf %22, %23 : vector<112x128xf32>
    %25 = arith.maximumf %17, %24 : vector<112x128xf32>
    %c3 = arith.constant 3 : index
    %c0_14 = arith.constant 0 : index
    %c0_15 = arith.constant 0 : index
    %26 = vector.load %arg1[%c3, %c0_14, %c0_15] : memref<4x112x200xbf16, #tpu.memory_space<vmem>>, vector<1x112x200xbf16>
    %27 = vector.shape_cast %26 : vector<1x112x200xbf16> to vector<112x200xbf16>
    %cst_16 = arith.constant dense<0.000000e+00> : vector<112x128xf32>
    %28 = tpu.matmul %27, %0, %cst_16 {dimension_numbers = #tpu.dot_dimension_numbers<[1], [0], [0], [1], [0, 0, 1, 1], [], []>} : vector<112x200xbf16>, vector<200x128xbf16>, vector<112x128xf32> -> vector<112x128xf32>
    %29 = vector.broadcast %1 : vector<1x128xf32> to vector<112x128xf32>
    %30 = arith.mulf %28, %29 : vector<112x128xf32>
    %31 = vector.broadcast %2 : vector<1x128xf32> to vector<112x128xf32>
    %32 = arith.addf %30, %31 : vector<112x128xf32>
    %33 = arith.maximumf %25, %32 : vector<112x128xf32>
    %34 = arith.truncf %33 : vector<112x128xf32> to vector<112x128xbf16>
    %c0_17 = arith.constant 0 : index
    %c0_18 = arith.constant 0 : index
    %35 = vector.load %arg5[%c0_17, %c0_18] : memref<112x128xbf16, #tpu.memory_space<vmem>>, vector<112x128xbf16>
    tpu.vector_store %arg5[%c0_17, %c0_18], %34 {strides = array<i32>} : memref<112x128xbf16, #tpu.memory_space<vmem>>, vector<112x128xbf16>,
    return
  }
  func.func @transform_0(%arg0: i32) -> (i32, i32, i32) {
    %c0_i32 = arith.constant 0 : i32
    %c0_i32_0 = arith.constant 0 : i32
    %c0_i32_1 = arith.constant 0 : i32
    return %c0_i32, %arg0, %c0_i32_0 : i32, i32, i32
  }
  func.func @transform_1(%arg0: i32) -> (i32, i32) {
    %c0_i32 = arith.constant 0 : i32
    %c0_i32_0 = arith.constant 0 : i32
    %c0_i32_1 = arith.constant 0 : i32
    return %c0_i32, %c0_i32_0 : i32, i32
  }
  func.func @transform_2(%arg0: i32) -> (i32, i32) {
    %c0_i32 = arith.constant 0 : i32
    %c0_i32_0 = arith.constant 0 : i32
    %c0_i32_1 = arith.constant 0 : i32
    return %c0_i32, %c0_i32_0 : i32, i32
  }
  func.func @transform_3(%arg0: i32) -> (i32, i32) {
    %c0_i32 = arith.constant 0 : i32
    %c0_i32_0 = arith.constant 0 : i32
    %c0_i32_1 = arith.constant 0 : i32
    return %c0_i32, %c0_i32_0 : i32, i32
  }
  func.func @transform_4(%arg0: i32) -> (i32, i32) {
    %c0_i32 = arith.constant 0 : i32
    %c0_i32_0 = arith.constant 0 : i32
    return %arg0, %c0_i32 : i32, i32
  }
}

module attributes {stable_mosaic.version = 11 : i64} {
  func.func @_mlp_kernel(%arg0: i32, %arg1: memref<16x1664xbf16, #tpu.memory_space<vmem>>, %arg2: memref<1664x640xbf16, #tpu.memory_space<vmem>>, %arg3: memref<1x640xf32, #tpu.memory_space<vmem>>, %arg4: memref<640x128xbf16, #tpu.memory_space<vmem>>, %arg5: memref<1x128xf32, #tpu.memory_space<vmem>>, %arg6: memref<16x128xf32, #tpu.memory_space<vmem>>) attributes {dimension_semantics = [#tpu.dimension_semantics<parallel>], iteration_bounds = array<i64: 1>, scalar_prefetch = 0 : i64, scratch_operands = 0 : i64, tpu.core_type = #tpu.core_type<tc>, window_params = [{transform_indices = @transform_0, window_bounds = array<i64: 16, 1664>}, {pipeline_mode = #tpu.pipeline_mode<synchronous>, transform_indices = @transform_1, window_bounds = array<i64: 1664, 640>}, {pipeline_mode = #tpu.pipeline_mode<synchronous>, transform_indices = @transform_2, window_bounds = array<i64: 1, 640>}, {pipeline_mode = #tpu.pipeline_mode<synchronous>, transform_indices = @transform_3, window_bounds = array<i64: 640, 128>}, {pipeline_mode = #tpu.pipeline_mode<synchronous>, transform_indices = @transform_4, window_bounds = array<i64: 1, 128>}, {transform_indices = @transform_5, window_bounds = array<i64: 16, 128>}]} {
    %c0 = arith.constant 0 : index
    %c0_0 = arith.constant 0 : index
    %0 = vector.load %arg1[%c0, %c0_0] : memref<16x1664xbf16, #tpu.memory_space<vmem>>, vector<16x1664xbf16>
    %c0_1 = arith.constant 0 : index
    %c0_2 = arith.constant 0 : index
    %1 = vector.load %arg2[%c0_1, %c0_2] : memref<1664x640xbf16, #tpu.memory_space<vmem>>, vector<1664x640xbf16>
    %cst = arith.constant dense<0.000000e+00> : vector<16x640xf32>
    %2 = tpu.matmul %0, %1, %cst {dimension_numbers = #tpu.dot_dimension_numbers<[1], [0], [0], [1], [0, 0, 1, 1], [], []>} : vector<16x1664xbf16>, vector<1664x640xbf16>, vector<16x640xf32> -> vector<16x640xf32>
    %c0_3 = arith.constant 0 : index
    %c0_4 = arith.constant 0 : index
    %3 = vector.load %arg3[%c0_3, %c0_4] : memref<1x640xf32, #tpu.memory_space<vmem>>, vector<1x640xf32>
    %4 = vector.broadcast %3 : vector<1x640xf32> to vector<16x640xf32>
    %5 = arith.addf %2, %4 : vector<16x640xf32>
    %cst_5 = arith.constant 0.000000e+00 : f32
    %6 = vector.broadcast %cst_5 : f32 to vector<16x640xf32>
    %7 = arith.maximumf %5, %6 : vector<16x640xf32>
    %8 = arith.truncf %7 : vector<16x640xf32> to vector<16x640xbf16>
    %c0_6 = arith.constant 0 : index
    %c0_7 = arith.constant 0 : index
    %9 = vector.load %arg4[%c0_6, %c0_7] : memref<640x128xbf16, #tpu.memory_space<vmem>>, vector<640x128xbf16>
    %cst_8 = arith.constant dense<0.000000e+00> : vector<16x128xf32>
    %10 = tpu.matmul %8, %9, %cst_8 {dimension_numbers = #tpu.dot_dimension_numbers<[1], [0], [0], [1], [0, 0, 1, 1], [], []>} : vector<16x640xbf16>, vector<640x128xbf16>, vector<16x128xf32> -> vector<16x128xf32>
    %c0_9 = arith.constant 0 : index
    %c0_10 = arith.constant 0 : index
    %11 = vector.load %arg5[%c0_9, %c0_10] : memref<1x128xf32, #tpu.memory_space<vmem>>, vector<1x128xf32>
    %12 = vector.broadcast %11 : vector<1x128xf32> to vector<16x128xf32>
    %13 = arith.addf %10, %12 : vector<16x128xf32>
    %c0_11 = arith.constant 0 : index
    %c0_12 = arith.constant 0 : index
    %14 = vector.load %arg6[%c0_11, %c0_12] : memref<16x128xf32, #tpu.memory_space<vmem>>, vector<16x128xf32>
    tpu.vector_store %arg6[%c0_11, %c0_12], %13 {strides = array<i32>} : memref<16x128xf32, #tpu.memory_space<vmem>>, vector<16x128xf32>,
    return
  }
  func.func @transform_0(%arg0: i32) -> (i32, i32) {
    %c0_i32 = arith.constant 0 : i32
    %c0_i32_0 = arith.constant 0 : i32
    return %arg0, %c0_i32 : i32, i32
  }
  func.func @transform_1(%arg0: i32) -> (i32, i32) {
    %c0_i32 = arith.constant 0 : i32
    %c0_i32_0 = arith.constant 0 : i32
    %c0_i32_1 = arith.constant 0 : i32
    return %c0_i32, %c0_i32_0 : i32, i32
  }
  func.func @transform_2(%arg0: i32) -> (i32, i32) {
    %c0_i32 = arith.constant 0 : i32
    %c0_i32_0 = arith.constant 0 : i32
    %c0_i32_1 = arith.constant 0 : i32
    return %c0_i32, %c0_i32_0 : i32, i32
  }
  func.func @transform_3(%arg0: i32) -> (i32, i32) {
    %c0_i32 = arith.constant 0 : i32
    %c0_i32_0 = arith.constant 0 : i32
    %c0_i32_1 = arith.constant 0 : i32
    return %c0_i32, %c0_i32_0 : i32, i32
  }
  func.func @transform_4(%arg0: i32) -> (i32, i32) {
    %c0_i32 = arith.constant 0 : i32
    %c0_i32_0 = arith.constant 0 : i32
    %c0_i32_1 = arith.constant 0 : i32
    return %c0_i32, %c0_i32_0 : i32, i32
  }
  func.func @transform_5(%arg0: i32) -> (i32, i32) {
    %c0_i32 = arith.constant 0 : i32
    %c0_i32_0 = arith.constant 0 : i32
    return %arg0, %c0_i32 : i32, i32
  }
}

</mosaic_0001>

<bundles_post_ra>
// kernel: cnn_forward.3
= control target key start
LH: loop header
LB: loop body
LE: loop exit
PB: predicated region body
PF: predicated region fallthrough
CT: control target
= control target key end

     0   :  { %vm278_vm0 = vcmask 1043456   ;;  %vm279_vm1 = vcmask 1044480   ;;  %v4208_v0 = vmov 0.0   ;;  %v4209_v2 = vmov 65535   ;;  %s5498_s1 = inlined_call_operand.vmem [shape: bf16[9,128], index: 1, kind: input, shape index: {}]   ;;  %s5499_s0 = inlined_call_operand.vmem [shape: bf16[4,400,9], index: 0, kind: input, shape index: {}]   ;;  %s5500_s2 = inlined_call_operand.vmem [shape: f32[1,128], index: 2, kind: input, shape index: {}]   ;;  %s5501_s3 = inlined_call_operand.vmem [shape: f32[1,128], index: 3, kind: input, shape index: {}]   ;;  %s5502_s4 = inlined_call_operand.vmem [shape: bf16[400,128], index: 4, kind: output, shape index: {}]  }
   0x1   :  { %3692 = vmatprep.subr.bf16.mxu0 %v4208_v0  ;;  %3794 = vmatprep.subr.bf16.mxu1 %v4208_v0  ;;  %v4103_v1 = vld [vmem:[%s5498_s1] sm:$0x1f]   ;;  %v280_v3 = vsel %vm278_vm0, 4294967295, %v4209_v2  ;;  %vm4210_vm2 = vmmov 0   ;;  %v4105_v7 = vld [vmem:[%s5499_s0 + $0xc8] sm:$0xff]   ;;  %vm202_vm3 = vcmask 72704  }
   0x2   :  { %v281_v4 = vsel %vm279_vm1, %v280_v3, 0  ;;  %3694 = vmatprep.mubr.msk.bf16.mxu0 %vm4210_vm2, %v4208_v0  ;;  %3796 = vmatprep.mubr.msk.bf16.mxu1 %vm4210_vm2, %v4208_v0  ;;  %v4104_v5 = vld [vmem:[%s5499_s0] sm:$0xff]   ;;  %v4106_v8 = vld [vmem:[%s5499_s0 + $0x8] sm:$0xff]   ;;  %v4107_v9 = vld [vmem:[%s5499_s0 + $0xd0] sm:$0xff]  }
   0x3   :  { %v283_v6 = vand.u32 %v4103_v1, %v281_v4  ;;  %v4108_v10 = vld [vmem:[%s5499_s0 + $0x10] sm:$0xff]   ;;  %v4109_v11 = vld [vmem:[%s5499_s0 + $0xd8] sm:$0xff]   ;;  %v4111_v13 = vld [vmem:[%s5499_s0 + $0xe0] sm:$0xff]  }
   0x4   :  { %v4110_v12 = vld [vmem:[%s5499_s0 + $0x18] sm:$0xff]   ;;  %v4112_v14 = vld [vmem:[%s5499_s0 + $0x20] sm:$0xff]   ;;  %v4113_v15 = vld [vmem:[%s5499_s0 + $0xe8] sm:$0xff]  }
   0x5   :  { %3693 = vmatpush3.bf16.msra.mxu0 %v283_v6  ;;  %3795 = vmatpush3.bf16.msra.mxu1 %v283_v6  ;;  %v4114_v16 = vld [vmem:[%s5499_s0 + $0x28] sm:$0xff]   ;;  %v4115_v17 = vld [vmem:[%s5499_s0 + $0xf0] sm:$0xff]   ;;  %v4117_v19 = vld [vmem:[%s5499_s0 + $0xf8] sm:$0xff]  }
   0x6   :  { %3896 = vmatprep.subr.bf16.mxu0 %v4208_v0  ;;  %3998 = vmatprep.subr.bf16.mxu1 %v4208_v0  ;;  %v4116_v18 = vld [vmem:[%s5499_s0 + $0x30] sm:$0xff]   ;;  %v4118_v20 = vld [vmem:[%s5499_s0 + $0x38] sm:$0xff]   ;;  %v4119_v21 = vld [vmem:[%s5499_s0 + $0x100] sm:$0xff]  }
   0x7   :  { %v4120_v22 = vld [vmem:[%s5499_s0 + $0x40] sm:$0xff]   ;;  %v4121_v23 = vld [vmem:[%s5499_s0 + $0x108] sm:$0xff]   ;;  %v4123_v25 = vld [vmem:[%s5499_s0 + $0x110] sm:$0xff]  }
   0x8   :  { %3695 = vmatmul.mubr.msk.bf16.vlgmr.msra.gmra.mrb[0].mxu0 %vm202_vm3, %v4104_v5  ;;  %3797 = vmatmul.mubr.msk.bf16.vlgmr.msra.gmra.mrb[0].mxu1 %vm202_vm3, %v4105_v7  ;;  %v4122_v24 = vld [vmem:[%s5499_s0 + $0x48] sm:$0xff]   ;;  %v4124_v26 = vld [vmem:[%s5499_s0 + $0x50] sm:$0xff]   ;;  %v4125_v27 = vld [vmem:[%s5499_s0 + $0x118] sm:$0xff]  }
   0x9   :  { %3897 = vmatpush3.bf16.msra.mxu0 %v283_v6  ;;  %3999 = vmatpush3.bf16.msra.mxu1 %v283_v6  ;;  %v4126_v28 = vld [vmem:[%s5499_s0 + $0x58] sm:$0xff]   ;;  %v4127_v29 = vld [vmem:[%s5499_s0 + $0x120] sm:$0xff]   ;;  %v4129_v31 = vld [vmem:[%s5499_s0 + $0x128] sm:$0xff]  }
   0xa   :  { %3698 = vmatprep.mubr.msk.bf16.mxu0 %vm4210_vm2, %v4208_v0  ;;  %3800 = vmatprep.mubr.msk.bf16.mxu1 %vm4210_vm2, %v4208_v0  ;;  %v4128_v30 = vld [vmem:[%s5499_s0 + $0x60] sm:$0xff]   ;;  %v4130_v32 = vld [vmem:[%s5499_s0 + $0x68] sm:$0xff]   ;;  %v4131_v33 = vld [vmem:[%s5499_s0 + $0x130] sm:$0xff]  }
   0xb   :  { %v4132_v34 = vld [vmem:[%s5499_s0 + $0x70] sm:$0xff]   ;;  %v4133_v35 = vld [vmem:[%s5499_s0 + $0x138] sm:$0xff]   ;;  %v4135_v37 = vld [vmem:[%s5499_s0 + $0x140] sm:$0xff]  }
   0xc   :  { %v4134_v36 = vld [vmem:[%s5499_s0 + $0x78] sm:$0xff]   ;;  %v4136_v38 = vld [vmem:[%s5499_s0 + $0x80] sm:$0xff]   ;;  %v4137_v39 = vld [vmem:[%s5499_s0 + $0x148] sm:$0xff]  }
   0xd   :  { %v4138_v40 = vld [vmem:[%s5499_s0 + $0x88] sm:$0xff]   ;;  %v4139_v41 = vld [vmem:[%s5499_s0 + $0x150] sm:$0xff]   ;;  %v4141_v43 = vld [vmem:[%s5499_s0 + $0x158] sm:$0xff]  }
   0xe   :  { %v4140_v42 = vld [vmem:[%s5499_s0 + $0x90] sm:$0xff]   ;;  %v4142_v44 = vld [vmem:[%s5499_s0 + $0x98] sm:$0xff]   ;;  %v4143_v45 = vld [vmem:[%s5499_s0 + $0x160] sm:$0xff]  }
   0xf   :  { %v4144_v46 = vld [vmem:[%s5499_s0 + $0xa0] sm:$0xff]   ;;  %v4145_v47 = vld [vmem:[%s5499_s0 + $0x168] sm:$0xff]   ;;  %v4147_v49 = vld [vmem:[%s5499_s0 + $0x170] sm:$0xff]  }
  0x10   :  { %3699 = vmatmul.mubr.msk.bf16.gmra.mrb[4].mxu0 %vm202_vm3, %v4106_v8  ;;  %3801 = vmatmul.mubr.msk.bf16.gmra.mrb[4].mxu1 %vm202_vm3, %v4107_v9  ;;  %v4146_v48 = vld [vmem:[%s5499_s0 + $0xa8] sm:$0xff]   ;;  %v4148_v50 = vld [vmem:[%s5499_s0 + $0xb0] sm:$0xff]   ;;  %v4149_v51 = vld [vmem:[%s5499_s0 + $0x178] sm:$0xff]  }
  0x11   :  { %3702 = vmatprep.mubr.msk.bf16.mxu0 %vm4210_vm2, %v4208_v0  ;;  %3804 = vmatprep.mubr.msk.bf16.mxu1 %vm4210_vm2, %v4208_v0  ;;  %v4150_v52 = vld [vmem:[%s5499_s0 + $0xb8] sm:$0xff]   ;;  %v4151_v53 = vld [vmem:[%s5499_s0 + $0x180] sm:$0xff]   ;;  %v4153_v55 = vld [vmem:[%s5499_s0 + $0x188] sm:$0xff]  }
  0x12   :  { %v4152_v54 = vld [vmem:[%s5499_s0 + $0xc0] sm:$0xff]   ;;  %v4154_v56 = vld [vmem:[%s5499_s0 + $0x190] sm:$0xff]   ;;  %v4155_v57 = vld [vmem:[%s5499_s0 + $0x258] sm:$0xff]  }
  0x13   :  { %v4156_v58 = vld [vmem:[%s5499_s0 + $0x198] sm:$0xff]   ;;  %v4157_v59 = vld [vmem:[%s5499_s0 + $0x260] sm:$0xff]   ;;  %v4159_v6 = vld [vmem:[%s5499_s0 + $0x268] sm:$0xff]  }
  0x14   :  { %v4570_v60 = vld [vmem:[%s5500_s2] ss:$0 sm:$0xff] }
  0x15   :  { %v4579_v61 = vld [vmem:[%s5501_s3] ss:$0 sm:$0xff] }
  0x16   :  { %v4158_v5 = vld [vmem:[%s5499_s0 + $0x1a0] sm:$0xff]  }
  0x18   :  { %3703 = vmatmul.mubr.msk.bf16.gmra.mrb[8].mxu0 %vm202_vm3, %v4108_v10  ;;  %3805 = vmatmul.mubr.msk.bf16.gmra.mrb[8].mxu1 %vm202_vm3, %v4109_v11 }
  0x19   :  { %3706 = vmatprep.mubr.msk.bf16.mxu0 %vm4210_vm2, %v4208_v0  ;;  %3808 = vmatprep.mubr.msk.bf16.mxu1 %vm4210_vm2, %v4208_v0 }
  0x20   :  { %3707 = vmatmul.mubr.msk.bf16.gmra.mrb[12].mxu0 %vm202_vm3, %v4110_v12  ;;  %3809 = vmatmul.mubr.msk.bf16.gmra.mrb[12].mxu1 %vm202_vm3, %v4111_v13 }
  0x21   :  { %3710 = vmatprep.mubr.msk.bf16.mxu0 %vm4210_vm2, %v4208_v0  ;;  %3812 = vmatprep.mubr.msk.bf16.mxu1 %vm4210_vm2, %v4208_v0 }
  0x28   :  { %3711 = vmatmul.mubr.msk.bf16.gmra.mrb[16].mxu0 %vm202_vm3, %v4112_v14  ;;  %3813 = vmatmul.mubr.msk.bf16.gmra.mrb[16].mxu1 %vm202_vm3, %v4113_v15 }
  0x29   :  { %3714 = vmatprep.mubr.msk.bf16.mxu0 %vm4210_vm2, %v4208_v0  ;;  %3816 = vmatprep.mubr.msk.bf16.mxu1 %vm4210_vm2, %v4208_v0 }
  0x30   :  { %3715 = vmatmul.mubr.msk.bf16.gmra.mrb[20].mxu0 %vm202_vm3, %v4114_v16  ;;  %3817 = vmatmul.mubr.msk.bf16.gmra.mrb[20].mxu1 %vm202_vm3, %v4115_v17 }
  0x31   :  { %3718 = vmatprep.mubr.msk.bf16.mxu0 %vm4210_vm2, %v4208_v0  ;;  %3820 = vmatprep.mubr.msk.bf16.mxu1 %vm4210_vm2, %v4208_v0 }
  0x38   :  { %3719 = vmatmul.mubr.msk.bf16.gmra.mrb[24].mxu0 %vm202_vm3, %v4116_v18  ;;  %3821 = vmatmul.mubr.msk.bf16.gmra.mrb[24].mxu1 %vm202_vm3, %v4117_v19 }
  0x39   :  { %3722 = vmatprep.mubr.msk.bf16.mxu0 %vm4210_vm2, %v4208_v0  ;;  %3824 = vmatprep.mubr.msk.bf16.mxu1 %vm4210_vm2, %v4208_v0 }
  0x40   :  { %3723 = vmatmul.mubr.msk.bf16.gmra.mrb[28].mxu0 %vm202_vm3, %v4118_v20  ;;  %3825 = vmatmul.mubr.msk.bf16.gmra.mrb[28].mxu1 %vm202_vm3, %v4119_v21 }
  0x41   :  { %3726 = vmatprep.mubr.msk.bf16.mxu0 %vm4210_vm2, %v4208_v0  ;;  %3828 = vmatprep.mubr.msk.bf16.mxu1 %vm4210_vm2, %v4208_v0 }
  0x48   :  { %3727 = vmatmul.mubr.msk.bf16.gmra.mrb[32].mxu0 %vm202_vm3, %v4120_v22  ;;  %3829 = vmatmul.mubr.msk.bf16.gmra.mrb[32].mxu1 %vm202_vm3, %v4121_v23 }
  0x49   :  { %3730 = vmatprep.mubr.msk.bf16.mxu0 %vm4210_vm2, %v4208_v0  ;;  %3832 = vmatprep.mubr.msk.bf16.mxu1 %vm4210_vm2, %v4208_v0 }
  0x50   :  { %3731 = vmatmul.mubr.msk.bf16.gmra.mrb[36].mxu0 %vm202_vm3, %v4122_v24  ;;  %3833 = vmatmul.mubr.msk.bf16.gmra.mrb[36].mxu1 %vm202_vm3, %v4123_v25 }
  0x51   :  { %3734 = vmatprep.mubr.msk.bf16.mxu0 %vm4210_vm2, %v4208_v0  ;;  %3836 = vmatprep.mubr.msk.bf16.mxu1 %vm4210_vm2, %v4208_v0 }
  0x58   :  { %3735 = vmatmul.mubr.msk.bf16.gmra.mrb[40].mxu0 %vm202_vm3, %v4124_v26  ;;  %3837 = vmatmul.mubr.msk.bf16.gmra.mrb[40].mxu1 %vm202_vm3, %v4125_v27 }
  0x59   :  { %3738 = vmatprep.mubr.msk.bf16.mxu0 %vm4210_vm2, %v4208_v0  ;;  %3840 = vmatprep.mubr.msk.bf16.mxu1 %vm4210_vm2, %v4208_v0 }
  0x60   :  { %3739 = vmatmul.mubr.msk.bf16.gmra.mrb[44].mxu0 %vm202_vm3, %v4126_v28  ;;  %3841 = vmatmul.mubr.msk.bf16.gmra.mrb[44].mxu1 %vm202_vm3, %v4127_v29  ;;  %v4160_v29 = vld [vmem:[%s5499_s0 + $0x1a8] sm:$0xff]  }
  0x61   :  { %3742 = vmatprep.mubr.msk.bf16.mxu0 %vm4210_vm2, %v4208_v0  ;;  %3844 = vmatprep.mubr.msk.bf16.mxu1 %vm4210_vm2, %v4208_v0 }
  0x68   :  { %3743 = vmatmul.mubr.msk.bf16.gmra.mrb[48].mxu0 %vm202_vm3, %v4128_v30  ;;  %3845 = vmatmul.mubr.msk.bf16.gmra.mrb[48].mxu1 %vm202_vm3, %v4129_v31  ;;  %v4161_v30 = vld [vmem:[%s5499_s0 + $0x270] sm:$0xff]  }
  0x69   :  { %3746 = vmatprep.mubr.msk.bf16.mxu0 %vm4210_vm2, %v4208_v0  ;;  %3848 = vmatprep.mubr.msk.bf16.mxu1 %vm4210_vm2, %v4208_v0 }
  0x70   :  { %3747 = vmatmul.mubr.msk.bf16.gmra.mrb[52].mxu0 %vm202_vm3, %v4130_v32  ;;  %3849 = vmatmul.mubr.msk.bf16.gmra.mrb[52].mxu1 %vm202_vm3, %v4131_v33 }
  0x71   :  { %3750 = vmatprep.mubr.msk.bf16.mxu0 %vm4210_vm2, %v4208_v0  ;;  %3852 = vmatprep.mubr.msk.bf16.mxu1 %vm4210_vm2, %v4208_v0 }
  0x78   :  { %3751 = vmatmul.mubr.msk.bf16.gmra.mrb[56].mxu0 %vm202_vm3, %v4132_v34  ;;  %3853 = vmatmul.mubr.msk.bf16.gmra.mrb[56].mxu1 %vm202_vm3, %v4133_v35 }
  0x79   :  { %3754 = vmatprep.mubr.msk.bf16.mxu0 %vm4210_vm2, %v4208_v0  ;;  %3856 = vmatprep.mubr.msk.bf16.mxu1 %vm4210_vm2, %v4208_v0 }
  0x80   :  { %3755 = vmatmul.mubr.msk.bf16.gmra.mrb[60].mxu0 %vm202_vm3, %v4134_v36  ;;  %3857 = vmatmul.mubr.msk.bf16.gmra.mrb[60].mxu1 %vm202_vm3, %v4135_v37 }
  0x81   :  { %3758 = vmatprep.mubr.msk.bf16.mxu0 %vm4210_vm2, %v4208_v0  ;;  %3860 = vmatprep.mubr.msk.bf16.mxu1 %vm4210_vm2, %v4208_v0 }
  0x88   :  { %3759 = vmatmul.mubr.msk.bf16.gmra.mrb[64].mxu0 %vm202_vm3, %v4136_v38  ;;  %3861 = vmatmul.mubr.msk.bf16.gmra.mrb[64].mxu1 %vm202_vm3, %v4137_v39 }
  0x89   :  { %3762 = vmatprep.mubr.msk.bf16.mxu0 %vm4210_vm2, %v4208_v0  ;;  %3864 = vmatprep.mubr.msk.bf16.mxu1 %vm4210_vm2, %v4208_v0 }
  0x90   :  { %3763 = vmatmul.mubr.msk.bf16.gmra.mrb[68].mxu0 %vm202_vm3, %v4138_v40  ;;  %3865 = vmatmul.mubr.msk.bf16.gmra.mrb[68].mxu1 %vm202_vm3, %v4139_v41 }
  0x91   :  { %3766 = vmatprep.mubr.msk.bf16.mxu0 %vm4210_vm2, %v4208_v0  ;;  %3868 = vmatprep.mubr.msk.bf16.mxu1 %vm4210_vm2, %v4208_v0 }
  0x98   :  { %3767 = vmatmul.mubr.msk.bf16.gmra.mrb[72].mxu0 %vm202_vm3, %v4140_v42  ;;  %3869 = vmatmul.mubr.msk.bf16.gmra.mrb[72].mxu1 %vm202_vm3, %v4141_v43 }
  0x99   :  { %3770 = vmatprep.mubr.msk.bf16.mxu0 %vm4210_vm2, %v4208_v0  ;;  %3872 = vmatprep.mubr.msk.bf16.mxu1 %vm4210_vm2, %v4208_v0 }
  0xa0   :  { %3771 = vmatmul.mubr.msk.bf16.gmra.mrb[76].mxu0 %vm202_vm3, %v4142_v44  ;;  %3873 = vmatmul.mubr.msk.bf16.gmra.mrb[76].mxu1 %vm202_vm3, %v4143_v45 }
  0xa1   :  { %3774 = vmatprep.mubr.msk.bf16.mxu0 %vm4210_vm2, %v4208_v0  ;;  %3876 = vmatprep.mubr.msk.bf16.mxu1 %vm4210_vm2, %v4208_v0 }
  0xa8   :  { %3775 = vmatmul.mubr.msk.bf16.gmra.mrb[80].mxu0 %vm202_vm3, %v4144_v46  ;;  %3877 = vmatmul.mubr.msk.bf16.gmra.mrb[80].mxu1 %vm202_vm3, %v4145_v47 }
  0xa9   :  { %3778 = vmatprep.mubr.msk.bf16.mxu0 %vm4210_vm2, %v4208_v0  ;;  %3880 = vmatprep.mubr.msk.bf16.mxu1 %vm4210_vm2, %v4208_v0 }
  0xb0   :  { %3779 = vmatmul.mubr.msk.bf16.gmra.mrb[84].mxu0 %vm202_vm3, %v4146_v48  ;;  %3881 = vmatmul.mubr.msk.bf16.gmra.mrb[84].mxu1 %vm202_vm3, %v4147_v49 }
  0xb1   :  { %3782 = vmatprep.mubr.msk.bf16.mxu0 %vm4210_vm2, %v4208_v0  ;;  %3884 = vmatprep.mubr.msk.bf16.mxu1 %vm4210_vm2, %v4208_v0 }
  0xb8   :  { %3783 = vmatmul.mubr.msk.bf16.gmra.mrb[88].mxu0 %vm202_vm3, %v4148_v50  ;;  %3885 = vmatmul.mubr.msk.bf16.gmra.mrb[88].mxu1 %vm202_vm3, %v4149_v51 }
  0xb9   :  { %3786 = vmatprep.mubr.msk.bf16.mxu0 %vm4210_vm2, %v4208_v0  ;;  %3888 = vmatprep.mubr.msk.bf16.mxu1 %vm4210_vm2, %v4208_v0 }
  0xc0   :  { %3787 = vmatmul.mubr.msk.bf16.gmra.mrb[92].mxu0 %vm202_vm3, %v4150_v52  ;;  %3889 = vmatmul.mubr.msk.bf16.gmra.mrb[92].mxu1 %vm202_vm3, %v4151_v53  ;;  %v4162_v53 = vld [vmem:[%s5499_s0 + $0x1b0] sm:$0xff]  }
  0xc1   :  { %3790 = vmatprep.mubr.msk.bf16.mxu0 %vm4210_vm2, %v4208_v0  ;;  %3892 = vmatprep.mubr.msk.bf16.mxu1 %vm4210_vm2, %v4208_v0 }
  0xc8   :  { %3791 = vmatmul.mubr.msk.bf16.gmra.mrb[96].mxu0 %vm202_vm3, %v4152_v54  ;;  %3893 = vmatmul.mubr.msk.bf16.gmra.mrb[96].mxu1 %vm202_vm3, %v4153_v55  ;;  %v4163_v54 = vld [vmem:[%s5499_s0 + $0x278] sm:$0xff]  }
  0xc9   :  { %3898 = vmatprep.mubr.msk.bf16.mxu0 %vm4210_vm2, %v4208_v0  ;;  %4000 = vmatprep.mubr.msk.bf16.mxu1 %vm4210_vm2, %v4208_v0 }
  0xd0   :  { %3899 = vmatmul.mubr.msk.bf16.vlgmr.msra.gmra.mrb[100].mxu0 %vm202_vm3, %v4154_v56  ;;  %4001 = vmatmul.mubr.msk.bf16.vlgmr.msra.gmra.mrb[100].mxu1 %vm202_vm3, %v4155_v57 }
  0xd1   :  { %3902 = vmatprep.mubr.msk.bf16.mxu0 %vm4210_vm2, %v4208_v0  ;;  %4004 = vmatprep.mubr.msk.bf16.mxu1 %vm4210_vm2, %v4208_v0 }
  0xd8   :  { %3903 = vmatmul.mubr.msk.bf16.gmra.mrb[104].mxu0 %vm202_vm3, %v4156_v58  ;;  %4005 = vmatmul.mubr.msk.bf16.gmra.mrb[104].mxu1 %vm202_vm3, %v4157_v59 }
  0xd9   :  { %3906 = vmatprep.mubr.msk.bf16.mxu0 %vm4210_vm2, %v4208_v0  ;;  %4008 = vmatprep.mubr.msk.bf16.mxu1 %vm4210_vm2, %v4208_v0 }
  0xdb   :  { %v319_v62 = vpop.f32.mrb[0].mxu0  ;;  %v965_v63 = vpop.f32.mrb[0].mxu1 }
  0xdc   :  { %v524_v1 = vmul.f32 %v4570_v60, %v319_v62  ;;  %v1164_v2 = vmul.f32 %v4570_v60, %v965_v63  ;;  %v3696_v3 = vpop.f32.mrb[1].mxu0  ;;  %v3798_v4 = vpop.f32.mrb[1].mxu1 }
  0xdd   :  { %v322_v7 = vpop.f32.mrb[2].mxu0  ;;  %v968_v8 = vpop.f32.mrb[2].mxu1 }
  0xde   :  { %v580_v9 = vadd.f32 %v4579_v61, %v524_v1  ;;  %v1214_v10 = vadd.f32 %v4579_v61, %v1164_v2  ;;  %v525_v11 = vmul.f32 %v4570_v60, %v322_v7  ;;  %v1165_v12 = vmul.f32 %v4570_v60, %v968_v8  ;;  %v3697_v13 = vpop.f32.mrb[3].mxu0  ;;  %v3799_v14 = vpop.f32.mrb[3].mxu1 }
  0xe0   :  { %v630_v15 = vmax.f32 %v580_v9, 0.0  ;;  %v1264_v16 = vmax.f32 %v1214_v10, 0.0  ;;  %v581_v17 = vadd.f32 %v4579_v61, %v525_v11  ;;  %v1215_v18 = vadd.f32 %v4579_v61, %v1165_v12  ;;  %3907 = vmatmul.mubr.msk.bf16.gmra.mrb[108].mxu0 %vm202_vm3, %v4158_v5  ;;  %4009 = vmatmul.mubr.msk.bf16.gmra.mrb[108].mxu1 %vm202_vm3, %v4159_v6 }
  0xe1   :  { %3910 = vmatprep.mubr.msk.bf16.mxu0 %vm4210_vm2, %v4208_v0  ;;  %4012 = vmatprep.mubr.msk.bf16.mxu1 %vm4210_vm2, %v4208_v0 }
  0xe2   :  { %v4601_v19 = vmax.f32 %v630_v15, %v1264_v16  ;;  %v631_v20 = vmax.f32 %v581_v17, 0.0  ;;  %v1265_v21 = vmax.f32 %v1215_v18, 0.0  ;;  %v4164_v16 = vld [vmem:[%s5499_s0 + $0x1b8] sm:$0xff]   ;;  %v4165_v17 = vld [vmem:[%s5499_s0 + $0x280] sm:$0xff]  }
  0xe3   :  { %v327_v22 = vpop.f32.mrb[4].mxu0  ;;  %v973_v23 = vpop.f32.mrb[4].mxu1 }
  0xe4   :  { %v4603_v24 = vmax.f32 %v631_v20, %v1265_v21  ;;  %v526_v25 = vmul.f32 %v4570_v60, %v327_v22  ;;  %v1166_v26 = vmul.f32 %v4570_v60, %v973_v23  ;;  %v3700_v27 = vpop.f32.mrb[5].mxu0  ;;  %v3802_v28 = vpop.f32.mrb[5].mxu1 }
  0xe5   :  { %v330_v31 = vpop.f32.mrb[6].mxu0  ;;  %v976_v32 = vpop.f32.mrb[6].mxu1 }
  0xe6   :  { %v582_v33 = vadd.f32 %v4579_v61, %v526_v25  ;;  %v1216_v34 = vadd.f32 %v4579_v61, %v1166_v26  ;;  %v527_v35 = vmul.f32 %v4570_v60, %v330_v31  ;;  %v1167_v36 = vmul.f32 %v4570_v60, %v976_v32  ;;  %v3701_v37 = vpop.f32.mrb[7].mxu0  ;;  %v3803_v38 = vpop.f32.mrb[7].mxu1 }
  0xe8   :  { %v632_v39 = vmax.f32 %v582_v33, 0.0  ;;  %v1266_v40 = vmax.f32 %v1216_v34, 0.0  ;;  %v583_v41 = vadd.f32 %v4579_v61, %v527_v35  ;;  %v1217_v42 = vadd.f32 %v4579_v61, %v1167_v36  ;;  %3911 = vmatmul.mubr.msk.bf16.gmra.mrb[112].mxu0 %vm202_vm3, %v4160_v29  ;;  %4013 = vmatmul.mubr.msk.bf16.gmra.mrb[112].mxu1 %vm202_vm3, %v4161_v30 }
  0xe9   :  { %3914 = vmatprep.mubr.msk.bf16.mxu0 %vm4210_vm2, %v4208_v0  ;;  %4016 = vmatprep.mubr.msk.bf16.mxu1 %vm4210_vm2, %v4208_v0 }
  0xea   :  { %v4625_v43 = vmax.f32 %v632_v39, %v1266_v40  ;;  %v633_v44 = vmax.f32 %v583_v41, 0.0  ;;  %v1267_v45 = vmax.f32 %v1217_v42, 0.0  ;;  %v4166_v42 = vld [vmem:[%s5499_s0 + $0x1c0] sm:$0xff]  }
  0xeb   :  { %v335_v46 = vpop.f32.mrb[8].mxu0  ;;  %v981_v47 = vpop.f32.mrb[8].mxu1 }
  0xec   :  { %v4627_v48 = vmax.f32 %v633_v44, %v1267_v45  ;;  %v528_v49 = vmul.f32 %v4570_v60, %v335_v46  ;;  %v1168_v50 = vmul.f32 %v4570_v60, %v981_v47  ;;  %v3704_v51 = vpop.f32.mrb[9].mxu0  ;;  %v3806_v52 = vpop.f32.mrb[9].mxu1  ;;  %v4167_v44 = vld [vmem:[%s5499_s0 + $0x288] sm:$0xff]  }
  0xed   :  { %v338_v55 = vpop.f32.mrb[10].mxu0  ;;  %v984_v56 = vpop.f32.mrb[10].mxu1 }
  0xee   :  { %v584_v57 = vadd.f32 %v4579_v61, %v528_v49  ;;  %v1218_v58 = vadd.f32 %v4579_v61, %v1168_v50  ;;  %v529_v59 = vmul.f32 %v4570_v60, %v338_v55  ;;  %v1169_v62 = vmul.f32 %v4570_v60, %v984_v56  ;;  %v3705_v63 = vpop.f32.mrb[11].mxu0  ;;  %v3807_v1 = vpop.f32.mrb[11].mxu1 }
  0xf0   :  { %v634_v2 = vmax.f32 %v584_v57, 0.0  ;;  %v1268_v3 = vmax.f32 %v1218_v58, 0.0  ;;  %v585_v4 = vadd.f32 %v4579_v61, %v529_v59  ;;  %v1219_v5 = vadd.f32 %v4579_v61, %v1169_v62  ;;  %3915 = vmatmul.mubr.msk.bf16.gmra.mrb[116].mxu0 %vm202_vm3, %v4162_v53  ;;  %4017 = vmatmul.mubr.msk.bf16.gmra.mrb[116].mxu1 %vm202_vm3, %v4163_v54 }
  0xf1   :  { %3918 = vmatprep.mubr.msk.bf16.mxu0 %vm4210_vm2, %v4208_v0  ;;  %4020 = vmatprep.mubr.msk.bf16.mxu1 %vm4210_vm2, %v4208_v0 }
  0xf2   :  { %v4649_v6 = vmax.f32 %v634_v2, %v1268_v3  ;;  %v635_v7 = vmax.f32 %v585_v4, 0.0  ;;  %v1269_v8 = vmax.f32 %v1219_v5, 0.0 }
  0xf3   :  { %v343_v9 = vpop.f32.mrb[12].mxu0  ;;  %v989_v10 = vpop.f32.mrb[12].mxu1 }
  0xf4   :  { %v4651_v11 = vmax.f32 %v635_v7, %v1269_v8  ;;  %v530_v12 = vmul.f32 %v4570_v60, %v343_v9  ;;  %v1170_v13 = vmul.f32 %v4570_v60, %v989_v10  ;;  %v3708_v14 = vpop.f32.mrb[13].mxu0  ;;  %v3810_v15 = vpop.f32.mrb[13].mxu1  ;;  %v4168_v8 = vld [vmem:[%s5499_s0 + $0x1c8] sm:$0xff]   ;;  %v4169_v9 = vld [vmem:[%s5499_s0 + $0x290] sm:$0xff]  }
  0xf5   :  { %v346_v18 = vpop.f32.mrb[14].mxu0  ;;  %v992_v20 = vpop.f32.mrb[14].mxu1 }
  0xf6   :  { %v586_v21 = vadd.f32 %v4579_v61, %v530_v12  ;;  %v1220_v22 = vadd.f32 %v4579_v61, %v1170_v13  ;;  %v531_v23 = vmul.f32 %v4570_v60, %v346_v18  ;;  %v1171_v25 = vmul.f32 %v4570_v60, %v992_v20  ;;  %v3709_v26 = vpop.f32.mrb[15].mxu0  ;;  %v3811_v27 = vpop.f32.mrb[15].mxu1 }
  0xf8   :  { %v636_v28 = vmax.f32 %v586_v21, 0.0  ;;  %v1270_v29 = vmax.f32 %v1220_v22, 0.0  ;;  %v587_v30 = vadd.f32 %v4579_v61, %v531_v23  ;;  %v1221_v31 = vadd.f32 %v4579_v61, %v1171_v25  ;;  %3919 = vmatmul.mubr.msk.bf16.gmra.mrb[120].mxu0 %vm202_vm3, %v4164_v16  ;;  %4021 = vmatmul.mubr.msk.bf16.gmra.mrb[120].mxu1 %vm202_vm3, %v4165_v17 }
  0xf9   :  { %3922 = vmatprep.mubr.msk.bf16.mxu0 %vm4210_vm2, %v4208_v0  ;;  %4024 = vmatprep.mubr.msk.bf16.mxu1 %vm4210_vm2, %v4208_v0 }
  0xfa   :  { %v4673_v32 = vmax.f32 %v636_v28, %v1270_v29  ;;  %v637_v33 = vmax.f32 %v587_v30, 0.0  ;;  %v1271_v34 = vmax.f32 %v1221_v31, 0.0 }
  0xfb   :  { %v351_v35 = vpop.f32.mrb[16].mxu0  ;;  %v997_v36 = vpop.f32.mrb[16].mxu1 }
  0xfc   :  { %v4675_v37 = vmax.f32 %v637_v33, %v1271_v34  ;;  %v532_v38 = vmul.f32 %v4570_v60, %v351_v35  ;;  %v1172_v39 = vmul.f32 %v4570_v60, %v997_v36  ;;  %v3712_v40 = vpop.f32.mrb[17].mxu0  ;;  %v3814_v41 = vpop.f32.mrb[17].mxu1  ;;  %v4170_v36 = vld [vmem:[%s5499_s0 + $0x1d0] sm:$0xff]  }
  0xfd   :  { %v354_v45 = vpop.f32.mrb[18].mxu0  ;;  %v1000_v46 = vpop.f32.mrb[18].mxu1 }
  0xfe   :  { %v588_v47 = vadd.f32 %v4579_v61, %v532_v38  ;;  %v1222_v49 = vadd.f32 %v4579_v61, %v1172_v39  ;;  %v533_v50 = vmul.f32 %v4570_v60, %v354_v45  ;;  %v1173_v51 = vmul.f32 %v4570_v60, %v1000_v46  ;;  %v3713_v52 = vpop.f32.mrb[19].mxu0  ;;  %v3815_v53 = vpop.f32.mrb[19].mxu1  ;;  %v4171_v38 = vld [vmem:[%s5499_s0 + $0x298] sm:$0xff]  }
 0x100   :  { %v638_v54 = vmax.f32 %v588_v47, 0.0  ;;  %v1272_v55 = vmax.f32 %v1222_v49, 0.0  ;;  %v589_v56 = vadd.f32 %v4579_v61, %v533_v50  ;;  %v1223_v57 = vadd.f32 %v4579_v61, %v1173_v51  ;;  %3923 = vmatmul.mubr.msk.bf16.gmra.mrb[124].mxu0 %vm202_vm3, %v4166_v42  ;;  %4025 = vmatmul.mubr.msk.bf16.gmra.mrb[124].mxu1 %vm202_vm3, %v4167_v44 }
 0x101   :  { %3926 = vmatprep.mubr.msk.bf16.mxu0 %vm4210_vm2, %v4208_v0  ;;  %4028 = vmatprep.mubr.msk.bf16.mxu1 %vm4210_vm2, %v4208_v0 }
 0x102   :  { %v4697_v58 = vmax.f32 %v638_v54, %v1272_v55  ;;  %v639_v59 = vmax.f32 %v589_v56, 0.0  ;;  %v1273_v62 = vmax.f32 %v1223_v57, 0.0 }
 0x103   :  { %v359_v63 = vpop.f32.mrb[20].mxu0  ;;  %v1005_v1 = vpop.f32.mrb[20].mxu1 }
 0x104   :  { %v4699_v2 = vmax.f32 %v639_v59, %v1273_v62  ;;  %v534_v3 = vmul.f32 %v4570_v60, %v359_v63  ;;  %v1174_v4 = vmul.f32 %v4570_v60, %v1005_v1  ;;  %v3716_v5 = vpop.f32.mrb[21].mxu0  ;;  %v3818_v7 = vpop.f32.mrb[21].mxu1 }
 0x105   :  { %v362_v10 = vpop.f32.mrb[22].mxu0  ;;  %v1008_v12 = vpop.f32.mrb[22].mxu1  ;;  %v4173_v5 = vld [vmem:[%s5499_s0 + $0x2a0] sm:$0xff]  }
 0x106   :  { %v590_v13 = vadd.f32 %v4579_v61, %v534_v3  ;;  %v1224_v14 = vadd.f32 %v4579_v61, %v1174_v4  ;;  %v535_v15 = vmul.f32 %v4570_v60, %v362_v10  ;;  %v1175_v16 = vmul.f32 %v4570_v60, %v1008_v12  ;;  %v3717_v17 = vpop.f32.mrb[23].mxu0  ;;  %v3819_v18 = vpop.f32.mrb[23].mxu1  ;;  %v4172_v4 = vld [vmem:[%s5499_s0 + $0x1d8] sm:$0xff]  }
 0x108   :  { %v640_v20 = vmax.f32 %v590_v13, 0.0  ;;  %v1274_v21 = vmax.f32 %v1224_v14, 0.0  ;;  %v591_v22 = vadd.f32 %v4579_v61, %v535_v15  ;;  %v1225_v23 = vadd.f32 %v4579_v61, %v1175_v16  ;;  %3927 = vmatmul.mubr.msk.bf16.gmra.mrb[128].mxu0 %vm202_vm3, %v4168_v8  ;;  %4029 = vmatmul.mubr.msk.bf16.gmra.mrb[128].mxu1 %vm202_vm3, %v4169_v9 }
 0x109   :  { %3930 = vmatprep.mubr.msk.bf16.mxu0 %vm4210_vm2, %v4208_v0  ;;  %4032 = vmatprep.mubr.msk.bf16.mxu1 %vm4210_vm2, %v4208_v0 }
 0x10a   :  { %v4721_v25 = vmax.f32 %v640_v20, %v1274_v21  ;;  %v641_v26 = vmax.f32 %v591_v22, 0.0  ;;  %v1275_v27 = vmax.f32 %v1225_v23, 0.0 }
 0x10b   :  { %v367_v28 = vpop.f32.mrb[24].mxu0  ;;  %v1013_v29 = vpop.f32.mrb[24].mxu1 }
 0x10c   :  { %v4723_v30 = vmax.f32 %v641_v26, %v1275_v27  ;;  %v536_v31 = vmul.f32 %v4570_v60, %v367_v28  ;;  %v1176_v33 = vmul.f32 %v4570_v60, %v1013_v29  ;;  %v3720_v34 = vpop.f32.mrb[25].mxu0  ;;  %v3822_v35 = vpop.f32.mrb[25].mxu1 }
 0x10d   :  { %v370_v39 = vpop.f32.mrb[26].mxu0  ;;  %v1016_v40 = vpop.f32.mrb[26].mxu1  ;;  %v4174_v35 = vld [vmem:[%s5499_s0 + $0x1e0] sm:$0xff]  }
 0x10e   :  { %v592_v41 = vadd.f32 %v4579_v61, %v536_v31  ;;  %v1226_v42 = vadd.f32 %v4579_v61, %v1176_v33  ;;  %v537_v44 = vmul.f32 %v4570_v60, %v370_v39  ;;  %v1177_v45 = vmul.f32 %v4570_v60, %v1016_v40  ;;  %v3721_v46 = vpop.f32.mrb[27].mxu0  ;;  %v3823_v47 = vpop.f32.mrb[27].mxu1 }
 0x110   :  { %v642_v49 = vmax.f32 %v592_v41, 0.0  ;;  %v1276_v50 = vmax.f32 %v1226_v42, 0.0  ;;  %v593_v51 = vadd.f32 %v4579_v61, %v537_v44  ;;  %v1227_v52 = vadd.f32 %v4579_v61, %v1177_v45  ;;  %3931 = vmatmul.mubr.msk.bf16.gmra.mrb[132].mxu0 %vm202_vm3, %v4170_v36  ;;  %4033 = vmatmul.mubr.msk.bf16.gmra.mrb[132].mxu1 %vm202_vm3, %v4171_v38  ;;  %v4175_v36 = vld [vmem:[%s5499_s0 + $0x2a8] sm:$0xff]  }
 0x111   :  { %3934 = vmatprep.mubr.msk.bf16.mxu0 %vm4210_vm2, %v4208_v0  ;;  %4036 = vmatprep.mubr.msk.bf16.mxu1 %vm4210_vm2, %v4208_v0 }
 0x112   :  { %v4745_v53 = vmax.f32 %v642_v49, %v1276_v50  ;;  %v643_v54 = vmax.f32 %v593_v51, 0.0  ;;  %v1277_v55 = vmax.f32 %v1227_v52, 0.0 }
 0x113   :  { %v375_v56 = vpop.f32.mrb[28].mxu0  ;;  %v1021_v57 = vpop.f32.mrb[28].mxu1 }
 0x114   :  { %v4747_v59 = vmax.f32 %v643_v54, %v1277_v55  ;;  %v538_v62 = vmul.f32 %v4570_v60, %v375_v56  ;;  %v1178_v63 = vmul.f32 %v4570_v60, %v1021_v57  ;;  %v3724_v1 = vpop.f32.mrb[29].mxu0  ;;  %v3826_v3 = vpop.f32.mrb[29].mxu1 }
 0x115   :  { %v378_v7 = vpop.f32.mrb[30].mxu0  ;;  %v1024_v8 = vpop.f32.mrb[30].mxu1 }
 0x116   :  { %v594_v9 = vadd.f32 %v4579_v61, %v538_v62  ;;  %v1228_v10 = vadd.f32 %v4579_v61, %v1178_v63  ;;  %v539_v12 = vmul.f32 %v4570_v60, %v378_v7  ;;  %v1179_v13 = vmul.f32 %v4570_v60, %v1024_v8  ;;  %v3725_v14 = vpop.f32.mrb[31].mxu0  ;;  %v3827_v15 = vpop.f32.mrb[31].mxu1  ;;  %v4177_v7 = vld [vmem:[%s5499_s0 + $0x2b0] sm:$0xff]  }
 0x118   :  { %v644_v16 = vmax.f32 %v594_v9, 0.0  ;;  %v1278_v17 = vmax.f32 %v1228_v10, 0.0  ;;  %v595_v18 = vadd.f32 %v4579_v61, %v539_v12  ;;  %v1229_v20 = vadd.f32 %v4579_v61, %v1179_v13  ;;  %3935 = vmatmul.mubr.msk.bf16.gmra.mrb[136].mxu0 %vm202_vm3, %v4172_v4  ;;  %4037 = vmatmul.mubr.msk.bf16.gmra.mrb[136].mxu1 %vm202_vm3, %v4173_v5  ;;  %v4176_v5 = vld [vmem:[%s5499_s0 + $0x1e8] sm:$0xff]  }
 0x119   :  { %3938 = vmatprep.mubr.msk.bf16.mxu0 %vm4210_vm2, %v4208_v0  ;;  %4040 = vmatprep.mubr.msk.bf16.mxu1 %vm4210_vm2, %v4208_v0 }
 0x11a   :  { %v4769_v21 = vmax.f32 %v644_v16, %v1278_v17  ;;  %v645_v22 = vmax.f32 %v595_v18, 0.0  ;;  %v1279_v23 = vmax.f32 %v1229_v20, 0.0 }
 0x11b   :  { %v383_v26 = vpop.f32.mrb[32].mxu0  ;;  %v1029_v27 = vpop.f32.mrb[32].mxu1 }
 0x11c   :  { %v4771_v28 = vmax.f32 %v645_v22, %v1279_v23  ;;  %v540_v29 = vmul.f32 %v4570_v60, %v383_v26  ;;  %v1180_v31 = vmul.f32 %v4570_v60, %v1029_v27  ;;  %v3728_v33 = vpop.f32.mrb[33].mxu0  ;;  %v3830_v34 = vpop.f32.mrb[33].mxu1 }
 0x11d   :  { %v386_v38 = vpop.f32.mrb[34].mxu0  ;;  %v1032_v39 = vpop.f32.mrb[34].mxu1 }
 0x11e   :  { %v596_v40 = vadd.f32 %v4579_v61, %v540_v29  ;;  %v1230_v41 = vadd.f32 %v4579_v61, %v1180_v31  ;;  %v541_v42 = vmul.f32 %v4570_v60, %v386_v38  ;;  %v1181_v44 = vmul.f32 %v4570_v60, %v1032_v39  ;;  %v3729_v45 = vpop.f32.mrb[35].mxu0  ;;  %v3831_v46 = vpop.f32.mrb[35].mxu1  ;;  %v4178_v39 = vld [vmem:[%s5499_s0 + $0x1f0] sm:$0xff]  }
 0x120   :  { %v646_v47 = vmax.f32 %v596_v40, 0.0  ;;  %v1280_v49 = vmax.f32 %v1230_v41, 0.0  ;;  %v597_v50 = vadd.f32 %v4579_v61, %v541_v42  ;;  %v1231_v51 = vadd.f32 %v4579_v61, %v1181_v44  ;;  %3939 = vmatmul.mubr.msk.bf16.gmra.mrb[140].mxu0 %vm202_vm3, %v4174_v35  ;;  %4041 = vmatmul.mubr.msk.bf16.gmra.mrb[140].mxu1 %vm202_vm3, %v4175_v36  ;;  %v4179_v40 = vld [vmem:[%s5499_s0 + $0x2b8] sm:$0xff]  }
 0x121   :  { %3942 = vmatprep.mubr.msk.bf16.mxu0 %vm4210_vm2, %v4208_v0  ;;  %4044 = vmatprep.mubr.msk.bf16.mxu1 %vm4210_vm2, %v4208_v0 }
 0x122   :  { %v4793_v52 = vmax.f32 %v646_v47, %v1280_v49  ;;  %v647_v54 = vmax.f32 %v597_v50, 0.0  ;;  %v1281_v55 = vmax.f32 %v1231_v51, 0.0 }
 0x123   :  { %v391_v56 = vpop.f32.mrb[36].mxu0  ;;  %v1037_v57 = vpop.f32.mrb[36].mxu1 }
 0x124   :  { %v4795_v62 = vmax.f32 %v647_v54, %v1281_v55  ;;  %v542_v63 = vmul.f32 %v4570_v60, %v391_v56  ;;  %v1182_v1 = vmul.f32 %v4570_v60, %v1037_v57  ;;  %v3732_v3 = vpop.f32.mrb[37].mxu0  ;;  %v3834_v4 = vpop.f32.mrb[37].mxu1 }
 0x125   :  { %v394_v8 = vpop.f32.mrb[38].mxu0  ;;  %v1040_v9 = vpop.f32.mrb[38].mxu1 }
 0x126   :  { %v598_v10 = vadd.f32 %v4579_v61, %v542_v63  ;;  %v1232_v12 = vadd.f32 %v4579_v61, %v1182_v1  ;;  %v543_v13 = vmul.f32 %v4570_v60, %v394_v8  ;;  %v1183_v14 = vmul.f32 %v4570_v60, %v1040_v9  ;;  %v3733_v15 = vpop.f32.mrb[39].mxu0  ;;  %v3835_v16 = vpop.f32.mrb[39].mxu1 }
 0x128   :  { %v648_v17 = vmax.f32 %v598_v10, 0.0  ;;  %v1282_v18 = vmax.f32 %v1232_v12, 0.0  ;;  %v599_v20 = vadd.f32 %v4579_v61, %v543_v13  ;;  %v1233_v22 = vadd.f32 %v4579_v61, %v1183_v14  ;;  %3943 = vmatmul.mubr.msk.bf16.gmra.mrb[144].mxu0 %vm202_vm3, %v4176_v5  ;;  %4045 = vmatmul.mubr.msk.bf16.gmra.mrb[144].mxu1 %vm202_vm3, %v4177_v7  ;;  %v4180_v12 = vld [vmem:[%s5499_s0 + $0x1f8] sm:$0xff]   ;;  %v4181_v13 = vld [vmem:[%s5499_s0 + $0x2c0] sm:$0xff]  }
 0x129   :  { %3946 = vmatprep.mubr.msk.bf16.mxu0 %vm4210_vm2, %v4208_v0  ;;  %4048 = vmatprep.mubr.msk.bf16.mxu1 %vm4210_vm2, %v4208_v0 }
 0x12a   :  { %v4817_v23 = vmax.f32 %v648_v17, %v1282_v18  ;;  %v649_v26 = vmax.f32 %v599_v20, 0.0  ;;  %v1283_v27 = vmax.f32 %v1233_v22, 0.0 }
 0x12b   :  { %v399_v29 = vpop.f32.mrb[40].mxu0  ;;  %v1045_v31 = vpop.f32.mrb[40].mxu1 }
 0x12c   :  { %v4819_v33 = vmax.f32 %v649_v26, %v1283_v27  ;;  %v544_v34 = vmul.f32 %v4570_v60, %v399_v29  ;;  %v1184_v35 = vmul.f32 %v4570_v60, %v1045_v31  ;;  %v3736_v36 = vpop.f32.mrb[41].mxu0  ;;  %v3838_v38 = vpop.f32.mrb[41].mxu1 }
 0x12d   :  { %v402_v41 = vpop.f32.mrb[42].mxu0  ;;  %v1048_v42 = vpop.f32.mrb[42].mxu1 }
 0x12e   :  { %v600_v44 = vadd.f32 %v4579_v61, %v544_v34  ;;  %v1234_v45 = vadd.f32 %v4579_v61, %v1184_v35  ;;  %v545_v46 = vmul.f32 %v4570_v60, %v402_v41  ;;  %v1185_v47 = vmul.f32 %v4570_v60, %v1048_v42  ;;  %v3737_v49 = vpop.f32.mrb[43].mxu0  ;;  %v3839_v50 = vpop.f32.mrb[43].mxu1 }
 0x12f   :  { %v4183_v49 = vld [vmem:[%s5499_s0 + $0x2c8] sm:$0xff]  }
 0x130   :  { %v650_v51 = vmax.f32 %v600_v44, 0.0  ;;  %v1284_v54 = vmax.f32 %v1234_v45, 0.0  ;;  %v601_v55 = vadd.f32 %v4579_v61, %v545_v46  ;;  %v1235_v56 = vadd.f32 %v4579_v61, %v1185_v47  ;;  %3947 = vmatmul.mubr.msk.bf16.gmra.mrb[148].mxu0 %vm202_vm3, %v4178_v39  ;;  %4049 = vmatmul.mubr.msk.bf16.gmra.mrb[148].mxu1 %vm202_vm3, %v4179_v40  ;;  %v4182_v47 = vld [vmem:[%s5499_s0 + $0x200] sm:$0xff]  }
 0x131   :  { %3950 = vmatprep.mubr.msk.bf16.mxu0 %vm4210_vm2, %v4208_v0  ;;  %4052 = vmatprep.mubr.msk.bf16.mxu1 %vm4210_vm2, %v4208_v0 }
 0x132   :  { %v4841_v57 = vmax.f32 %v650_v51, %v1284_v54  ;;  %v651_v63 = vmax.f32 %v601_v55, 0.0  ;;  %v1285_v1 = vmax.f32 %v1235_v56, 0.0 }
 0x133   :  { %v407_v3 = vpop.f32.mrb[44].mxu0  ;;  %v1053_v4 = vpop.f32.mrb[44].mxu1 }
 0x134   :  { %v4843_v5 = vmax.f32 %v651_v63, %v1285_v1  ;;  %v546_v7 = vmul.f32 %v4570_v60, %v407_v3  ;;  %v1186_v8 = vmul.f32 %v4570_v60, %v1053_v4  ;;  %v3740_v9 = vpop.f32.mrb[45].mxu0  ;;  %v3842_v10 = vpop.f32.mrb[45].mxu1 }
 0x135   :  { %v410_v14 = vpop.f32.mrb[46].mxu0  ;;  %v1056_v15 = vpop.f32.mrb[46].mxu1 }
 0x136   :  { %v602_v16 = vadd.f32 %v4579_v61, %v546_v7  ;;  %v1236_v17 = vadd.f32 %v4579_v61, %v1186_v8  ;;  %v547_v18 = vmul.f32 %v4570_v60, %v410_v14  ;;  %v1187_v20 = vmul.f32 %v4570_v60, %v1056_v15  ;;  %v3741_v22 = vpop.f32.mrb[47].mxu0  ;;  %v3843_v26 = vpop.f32.mrb[47].mxu1 }
 0x137   :  { %v4184_v26 = vld [vmem:[%s5499_s0 + $0x208] sm:$0xff]  }
 0x138   :  { %v652_v27 = vmax.f32 %v602_v16, 0.0  ;;  %v1286_v29 = vmax.f32 %v1236_v17, 0.0  ;;  %v603_v31 = vadd.f32 %v4579_v61, %v547_v18  ;;  %v1237_v34 = vadd.f32 %v4579_v61, %v1187_v20  ;;  %3951 = vmatmul.mubr.msk.bf16.gmra.mrb[152].mxu0 %vm202_vm3, %v4180_v12  ;;  %4053 = vmatmul.mubr.msk.bf16.gmra.mrb[152].mxu1 %vm202_vm3, %v4181_v13 }
 0x139   :  { %3954 = vmatprep.mubr.msk.bf16.mxu0 %vm4210_vm2, %v4208_v0  ;;  %4056 = vmatprep.mubr.msk.bf16.mxu1 %vm4210_vm2, %v4208_v0 }
 0x13a   :  { %v4865_v35 = vmax.f32 %v652_v27, %v1286_v29  ;;  %v653_v36 = vmax.f32 %v603_v31, 0.0  ;;  %v1287_v38 = vmax.f32 %v1237_v34, 0.0  ;;  %v4185_v27 = vld [vmem:[%s5499_s0 + $0x2d0] sm:$0xff]  }
 0x13b   :  { %v415_v39 = vpop.f32.mrb[48].mxu0  ;;  %v1061_v40 = vpop.f32.mrb[48].mxu1 }
 0x13c   :  { %v4867_v41 = vmax.f32 %v653_v36, %v1287_v38  ;;  %v548_v42 = vmul.f32 %v4570_v60, %v415_v39  ;;  %v1188_v44 = vmul.f32 %v4570_v60, %v1061_v40  ;;  %v3744_v45 = vpop.f32.mrb[49].mxu0  ;;  %v3846_v46 = vpop.f32.mrb[49].mxu1 }
 0x13d   :  { %v418_v50 = vpop.f32.mrb[50].mxu0  ;;  %v1064_v51 = vpop.f32.mrb[50].mxu1 }
 0x13e   :  { %v604_v54 = vadd.f32 %v4579_v61, %v548_v42  ;;  %v1238_v55 = vadd.f32 %v4579_v61, %v1188_v44  ;;  %v549_v56 = vmul.f32 %v4570_v60, %v418_v50  ;;  %v1189_v63 = vmul.f32 %v4570_v60, %v1064_v51  ;;  %v3745_v1 = vpop.f32.mrb[51].mxu0  ;;  %v3847_v3 = vpop.f32.mrb[51].mxu1 }
 0x140   :  { %v654_v4 = vmax.f32 %v604_v54, 0.0  ;;  %v1288_v7 = vmax.f32 %v1238_v55, 0.0  ;;  %v605_v8 = vadd.f32 %v4579_v61, %v549_v56  ;;  %v1239_v9 = vadd.f32 %v4579_v61, %v1189_v63  ;;  %3955 = vmatmul.mubr.msk.bf16.gmra.mrb[156].mxu0 %vm202_vm3, %v4182_v47  ;;  %4057 = vmatmul.mubr.msk.bf16.gmra.mrb[156].mxu1 %vm202_vm3, %v4183_v49 }
 0x141   :  { %3958 = vmatprep.mubr.msk.bf16.mxu0 %vm4210_vm2, %v4208_v0  ;;  %4060 = vmatprep.mubr.msk.bf16.mxu1 %vm4210_vm2, %v4208_v0 }
 0x142   :  { %v4889_v10 = vmax.f32 %v654_v4, %v1288_v7  ;;  %v655_v12 = vmax.f32 %v605_v8, 0.0  ;;  %v1289_v13 = vmax.f32 %v1239_v9, 0.0  ;;  %v4186_v7 = vld [vmem:[%s5499_s0 + $0x210] sm:$0xff]   ;;  %v4187_v8 = vld [vmem:[%s5499_s0 + $0x2d8] sm:$0xff]  }
 0x143   :  { %v423_v14 = vpop.f32.mrb[52].mxu0  ;;  %v1069_v15 = vpop.f32.mrb[52].mxu1 }
 0x144   :  { %v4891_v16 = vmax.f32 %v655_v12, %v1289_v13  ;;  %v550_v17 = vmul.f32 %v4570_v60, %v423_v14  ;;  %v1190_v18 = vmul.f32 %v4570_v60, %v1069_v15  ;;  %v3748_v20 = vpop.f32.mrb[53].mxu0  ;;  %v3850_v22 = vpop.f32.mrb[53].mxu1 }
 0x145   :  { %v426_v29 = vpop.f32.mrb[54].mxu0  ;;  %v1072_v31 = vpop.f32.mrb[54].mxu1 }
 0x146   :  { %v606_v34 = vadd.f32 %v4579_v61, %v550_v17  ;;  %v1240_v36 = vadd.f32 %v4579_v61, %v1190_v18  ;;  %v551_v38 = vmul.f32 %v4570_v60, %v426_v29  ;;  %v1191_v39 = vmul.f32 %v4570_v60, %v1072_v31  ;;  %v3749_v40 = vpop.f32.mrb[55].mxu0  ;;  %v3851_v42 = vpop.f32.mrb[55].mxu1 }
 0x148   :  { %v656_v44 = vmax.f32 %v606_v34, 0.0  ;;  %v1290_v45 = vmax.f32 %v1240_v36, 0.0  ;;  %v607_v46 = vadd.f32 %v4579_v61, %v551_v38  ;;  %v1241_v47 = vadd.f32 %v4579_v61, %v1191_v39  ;;  %3959 = vmatmul.mubr.msk.bf16.gmra.mrb[160].mxu0 %vm202_vm3, %v4184_v26  ;;  %4061 = vmatmul.mubr.msk.bf16.gmra.mrb[160].mxu1 %vm202_vm3, %v4185_v27 }
 0x149   :  { %3962 = vmatprep.mubr.msk.bf16.mxu0 %vm4210_vm2, %v4208_v0  ;;  %4064 = vmatprep.mubr.msk.bf16.mxu1 %vm4210_vm2, %v4208_v0 }
 0x14a   :  { %v4913_v49 = vmax.f32 %v656_v44, %v1290_v45  ;;  %v657_v50 = vmax.f32 %v607_v46, 0.0  ;;  %v1291_v51 = vmax.f32 %v1241_v47, 0.0  ;;  %v4188_v47 = vld [vmem:[%s5499_s0 + $0x218] sm:$0xff]  }
 0x14b   :  { %v431_v54 = vpop.f32.mrb[56].mxu0  ;;  %v1077_v55 = vpop.f32.mrb[56].mxu1 }
 0x14c   :  { %v4915_v56 = vmax.f32 %v657_v50, %v1291_v51  ;;  %v552_v63 = vmul.f32 %v4570_v60, %v431_v54  ;;  %v1192_v1 = vmul.f32 %v4570_v60, %v1077_v55  ;;  %v3752_v3 = vpop.f32.mrb[57].mxu0  ;;  %v3854_v4 = vpop.f32.mrb[57].mxu1  ;;  %v4189_v50 = vld [vmem:[%s5499_s0 + $0x2e0] sm:$0xff]  }
 0x14d   :  { %v434_v9 = vpop.f32.mrb[58].mxu0  ;;  %v1080_v12 = vpop.f32.mrb[58].mxu1 }
 0x14e   :  { %v608_v13 = vadd.f32 %v4579_v61, %v552_v63  ;;  %v1242_v14 = vadd.f32 %v4579_v61, %v1192_v1  ;;  %v553_v15 = vmul.f32 %v4570_v60, %v434_v9  ;;  %v1193_v17 = vmul.f32 %v4570_v60, %v1080_v12  ;;  %v3753_v18 = vpop.f32.mrb[59].mxu0  ;;  %v3855_v20 = vpop.f32.mrb[59].mxu1 }
 0x150   :  { %v658_v22 = vmax.f32 %v608_v13, 0.0  ;;  %v1292_v26 = vmax.f32 %v1242_v14, 0.0  ;;  %v609_v27 = vadd.f32 %v4579_v61, %v553_v15  ;;  %v1243_v29 = vadd.f32 %v4579_v61, %v1193_v17  ;;  %3963 = vmatmul.mubr.msk.bf16.gmra.mrb[164].mxu0 %vm202_vm3, %v4186_v7  ;;  %4065 = vmatmul.mubr.msk.bf16.gmra.mrb[164].mxu1 %vm202_vm3, %v4187_v8 }
 0x151   :  { %3966 = vmatprep.mubr.msk.bf16.mxu0 %vm4210_vm2, %v4208_v0  ;;  %4068 = vmatprep.mubr.msk.bf16.mxu1 %vm4210_vm2, %v4208_v0 }
 0x152   :  { %v4937_v31 = vmax.f32 %v658_v22, %v1292_v26  ;;  %v659_v34 = vmax.f32 %v609_v27, 0.0  ;;  %v1293_v36 = vmax.f32 %v1243_v29, 0.0 }
 0x153   :  { %v439_v38 = vpop.f32.mrb[60].mxu0  ;;  %v1085_v39 = vpop.f32.mrb[60].mxu1 }
 0x154   :  { %v4939_v40 = vmax.f32 %v659_v34, %v1293_v36  ;;  %v554_v42 = vmul.f32 %v4570_v60, %v439_v38  ;;  %v1194_v44 = vmul.f32 %v4570_v60, %v1085_v39  ;;  %v3756_v45 = vpop.f32.mrb[61].mxu0  ;;  %v3858_v46 = vpop.f32.mrb[61].mxu1  ;;  %v4190_v36 = vld [vmem:[%s5499_s0 + $0x220] sm:$0xff]   ;;  %v4191_v38 = vld [vmem:[%s5499_s0 + $0x2e8] sm:$0xff]  }
 0x155   :  { %v442_v51 = vpop.f32.mrb[62].mxu0  ;;  %v1088_v54 = vpop.f32.mrb[62].mxu1 }
 0x156   :  { %v610_v55 = vadd.f32 %v4579_v61, %v554_v42  ;;  %v1244_v63 = vadd.f32 %v4579_v61, %v1194_v44  ;;  %v555_v1 = vmul.f32 %v4570_v60, %v442_v51  ;;  %v1195_v3 = vmul.f32 %v4570_v60, %v1088_v54  ;;  %v3757_v4 = vpop.f32.mrb[63].mxu0  ;;  %v3859_v7 = vpop.f32.mrb[63].mxu1 }
 0x158   :  { %v660_v8 = vmax.f32 %v610_v55, 0.0  ;;  %v1294_v9 = vmax.f32 %v1244_v63, 0.0  ;;  %v611_v12 = vadd.f32 %v4579_v61, %v555_v1  ;;  %v1245_v13 = vadd.f32 %v4579_v61, %v1195_v3  ;;  %3967 = vmatmul.mubr.msk.bf16.gmra.mrb[168].mxu0 %vm202_vm3, %v4188_v47  ;;  %4069 = vmatmul.mubr.msk.bf16.gmra.mrb[168].mxu1 %vm202_vm3, %v4189_v50 }
 0x159   :  { %3970 = vmatprep.mubr.msk.bf16.mxu0 %vm4210_vm2, %v4208_v0  ;;  %4072 = vmatprep.mubr.msk.bf16.mxu1 %vm4210_vm2, %v4208_v0 }
 0x15a   :  { %v4961_v14 = vmax.f32 %v660_v8, %v1294_v9  ;;  %v661_v15 = vmax.f32 %v611_v12, 0.0  ;;  %v1295_v17 = vmax.f32 %v1245_v13, 0.0 }
 0x15b   :  { %v447_v18 = vpop.f32.mrb[64].mxu0  ;;  %v1093_v20 = vpop.f32.mrb[64].mxu1 }
 0x15c   :  { %v4963_v22 = vmax.f32 %v661_v15, %v1295_v17  ;;  %v556_v26 = vmul.f32 %v4570_v60, %v447_v18  ;;  %v1196_v27 = vmul.f32 %v4570_v60, %v1093_v20  ;;  %v3760_v29 = vpop.f32.mrb[65].mxu0  ;;  %v3862_v34 = vpop.f32.mrb[65].mxu1  ;;  %v4192_v20 = vld [vmem:[%s5499_s0 + $0x228] sm:$0xff]  }
 0x15d   :  { %v450_v39 = vpop.f32.mrb[66].mxu0  ;;  %v1096_v42 = vpop.f32.mrb[66].mxu1 }
 0x15e   :  { %v612_v44 = vadd.f32 %v4579_v61, %v556_v26  ;;  %v1246_v45 = vadd.f32 %v4579_v61, %v1196_v27  ;;  %v557_v46 = vmul.f32 %v4570_v60, %v450_v39  ;;  %v1197_v47 = vmul.f32 %v4570_v60, %v1096_v42  ;;  %v3761_v50 = vpop.f32.mrb[67].mxu0  ;;  %v3863_v51 = vpop.f32.mrb[67].mxu1  ;;  %v4193_v26 = vld [vmem:[%s5499_s0 + $0x2f0] sm:$0xff]  }
 0x160   :  { %v662_v54 = vmax.f32 %v612_v44, 0.0  ;;  %v1296_v55 = vmax.f32 %v1246_v45, 0.0  ;;  %v613_v63 = vadd.f32 %v4579_v61, %v557_v46  ;;  %v1247_v1 = vadd.f32 %v4579_v61, %v1197_v47  ;;  %3971 = vmatmul.mubr.msk.bf16.gmra.mrb[172].mxu0 %vm202_vm3, %v4190_v36  ;;  %4073 = vmatmul.mubr.msk.bf16.gmra.mrb[172].mxu1 %vm202_vm3, %v4191_v38 }
 0x161   :  { %3974 = vmatprep.mubr.msk.bf16.mxu0 %vm4210_vm2, %v4208_v0  ;;  %4076 = vmatprep.mubr.msk.bf16.mxu1 %vm4210_vm2, %v4208_v0 }
 0x162   :  { %v4985_v3 = vmax.f32 %v662_v54, %v1296_v55  ;;  %v663_v4 = vmax.f32 %v613_v63, 0.0  ;;  %v1297_v7 = vmax.f32 %v1247_v1, 0.0 }
 0x163   :  { %v455_v8 = vpop.f32.mrb[68].mxu0  ;;  %v1101_v9 = vpop.f32.mrb[68].mxu1 }
 0x164   :  { %v4987_v12 = vmax.f32 %v663_v4, %v1297_v7  ;;  %v558_v13 = vmul.f32 %v4570_v60, %v455_v8  ;;  %v1198_v15 = vmul.f32 %v4570_v60, %v1101_v9  ;;  %v3764_v17 = vpop.f32.mrb[69].mxu0  ;;  %v3866_v18 = vpop.f32.mrb[69].mxu1 }
 0x165   :  { %v458_v27 = vpop.f32.mrb[70].mxu0  ;;  %v1104_v29 = vpop.f32.mrb[70].mxu1 }
 0x166   :  { %v614_v34 = vadd.f32 %v4579_v61, %v558_v13  ;;  %v1248_v36 = vadd.f32 %v4579_v61, %v1198_v15  ;;  %v559_v38 = vmul.f32 %v4570_v60, %v458_v27  ;;  %v1199_v39 = vmul.f32 %v4570_v60, %v1104_v29  ;;  %v3765_v42 = vpop.f32.mrb[71].mxu0  ;;  %v3867_v44 = vpop.f32.mrb[71].mxu1  ;;  %v4194_v13 = vld [vmem:[%s5499_s0 + $0x230] sm:$0xff]   ;;  %v4195_v15 = vld [vmem:[%s5499_s0 + $0x2f8] sm:$0xff]   ;;  %v5031_v27 = vld [vmem:[%s5500_s2] ss:$0 sm:$0xff] }
 0x168   :  { %v664_v45 = vmax.f32 %v614_v34, 0.0  ;;  %v1298_v46 = vmax.f32 %v1248_v36, 0.0  ;;  %v615_v47 = vadd.f32 %v4579_v61, %v559_v38  ;;  %v1249_v50 = vadd.f32 %v4579_v61, %v1199_v39  ;;  %3975 = vmatmul.mubr.msk.bf16.gmra.mrb[176].mxu0 %vm202_vm3, %v4192_v20  ;;  %4077 = vmatmul.mubr.msk.bf16.gmra.mrb[176].mxu1 %vm202_vm3, %v4193_v26  ;;  %v5024_v20 = vld [vmem:[%s5501_s3] ss:$0 sm:$0xff] }
 0x169   :  { %3978 = vmatprep.mubr.msk.bf16.mxu0 %vm4210_vm2, %v4208_v0  ;;  %4080 = vmatprep.mubr.msk.bf16.mxu1 %vm4210_vm2, %v4208_v0 }
 0x16a   :  { %v5009_v51 = vmax.f32 %v664_v45, %v1298_v46  ;;  %v665_v54 = vmax.f32 %v615_v47, 0.0  ;;  %v1299_v55 = vmax.f32 %v1249_v50, 0.0 }
 0x16b   :  { %v463_v63 = vpop.f32.mrb[72].mxu0  ;;  %v1109_v1 = vpop.f32.mrb[72].mxu1 }
 0x16c   :  { %v5011_v4 = vmax.f32 %v665_v54, %v1299_v55  ;;  %v560_v61 = vmul.f32 %v4570_v60, %v463_v63  ;;  %v1200_v7 = vmul.f32 %v4570_v60, %v1109_v1  ;;  %v3768_v8 = vpop.f32.mrb[73].mxu0  ;;  %v3870_v9 = vpop.f32.mrb[73].mxu1 }
 0x16d   :  { %v466_v17 = vpop.f32.mrb[74].mxu0  ;;  %v1112_v18 = vpop.f32.mrb[74].mxu1  ;;  %v4196_v9 = vld [vmem:[%s5499_s0 + $0x238] sm:$0xff]  }
 0x16e   :  { %v616_v26 = vadd.f32 %v5024_v20, %v560_v61  ;;  %v1250_v60 = vadd.f32 %v5024_v20, %v1200_v7  ;;  %v561_v29 = vmul.f32 %v5031_v27, %v466_v17  ;;  %v1201_v34 = vmul.f32 %v5031_v27, %v1112_v18  ;;  %v3769_v36 = vpop.f32.mrb[75].mxu0  ;;  %v3871_v38 = vpop.f32.mrb[75].mxu1 }
 0x170   :  { %v666_v39 = vmax.f32 %v616_v26, 0.0  ;;  %v1300_v42 = vmax.f32 %v1250_v60, 0.0  ;;  %v617_v44 = vadd.f32 %v5024_v20, %v561_v29  ;;  %v1251_v45 = vadd.f32 %v5024_v20, %v1201_v34  ;;  %3979 = vmatmul.mubr.msk.bf16.gmra.mrb[180].mxu0 %vm202_vm3, %v4194_v13  ;;  %4081 = vmatmul.mubr.msk.bf16.gmra.mrb[180].mxu1 %vm202_vm3, %v4195_v15  ;;  %v4197_v13 = vld [vmem:[%s5499_s0 + $0x300] sm:$0xff]  }
 0x171   :  { %3982 = vmatprep.mubr.msk.bf16.mxu0 %vm4210_vm2, %v4208_v0  ;;  %4084 = vmatprep.mubr.msk.bf16.mxu1 %vm4210_vm2, %v4208_v0 }
 0x172   :  { %v5043_v46 = vmax.f32 %v666_v39, %v1300_v42  ;;  %v667_v47 = vmax.f32 %v617_v44, 0.0  ;;  %v1301_v50 = vmax.f32 %v1251_v45, 0.0 }
 0x173   :  { %v471_v54 = vpop.f32.mrb[76].mxu0  ;;  %v1117_v55 = vpop.f32.mrb[76].mxu1 }
 0x174   :  { %v5045_v63 = vmax.f32 %v667_v47, %v1301_v50  ;;  %v562_v1 = vmul.f32 %v5031_v27, %v471_v54  ;;  %v1202_v61 = vmul.f32 %v5031_v27, %v1117_v55  ;;  %v3772_v7 = vpop.f32.mrb[77].mxu0  ;;  %v3874_v8 = vpop.f32.mrb[77].mxu1 }
 0x175   :  { %v474_v15 = vpop.f32.mrb[78].mxu0  ;;  %v1120_v17 = vpop.f32.mrb[78].mxu1 }
 0x176   :  { %v618_v18 = vadd.f32 %v5024_v20, %v562_v1  ;;  %v1252_v26 = vadd.f32 %v5024_v20, %v1202_v61  ;;  %v563_v60 = vmul.f32 %v5031_v27, %v474_v15  ;;  %v1203_v29 = vmul.f32 %v5031_v27, %v1120_v17  ;;  %v3773_v34 = vpop.f32.mrb[79].mxu0  ;;  %v3875_v36 = vpop.f32.mrb[79].mxu1  ;;  %v4199_v15 = vld [vmem:[%s5499_s0 + $0x308] sm:$0xff]  }
 0x178   :  { %v668_v38 = vmax.f32 %v618_v18, 0.0  ;;  %v1302_v39 = vmax.f32 %v1252_v26, 0.0  ;;  %v619_v42 = vadd.f32 %v5024_v20, %v563_v60  ;;  %v1253_v44 = vadd.f32 %v5024_v20, %v1203_v29  ;;  %3983 = vmatmul.mubr.msk.bf16.gmra.mrb[184].mxu0 %vm202_vm3, %v4196_v9  ;;  %4085 = vmatmul.mubr.msk.bf16.gmra.mrb[184].mxu1 %vm202_vm3, %v4197_v13  ;;  %v4198_v13 = vld [vmem:[%s5499_s0 + $0x240] sm:$0xff]  }
 0x179   :  { %3986 = vmatprep.mubr.msk.bf16.mxu0 %vm4210_vm2, %v4208_v0  ;;  %4088 = vmatprep.mubr.msk.bf16.mxu1 %vm4210_vm2, %v4208_v0 }
 0x17a   :  { %v5067_v45 = vmax.f32 %v668_v38, %v1302_v39  ;;  %v669_v47 = vmax.f32 %v619_v42, 0.0  ;;  %v1303_v50 = vmax.f32 %v1253_v44, 0.0 }
 0x17b   :  { %v479_v54 = vpop.f32.mrb[80].mxu0  ;;  %v1125_v55 = vpop.f32.mrb[80].mxu1 }
 0x17c   :  { %v5069_v1 = vmax.f32 %v669_v47, %v1303_v50  ;;  %v564_v61 = vmul.f32 %v5031_v27, %v479_v54  ;;  %v1204_v7 = vmul.f32 %v5031_v27, %v1125_v55  ;;  %v3776_v8 = vpop.f32.mrb[81].mxu0  ;;  %v3878_v9 = vpop.f32.mrb[81].mxu1 }
 0x17d   :  { %v482_v17 = vpop.f32.mrb[82].mxu0  ;;  %v1128_v18 = vpop.f32.mrb[82].mxu1 }
 0x17e   :  { %v620_v26 = vadd.f32 %v5024_v20, %v564_v61  ;;  %v1254_v60 = vadd.f32 %v5024_v20, %v1204_v7  ;;  %v565_v29 = vmul.f32 %v5031_v27, %v482_v17  ;;  %v1205_v34 = vmul.f32 %v5031_v27, %v1128_v18  ;;  %v3777_v36 = vpop.f32.mrb[83].mxu0  ;;  %v3879_v38 = vpop.f32.mrb[83].mxu1  ;;  %v4200_v18 = vld [vmem:[%s5499_s0 + $0x248] sm:$0xff]  }
 0x180   :  { %v670_v39 = vmax.f32 %v620_v26, 0.0  ;;  %v1304_v42 = vmax.f32 %v1254_v60, 0.0  ;;  %v621_v44 = vadd.f32 %v5024_v20, %v565_v29  ;;  %v1255_v47 = vadd.f32 %v5024_v20, %v1205_v34  ;;  %3987 = vmatmul.mubr.msk.bf16.gmra.mrb[188].mxu0 %vm202_vm3, %v4198_v13  ;;  %4089 = vmatmul.mubr.msk.bf16.gmra.mrb[188].mxu1 %vm202_vm3, %v4199_v15  ;;  %v4201_v26 = vld [vmem:[%s5499_s0 + $0x310] sm:$0xff]  }
 0x181   :  { %3990 = vmatprep.mubr.msk.bf16.mxu0 %vm4210_vm2, %v4208_v0  ;;  %4092 = vmatprep.mubr.msk.bf16.mxu1 %vm4210_vm2, %v4208_v0 }
 0x182   :  { %v5091_v50 = vmax.f32 %v670_v39, %v1304_v42  ;;  %v671_v54 = vmax.f32 %v621_v44, 0.0  ;;  %v1305_v55 = vmax.f32 %v1255_v47, 0.0 }
 0x183   :  { %v487_v61 = vpop.f32.mrb[84].mxu0  ;;  %v1133_v7 = vpop.f32.mrb[84].mxu1 }
 0x184   :  { %v5093_v8 = vmax.f32 %v671_v54, %v1305_v55  ;;  %v566_v9 = vmul.f32 %v5031_v27, %v487_v61  ;;  %v1206_v13 = vmul.f32 %v5031_v27, %v1133_v7  ;;  %v3780_v17 = vpop.f32.mrb[85].mxu0  ;;  %v3882_v15 = vpop.f32.mrb[85].mxu1 }
 0x185   :  { %v490_v60 = vpop.f32.mrb[86].mxu0  ;;  %v1136_v29 = vpop.f32.mrb[86].mxu1 }
 0x186   :  { %v622_v34 = vadd.f32 %v5024_v20, %v566_v9  ;;  %v1256_v36 = vadd.f32 %v5024_v20, %v1206_v13  ;;  %v567_v38 = vmul.f32 %v5031_v27, %v490_v60  ;;  %v1207_v39 = vmul.f32 %v5031_v27, %v1136_v29  ;;  %v3781_v42 = vpop.f32.mrb[87].mxu0  ;;  %v3883_v44 = vpop.f32.mrb[87].mxu1 }
 0x188   :  { %v672_v47 = vmax.f32 %v622_v34, 0.0  ;;  %v1306_v54 = vmax.f32 %v1256_v36, 0.0  ;;  %v623_v55 = vadd.f32 %v5024_v20, %v567_v38  ;;  %v1257_v61 = vadd.f32 %v5024_v20, %v1207_v39  ;;  %3991 = vmatmul.mubr.msk.bf16.gmra.mrb[192].mxu0 %vm202_vm3, %v4200_v18  ;;  %4093 = vmatmul.mubr.msk.bf16.gmra.mrb[192].mxu1 %vm202_vm3, %v4201_v26  ;;  %v4202_v36 = vld [vmem:[%s5499_s0 + $0x250] sm:$0xff]  }
 0x189   :  { %3994 = vmatprep.mubr.msk.bf16.mxu0 %vm4210_vm2, %v4208_v0  ;;  %4096 = vmatprep.mubr.msk.bf16.mxu1 %vm4210_vm2, %v4208_v0  ;;  %v4203_v0 = vld [vmem:[%s5499_s0 + $0x318] sm:$0xff]  }
 0x18a   :  { %v5115_v7 = vmax.f32 %v672_v47, %v1306_v54  ;;  %v673_v9 = vmax.f32 %v623_v55, 0.0  ;;  %v1307_v13 = vmax.f32 %v1257_v61, 0.0 }
 0x18b   :  { %v495_v17 = vpop.f32.mrb[88].mxu0  ;;  %v1141_v15 = vpop.f32.mrb[88].mxu1 }
 0x18c   :  { %v5117_v60 = vmax.f32 %v673_v9, %v1307_v13  ;;  %v568_v29 = vmul.f32 %v5031_v27, %v495_v17  ;;  %v1208_v18 = vmul.f32 %v5031_v27, %v1141_v15  ;;  %v3784_v34 = vpop.f32.mrb[89].mxu0  ;;  %v3886_v26 = vpop.f32.mrb[89].mxu1 }
 0x18d   :  { %v498_v38 = vpop.f32.mrb[90].mxu0  ;;  %v1144_v39 = vpop.f32.mrb[90].mxu1 }
 0x18e   :  { %5503 = vst [vmem:[#allocation2_spill] sm:$0xff] %v5117_v60  ;;  %v624_v42 = vadd.f32 %v5024_v20, %v568_v29  ;;  %v1258_v44 = vadd.f32 %v5024_v20, %v1208_v18  ;;  %v569_v47 = vmul.f32 %v5031_v27, %v498_v38  ;;  %v1209_v54 = vmul.f32 %v5031_v27, %v1144_v39  ;;  %v3785_v55 = vpop.f32.mrb[91].mxu0  ;;  %v3887_v61 = vpop.f32.mrb[91].mxu1 }
 0x190   :  { %v674_v9 = vmax.f32 %v624_v42, 0.0  ;;  %v1308_v13 = vmax.f32 %v1258_v44, 0.0  ;;  %v625_v17 = vadd.f32 %v5024_v20, %v569_v47  ;;  %v1259_v15 = vadd.f32 %v5024_v20, %v1209_v54  ;;  %3995 = vmatmul.mubr.msk.bf16.gmra.mrb[196].mxu0 %vm202_vm3, %v4202_v36  ;;  %4097 = vmatmul.mubr.msk.bf16.gmra.mrb[196].mxu1 %vm202_vm3, %v4203_v0 }
 0x192   :  { %v5135_v34 = vmax.f32 %v674_v9, %v1308_v13  ;;  %v675_v29 = vmax.f32 %v625_v17, 0.0  ;;  %v1309_v18 = vmax.f32 %v1259_v15, 0.0 }
 0x193   :  { %v503_v26 = vpop.f32.mrb[92].mxu0  ;;  %v1149_v38 = vpop.f32.mrb[92].mxu1 }
 0x194   :  { %5504 = vst [vmem:[#allocation3_spill] sm:$0xff] %v5135_v34  ;;  %v5137_v60 = vmax.f32 %v675_v29, %v1309_v18  ;;  %v570_v39 = vmul.f32 %v5031_v27, %v503_v26  ;;  %v1210_v42 = vmul.f32 %v5031_v27, %v1149_v38  ;;  %v3788_v44 = vpop.f32.mrb[93].mxu0  ;;  %v3890_v47 = vpop.f32.mrb[93].mxu1 }
 0x195   :  { %v506_v55 = vpop.f32.mrb[94].mxu0  ;;  %v1152_v54 = vpop.f32.mrb[94].mxu1 }
 0x196   :  { %5505 = vst [vmem:[#allocation4_spill] sm:$0xff] %v5137_v60  ;;  %v626_v36 = vadd.f32 %v5024_v20, %v570_v39  ;;  %v1260_v0 = vadd.f32 %v5024_v20, %v1210_v42  ;;  %v571_v61 = vmul.f32 %v5031_v27, %v506_v55  ;;  %v1211_v9 = vmul.f32 %v5031_v27, %v1152_v54  ;;  %v3789_v13 = vpop.f32.mrb[95].mxu0  ;;  %v3891_v17 = vpop.f32.mrb[95].mxu1 }
 0x198   :  { %v676_v15 = vmax.f32 %v626_v36, 0.0  ;;  %v1310_v29 = vmax.f32 %v1260_v0, 0.0  ;;  %v627_v18 = vadd.f32 %v5024_v20, %v571_v61  ;;  %v1261_v26 = vadd.f32 %v5024_v20, %v1211_v9 }
 0x19a   :  { %v5147_v38 = vmax.f32 %v676_v15, %v1310_v29  ;;  %v677_v44 = vmax.f32 %v627_v18, 0.0  ;;  %v1311_v47 = vmax.f32 %v1261_v26, 0.0 }
 0x19b   :  { %v511_v60 = vpop.f32.mrb[96].mxu0  ;;  %v1157_v39 = vpop.f32.mrb[96].mxu1 }
 0x19c   :  { %5506 = vst [vmem:[#allocation5_spill] sm:$0xff] %v5147_v38  ;;  %v5149_v34 = vmax.f32 %v677_v44, %v1311_v47  ;;  %v572_v42 = vmul.f32 %v5031_v27, %v511_v60  ;;  %v1212_v55 = vmul.f32 %v5031_v27, %v1157_v39  ;;  %v3792_v54 = vpop.f32.mrb[97].mxu0  ;;  %v3894_v13 = vpop.f32.mrb[97].mxu1 }
 0x19d   :  { %v514_v36 = vpop.f32.mrb[98].mxu0  ;;  %v1160_v0 = vpop.f32.mrb[98].mxu1 }
 0x19e   :  { %5507 = vst [vmem:[#allocation6_spill] sm:$0xff] %v5149_v34  ;;  %v628_v61 = vadd.f32 %v5024_v20, %v572_v42  ;;  %v1262_v9 = vadd.f32 %v5024_v20, %v1212_v55  ;;  %v573_v17 = vmul.f32 %v5031_v27, %v514_v36  ;;  %v1213_v15 = vmul.f32 %v5031_v27, %v1160_v0  ;;  %v3793_v29 = vpop.f32.mrb[99].mxu0  ;;  %v3895_v18 = vpop.f32.mrb[99].mxu1 }
 0x1a0   :  { %v678_v26 = vmax.f32 %v628_v61, 0.0  ;;  %v1312_v44 = vmax.f32 %v1262_v9, 0.0  ;;  %v629_v60 = vadd.f32 %v5024_v20, %v573_v17  ;;  %v1263_v47 = vadd.f32 %v5024_v20, %v1213_v15 }
 0x1a2   :  { %v5159_v39 = vmax.f32 %v678_v26, %v1312_v44  ;;  %v679_v54 = vmax.f32 %v629_v60, 0.0  ;;  %v1313_v13 = vmax.f32 %v1263_v47, 0.0 }
 0x1a3   :  { %v1649_v34 = vpop.f32.mrb[100].mxu0  ;;  %v2333_v42 = vpop.f32.mrb[100].mxu1 }
 0x1a4   :  { %5508 = vst [vmem:[#allocation7_spill] sm:$0xff] %v5159_v39  ;;  %v5161_v38 = vmax.f32 %v679_v54, %v1313_v13  ;;  %v1848_v55 = vmul.f32 %v5031_v27, %v1649_v34  ;;  %v2532_v36 = vmul.f32 %v5031_v27, %v2333_v42  ;;  %v3900_v0 = vpop.f32.mrb[101].mxu0  ;;  %v4002_v29 = vpop.f32.mrb[101].mxu1 }
 0x1a5   :  { %v1652_v61 = vpop.f32.mrb[102].mxu0  ;;  %v2336_v9 = vpop.f32.mrb[102].mxu1 }
 0x1a6   :  { %5509 = vst [vmem:[#allocation8_spill] sm:$0xff] %v5161_v38  ;;  %v1898_v17 = vadd.f32 %v5024_v20, %v1848_v55  ;;  %v2582_v15 = vadd.f32 %v5024_v20, %v2532_v36  ;;  %v1849_v18 = vmul.f32 %v5031_v27, %v1652_v61  ;;  %v2533_v26 = vmul.f32 %v5031_v27, %v2336_v9  ;;  %v3901_v44 = vpop.f32.mrb[103].mxu0  ;;  %v4003_v60 = vpop.f32.mrb[103].mxu1 }
 0x1a8   :  { %v1948_v47 = vmax.f32 %v1898_v17, 0.0  ;;  %v2632_v54 = vmax.f32 %v2582_v15, 0.0  ;;  %v1899_v34 = vadd.f32 %v5024_v20, %v1849_v18  ;;  %v2583_v13 = vadd.f32 %v5024_v20, %v2533_v26 }
 0x1aa   :  { %v1998_v42 = vmax.f32 %v4601_v19, %v1948_v47  ;;  %v1949_v0 = vmax.f32 %v1899_v34, 0.0  ;;  %v2633_v29 = vmax.f32 %v2583_v13, 0.0 }
 0x1ab   :  { %v1657_v38 = vpop.f32.mrb[104].mxu0  ;;  %v2341_v55 = vpop.f32.mrb[104].mxu1 }
 0x1ac   :  { %v2682_v39 = vmax.f32 %v1998_v42, %v2632_v54  ;;  %v1999_v36 = vmax.f32 %v4603_v24, %v1949_v0  ;;  %v1850_v61 = vmul.f32 %v5031_v27, %v1657_v38  ;;  %v2534_v9 = vmul.f32 %v5031_v27, %v2341_v55  ;;  %v3904_v44 = vpop.f32.mrb[105].mxu0  ;;  %v4006_v17 = vpop.f32.mrb[105].mxu1 }
 0x1ad   :  { %v1660_v15 = vpop.f32.mrb[106].mxu0  ;;  %v2344_v60 = vpop.f32.mrb[106].mxu1 }
 0x1ae   :  { %v2683_v18 = vmax.f32 %v1999_v36, %v2633_v29  ;;  %v1900_v26 = vadd.f32 %v5024_v20, %v1850_v61  ;;  %v2584_v19 = vadd.f32 %v5024_v20, %v2534_v9  ;;  %v1851_v47 = vmul.f32 %v5031_v27, %v1660_v15  ;;  %v3905_v34 = vpop.f32.mrb[107].mxu0  ;;  %v4007_v13 = vpop.f32.mrb[107].mxu1 }
 0x1af   :  { %v2535_v54 = vmul.f32 %v5031_v27, %v2344_v60 }
 0x1b0   :  { %v3442_v24 = vpack.c.bf16 %v2683_v18, %v2682_v39  ;;  %v1950_v42 = vmax.f32 %v1900_v26, 0.0  ;;  %v2634_v38 = vmax.f32 %v2584_v19, 0.0  ;;  %v1901_v0 = vadd.f32 %v5024_v20, %v1851_v47 }
 0x1b1   :  { %v2585_v55 = vadd.f32 %v5024_v20, %v2535_v54 }
 0x1b2   :  { %3443 = vst [vmem:[%s5502_s4] sm:$0xff] %v3442_v24   ;;  %v2000_v29 = vmax.f32 %v4625_v43, %v1950_v42  ;;  %v1951_v36 = vmax.f32 %v1901_v0, 0.0 }
 0x1b3   :  { %v2635_v61 = vmax.f32 %v2585_v55, 0.0  ;;  %v1665_v9 = vpop.f32.mrb[108].mxu0  ;;  %v2349_v44 = vpop.f32.mrb[108].mxu1 }
 0x1b4   :  { %v2684_v17 = vmax.f32 %v2000_v29, %v2634_v38  ;;  %v2001_v15 = vmax.f32 %v4627_v48, %v1951_v36  ;;  %v1852_v39 = vmul.f32 %v5031_v27, %v1665_v9  ;;  %v2536_v60 = vmul.f32 %v5031_v27, %v2349_v44  ;;  %v3908_v18 = vpop.f32.mrb[109].mxu0  ;;  %v4010_v26 = vpop.f32.mrb[109].mxu1 }
 0x1b5   :  { %v1668_v19 = vpop.f32.mrb[110].mxu0  ;;  %v2352_v47 = vpop.f32.mrb[110].mxu1 }
 0x1b6   :  { %v2685_v34 = vmax.f32 %v2001_v15, %v2635_v61  ;;  %v1902_v13 = vadd.f32 %v5024_v20, %v1852_v39  ;;  %v2586_v43 = vadd.f32 %v5024_v20, %v2536_v60  ;;  %v1853_v54 = vmul.f32 %v5031_v27, %v1668_v19  ;;  %v3909_v24 = vpop.f32.mrb[111].mxu0  ;;  %v4011_v42 = vpop.f32.mrb[111].mxu1 }
 0x1b7   :  { %v2537_v38 = vmul.f32 %v5031_v27, %v2352_v47 }
 0x1b8   :  { %v3447_v48 = vpack.c.bf16 %v2685_v34, %v2684_v17  ;;  %v1952_v0 = vmax.f32 %v1902_v13, 0.0  ;;  %v2636_v55 = vmax.f32 %v2586_v43, 0.0  ;;  %v1903_v29 = vadd.f32 %v5024_v20, %v1853_v54 }
 0x1b9   :  { %v2587_v36 = vadd.f32 %v5024_v20, %v2537_v38 }
 0x1ba   :  { %3564 = vst [vmem:[%s5502_s4 + $0x8] sm:$0xff] %v3447_v48   ;;  %v2002_v61 = vmax.f32 %v4649_v6, %v1952_v0  ;;  %v1953_v9 = vmax.f32 %v1903_v29, 0.0 }
 0x1bb   :  { %v2637_v44 = vmax.f32 %v2587_v36, 0.0  ;;  %v1673_v15 = vpop.f32.mrb[112].mxu0  ;;  %v2357_v39 = vpop.f32.mrb[112].mxu1 }
 0x1bc   :  { %v2686_v60 = vmax.f32 %v2002_v61, %v2636_v55  ;;  %v2003_v18 = vmax.f32 %v4651_v11, %v1953_v9  ;;  %v1854_v17 = vmul.f32 %v5031_v27, %v1673_v15  ;;  %v2538_v26 = vmul.f32 %v5031_v27, %v2357_v39  ;;  %v3912_v19 = vpop.f32.mrb[113].mxu0  ;;  %v4014_v47 = vpop.f32.mrb[113].mxu1 }
 0x1bd   :  { %v1676_v34 = vpop.f32.mrb[114].mxu0  ;;  %v2360_v13 = vpop.f32.mrb[114].mxu1 }
 0x1be   :  { %v2687_v43 = vmax.f32 %v2003_v18, %v2637_v44  ;;  %v1904_v54 = vadd.f32 %v5024_v20, %v1854_v17  ;;  %v2588_v6 = vadd.f32 %v5024_v20, %v2538_v26  ;;  %v1855_v24 = vmul.f32 %v5031_v27, %v1676_v34  ;;  %v3913_v42 = vpop.f32.mrb[115].mxu0  ;;  %v4015_v38 = vpop.f32.mrb[115].mxu1 }
 0x1bf   :  { %v2539_v48 = vmul.f32 %v5031_v27, %v2360_v13 }
 0x1c0   :  { %v3452_v11 = vpack.c.bf16 %v2687_v43, %v2686_v60  ;;  %v1954_v0 = vmax.f32 %v1904_v54, 0.0  ;;  %v2638_v55 = vmax.f32 %v2588_v6, 0.0  ;;  %v1905_v29 = vadd.f32 %v5024_v20, %v1855_v24 }
 0x1c1   :  { %v2589_v36 = vadd.f32 %v5024_v20, %v2539_v48 }
 0x1c2   :  { %3565 = vst [vmem:[%s5502_s4 + $0x10] sm:$0xff] %v3452_v11   ;;  %v2004_v61 = vmax.f32 %v4673_v32, %v1954_v0  ;;  %v1955_v9 = vmax.f32 %v1905_v29, 0.0 }
 0x1c3   :  { %v2639_v44 = vmax.f32 %v2589_v36, 0.0  ;;  %v1681_v15 = vpop.f32.mrb[116].mxu0  ;;  %v2365_v39 = vpop.f32.mrb[116].mxu1 }
 0x1c4   :  { %v2688_v18 = vmax.f32 %v2004_v61, %v2638_v55  ;;  %v2005_v17 = vmax.f32 %v4675_v37, %v1955_v9  ;;  %v1856_v60 = vmul.f32 %v5031_v27, %v1681_v15  ;;  %v2540_v26 = vmul.f32 %v5031_v27, %v2365_v39  ;;  %v3916_v19 = vpop.f32.mrb[117].mxu0  ;;  %v4018_v47 = vpop.f32.mrb[117].mxu1 }
 0x1c5   :  { %v1684_v34 = vpop.f32.mrb[118].mxu0  ;;  %v2368_v13 = vpop.f32.mrb[118].mxu1 }
 0x1c6   :  { %v2689_v43 = vmax.f32 %v2005_v17, %v2639_v44  ;;  %v1906_v54 = vadd.f32 %v5024_v20, %v1856_v60  ;;  %v2590_v32 = vadd.f32 %v5024_v20, %v2540_v26  ;;  %v1857_v6 = vmul.f32 %v5031_v27, %v1684_v34  ;;  %v3917_v24 = vpop.f32.mrb[119].mxu0  ;;  %v4019_v42 = vpop.f32.mrb[119].mxu1 }
 0x1c7   :  { %v2541_v38 = vmul.f32 %v5031_v27, %v2368_v13 }
 0x1c8   :  { %v3457_v37 = vpack.c.bf16 %v2689_v43, %v2688_v18  ;;  %v1956_v48 = vmax.f32 %v1906_v54, 0.0  ;;  %v2640_v11 = vmax.f32 %v2590_v32, 0.0  ;;  %v1907_v0 = vadd.f32 %v5024_v20, %v1857_v6 }
 0x1c9   :  { %v2591_v55 = vadd.f32 %v5024_v20, %v2541_v38 }
 0x1ca   :  { %3566 = vst [vmem:[%s5502_s4 + $0x18] sm:$0xff] %v3457_v37   ;;  %v2006_v29 = vmax.f32 %v4697_v58, %v1956_v48  ;;  %v1957_v36 = vmax.f32 %v1907_v0, 0.0 }
 0x1cb   :  { %v2641_v61 = vmax.f32 %v2591_v55, 0.0  ;;  %v1689_v9 = vpop.f32.mrb[120].mxu0  ;;  %v2373_v44 = vpop.f32.mrb[120].mxu1 }
 0x1cc   :  { %v2690_v15 = vmax.f32 %v2006_v29, %v2640_v11  ;;  %v2007_v39 = vmax.f32 %v4699_v2, %v1957_v36  ;;  %v1858_v18 = vmul.f32 %v5031_v27, %v1689_v9  ;;  %v2542_v17 = vmul.f32 %v5031_v27, %v2373_v44  ;;  %v3920_v60 = vpop.f32.mrb[121].mxu0  ;;  %v4022_v26 = vpop.f32.mrb[121].mxu1 }
 0x1cd   :  { %v1692_v19 = vpop.f32.mrb[122].mxu0  ;;  %v2376_v47 = vpop.f32.mrb[122].mxu1 }
 0x1ce   :  { %v2691_v34 = vmax.f32 %v2007_v39, %v2641_v61  ;;  %v1908_v13 = vadd.f32 %v5024_v20, %v1858_v18  ;;  %v2592_v58 = vadd.f32 %v5024_v20, %v2542_v17  ;;  %v1859_v43 = vmul.f32 %v5031_v27, %v1692_v19  ;;  %v3921_v54 = vpop.f32.mrb[123].mxu0  ;;  %v4023_v32 = vpop.f32.mrb[123].mxu1 }
 0x1cf   :  { %v2543_v6 = vmul.f32 %v5031_v27, %v2376_v47 }
 0x1d0   :  { %v3462_v2 = vpack.c.bf16 %v2691_v34, %v2690_v15  ;;  %v1958_v24 = vmax.f32 %v1908_v13, 0.0  ;;  %v2642_v42 = vmax.f32 %v2592_v58, 0.0  ;;  %v1909_v38 = vadd.f32 %v5024_v20, %v1859_v43 }
 0x1d1   :  { %v2593_v37 = vadd.f32 %v5024_v20, %v2543_v6 }
 0x1d2   :  { %3567 = vst [vmem:[%s5502_s4 + $0x20] sm:$0xff] %v3462_v2   ;;  %v2008_v48 = vmax.f32 %v4721_v25, %v1958_v24  ;;  %v1959_v11 = vmax.f32 %v1909_v38, 0.0 }
 0x1d3   :  { %v2643_v0 = vmax.f32 %v2593_v37, 0.0  ;;  %v1697_v55 = vpop.f32.mrb[124].mxu0  ;;  %v2381_v29 = vpop.f32.mrb[124].mxu1 }
 0x1d4   :  { %v2692_v36 = vmax.f32 %v2008_v48, %v2642_v42  ;;  %v2009_v61 = vmax.f32 %v4723_v30, %v1959_v11  ;;  %v1860_v9 = vmul.f32 %v5031_v27, %v1697_v55  ;;  %v2544_v44 = vmul.f32 %v5031_v27, %v2381_v29  ;;  %v3924_v15 = vpop.f32.mrb[125].mxu0  ;;  %v4026_v39 = vpop.f32.mrb[125].mxu1 }
 0x1d5   :  { %v1700_v18 = vpop.f32.mrb[126].mxu0  ;;  %v2384_v17 = vpop.f32.mrb[126].mxu1 }
 0x1d6   :  { %v2693_v60 = vmax.f32 %v2009_v61, %v2643_v0  ;;  %v1910_v26 = vadd.f32 %v5024_v20, %v1860_v9  ;;  %v2594_v25 = vadd.f32 %v5024_v20, %v2544_v44  ;;  %v1861_v19 = vmul.f32 %v5031_v27, %v1700_v18  ;;  %v3925_v47 = vpop.f32.mrb[127].mxu0  ;;  %v4027_v34 = vpop.f32.mrb[127].mxu1 }
 0x1d7   :  { %v2545_v13 = vmul.f32 %v5031_v27, %v2384_v17 }
 0x1d8   :  { %v3467_v30 = vpack.c.bf16 %v2693_v60, %v2692_v36  ;;  %v1960_v58 = vmax.f32 %v1910_v26, 0.0  ;;  %v2644_v43 = vmax.f32 %v2594_v25, 0.0  ;;  %v1911_v54 = vadd.f32 %v5024_v20, %v1861_v19 }
 0x1d9   :  { %v2595_v32 = vadd.f32 %v5024_v20, %v2545_v13 }
 0x1da   :  { %3568 = vst [vmem:[%s5502_s4 + $0x28] sm:$0xff] %v3467_v30   ;;  %v2010_v6 = vmax.f32 %v4745_v53, %v1960_v58  ;;  %v1961_v2 = vmax.f32 %v1911_v54, 0.0 }
 0x1db   :  { %v2645_v24 = vmax.f32 %v2595_v32, 0.0  ;;  %v1705_v42 = vpop.f32.mrb[128].mxu0  ;;  %v2389_v38 = vpop.f32.mrb[128].mxu1 }
 0x1dc   :  { %v2694_v37 = vmax.f32 %v2010_v6, %v2644_v43  ;;  %v2011_v48 = vmax.f32 %v4747_v59, %v1961_v2  ;;  %v1862_v11 = vmul.f32 %v5031_v27, %v1705_v42  ;;  %v2546_v0 = vmul.f32 %v5031_v27, %v2389_v38  ;;  %v3928_v55 = vpop.f32.mrb[129].mxu0  ;;  %v4030_v29 = vpop.f32.mrb[129].mxu1 }
 0x1dd   :  { %v1708_v36 = vpop.f32.mrb[130].mxu0  ;;  %v2392_v61 = vpop.f32.mrb[130].mxu1 }
 0x1de   :  { %v2695_v9 = vmax.f32 %v2011_v48, %v2645_v24  ;;  %v1912_v44 = vadd.f32 %v5024_v20, %v1862_v11  ;;  %v2596_v53 = vadd.f32 %v5024_v20, %v2546_v0  ;;  %v1863_v15 = vmul.f32 %v5031_v27, %v1708_v36  ;;  %v3929_v39 = vpop.f32.mrb[131].mxu0  ;;  %v4031_v18 = vpop.f32.mrb[131].mxu1 }
 0x1df   :  { %v2547_v17 = vmul.f32 %v5031_v27, %v2392_v61 }
 0x1e0   :  { %v3472_v59 = vpack.c.bf16 %v2695_v9, %v2694_v37  ;;  %v1962_v60 = vmax.f32 %v1912_v44, 0.0  ;;  %v2646_v26 = vmax.f32 %v2596_v53, 0.0  ;;  %v1913_v25 = vadd.f32 %v5024_v20, %v1863_v15 }
 0x1e1   :  { %v2597_v19 = vadd.f32 %v5024_v20, %v2547_v17 }
 0x1e2   :  { %3569 = vst [vmem:[%s5502_s4 + $0x30] sm:$0xff] %v3472_v59   ;;  %v2012_v47 = vmax.f32 %v4769_v21, %v1962_v60  ;;  %v1963_v34 = vmax.f32 %v1913_v25, 0.0 }
 0x1e3   :  { %v2647_v13 = vmax.f32 %v2597_v19, 0.0  ;;  %v1713_v30 = vpop.f32.mrb[132].mxu0  ;;  %v2397_v58 = vpop.f32.mrb[132].mxu1 }
 0x1e4   :  { %v2696_v43 = vmax.f32 %v2012_v47, %v2646_v26  ;;  %v2013_v54 = vmax.f32 %v4771_v28, %v1963_v34  ;;  %v1864_v32 = vmul.f32 %v5031_v27, %v1713_v30  ;;  %v2548_v6 = vmul.f32 %v5031_v27, %v2397_v58  ;;  %v3932_v2 = vpop.f32.mrb[133].mxu0  ;;  %v4034_v24 = vpop.f32.mrb[133].mxu1 }
 0x1e5   :  { %v1716_v42 = vpop.f32.mrb[134].mxu0  ;;  %v2400_v38 = vpop.f32.mrb[134].mxu1 }
 0x1e6   :  { %v2697_v37 = vmax.f32 %v2013_v54, %v2647_v13  ;;  %v1914_v48 = vadd.f32 %v5024_v20, %v1864_v32  ;;  %v2598_v21 = vadd.f32 %v5024_v20, %v2548_v6  ;;  %v1865_v11 = vmul.f32 %v5031_v27, %v1716_v42  ;;  %v3933_v0 = vpop.f32.mrb[135].mxu0  ;;  %v4035_v55 = vpop.f32.mrb[135].mxu1 }
 0x1e7   :  { %v2549_v29 = vmul.f32 %v5031_v27, %v2400_v38 }
 0x1e8   :  { %v3477_v28 = vpack.c.bf16 %v2697_v37, %v2696_v43  ;;  %v1964_v36 = vmax.f32 %v1914_v48, 0.0  ;;  %v2648_v61 = vmax.f32 %v2598_v21, 0.0  ;;  %v1915_v9 = vadd.f32 %v5024_v20, %v1865_v11 }
 0x1e9   :  { %v2599_v44 = vadd.f32 %v5024_v20, %v2549_v29 }
 0x1ea   :  { %3570 = vst [vmem:[%s5502_s4 + $0x38] sm:$0xff] %v3477_v28   ;;  %v2014_v53 = vmax.f32 %v4793_v52, %v1964_v36  ;;  %v1965_v15 = vmax.f32 %v1915_v9, 0.0 }
 0x1eb   :  { %v2649_v39 = vmax.f32 %v2599_v44, 0.0  ;;  %v1721_v18 = vpop.f32.mrb[136].mxu0  ;;  %v2405_v17 = vpop.f32.mrb[136].mxu1 }
 0x1ec   :  { %v2698_v59 = vmax.f32 %v2014_v53, %v2648_v61  ;;  %v2015_v60 = vmax.f32 %v4795_v62, %v1965_v15  ;;  %v1866_v26 = vmul.f32 %v5031_v27, %v1721_v18  ;;  %v2550_v25 = vmul.f32 %v5031_v27, %v2405_v17  ;;  %v3936_v19 = vpop.f32.mrb[137].mxu0  ;;  %v4038_v47 = vpop.f32.mrb[137].mxu1 }
 0x1ed   :  { %v1724_v34 = vpop.f32.mrb[138].mxu0  ;;  %v2408_v13 = vpop.f32.mrb[138].mxu1 }
 0x1ee   :  { %v2699_v30 = vmax.f32 %v2015_v60, %v2649_v39  ;;  %v1916_v58 = vadd.f32 %v5024_v20, %v1866_v26  ;;  %v2600_v52 = vadd.f32 %v5024_v20, %v2550_v25  ;;  %v1867_v43 = vmul.f32 %v5031_v27, %v1724_v34  ;;  %v3937_v54 = vpop.f32.mrb[139].mxu0  ;;  %v4039_v32 = vpop.f32.mrb[139].mxu1 }
 0x1ef   :  { %v2551_v6 = vmul.f32 %v5031_v27, %v2408_v13 }
 0x1f0   :  { %v3482_v62 = vpack.c.bf16 %v2699_v30, %v2698_v59  ;;  %v1966_v2 = vmax.f32 %v1916_v58, 0.0  ;;  %v2650_v24 = vmax.f32 %v2600_v52, 0.0  ;;  %v1917_v42 = vadd.f32 %v5024_v20, %v1867_v43 }
 0x1f1   :  { %v2601_v38 = vadd.f32 %v5024_v20, %v2551_v6 }
 0x1f2   :  { %3571 = vst [vmem:[%s5502_s4 + $0x40] sm:$0xff] %v3482_v62   ;;  %v2016_v37 = vmax.f32 %v4817_v23, %v1966_v2  ;;  %v1967_v48 = vmax.f32 %v1917_v42, 0.0 }
 0x1f3   :  { %v2651_v21 = vmax.f32 %v2601_v38, 0.0  ;;  %v1729_v11 = vpop.f32.mrb[140].mxu0  ;;  %v2413_v0 = vpop.f32.mrb[140].mxu1 }
 0x1f4   :  { %v2700_v55 = vmax.f32 %v2016_v37, %v2650_v24  ;;  %v2017_v29 = vmax.f32 %v4819_v33, %v1967_v48  ;;  %v1868_v28 = vmul.f32 %v5031_v27, %v1729_v11  ;;  %v2552_v36 = vmul.f32 %v5031_v27, %v2413_v0  ;;  %v3940_v61 = vpop.f32.mrb[141].mxu0  ;;  %v4042_v9 = vpop.f32.mrb[141].mxu1 }
 0x1f5   :  { %v1732_v44 = vpop.f32.mrb[142].mxu0  ;;  %v2416_v53 = vpop.f32.mrb[142].mxu1 }
 0x1f6   :  { %v2701_v15 = vmax.f32 %v2017_v29, %v2651_v21  ;;  %v1918_v39 = vadd.f32 %v5024_v20, %v1868_v28  ;;  %v2602_v23 = vadd.f32 %v5024_v20, %v2552_v36  ;;  %v1869_v18 = vmul.f32 %v5031_v27, %v1732_v44  ;;  %v3941_v17 = vpop.f32.mrb[143].mxu0  ;;  %v4043_v59 = vpop.f32.mrb[143].mxu1 }
 0x1f7   :  { %v2553_v60 = vmul.f32 %v5031_v27, %v2416_v53 }
 0x1f8   :  { %v3487_v33 = vpack.c.bf16 %v2701_v15, %v2700_v55  ;;  %v1968_v26 = vmax.f32 %v1918_v39, 0.0  ;;  %v2652_v25 = vmax.f32 %v2602_v23, 0.0  ;;  %v1919_v19 = vadd.f32 %v5024_v20, %v1869_v18 }
 0x1f9   :  { %v2603_v47 = vadd.f32 %v5024_v20, %v2553_v60 }
 0x1fa   :  { %3572 = vst [vmem:[%s5502_s4 + $0x48] sm:$0xff] %v3487_v33   ;;  %v2018_v34 = vmax.f32 %v4841_v57, %v1968_v26  ;;  %v1969_v13 = vmax.f32 %v1919_v19, 0.0 }
 0x1fb   :  { %v2653_v30 = vmax.f32 %v2603_v47, 0.0  ;;  %v1737_v58 = vpop.f32.mrb[144].mxu0  ;;  %v2421_v52 = vpop.f32.mrb[144].mxu1 }
 0x1fc   :  { %v2702_v43 = vmax.f32 %v2018_v34, %v2652_v25  ;;  %v2019_v54 = vmax.f32 %v4843_v5, %v1969_v13  ;;  %v1870_v32 = vmul.f32 %v5031_v27, %v1737_v58  ;;  %v2554_v6 = vmul.f32 %v5031_v27, %v2421_v52  ;;  %v3944_v62 = vpop.f32.mrb[145].mxu0  ;;  %v4046_v2 = vpop.f32.mrb[145].mxu1 }
 0x1fd   :  { %v1740_v24 = vpop.f32.mrb[146].mxu0  ;;  %v2424_v42 = vpop.f32.mrb[146].mxu1 }
 0x1fe   :  { %v2703_v38 = vmax.f32 %v2019_v54, %v2653_v30  ;;  %v1920_v37 = vadd.f32 %v5024_v20, %v1870_v32  ;;  %v2604_v57 = vadd.f32 %v5024_v20, %v2554_v6  ;;  %v1871_v48 = vmul.f32 %v5031_v27, %v1740_v24  ;;  %v3945_v21 = vpop.f32.mrb[147].mxu0  ;;  %v4047_v11 = vpop.f32.mrb[147].mxu1 }
 0x1ff   :  { %v2555_v0 = vmul.f32 %v5031_v27, %v2424_v42 }
 0x200   :  { %v3492_v5 = vpack.c.bf16 %v2703_v38, %v2702_v43  ;;  %v1970_v55 = vmax.f32 %v1920_v37, 0.0  ;;  %v2654_v29 = vmax.f32 %v2604_v57, 0.0  ;;  %v1921_v28 = vadd.f32 %v5024_v20, %v1871_v48 }
 0x201   :  { %v2605_v36 = vadd.f32 %v5024_v20, %v2555_v0 }
 0x202   :  { %3573 = vst [vmem:[%s5502_s4 + $0x50] sm:$0xff] %v3492_v5   ;;  %v2020_v61 = vmax.f32 %v4865_v35, %v1970_v55  ;;  %v1971_v9 = vmax.f32 %v1921_v28, 0.0 }
 0x203   :  { %v2655_v44 = vmax.f32 %v2605_v36, 0.0  ;;  %v1745_v53 = vpop.f32.mrb[148].mxu0  ;;  %v2429_v15 = vpop.f32.mrb[148].mxu1 }
 0x204   :  { %v2704_v39 = vmax.f32 %v2020_v61, %v2654_v29  ;;  %v2021_v23 = vmax.f32 %v4867_v41, %v1971_v9  ;;  %v1872_v18 = vmul.f32 %v5031_v27, %v1745_v53  ;;  %v2556_v17 = vmul.f32 %v5031_v27, %v2429_v15  ;;  %v3948_v59 = vpop.f32.mrb[149].mxu0  ;;  %v4050_v60 = vpop.f32.mrb[149].mxu1 }
 0x205   :  { %v1748_v33 = vpop.f32.mrb[150].mxu0  ;;  %v2432_v26 = vpop.f32.mrb[150].mxu1 }
 0x206   :  { %v2705_v25 = vmax.f32 %v2021_v23, %v2655_v44  ;;  %v1922_v19 = vadd.f32 %v5024_v20, %v1872_v18  ;;  %v2606_v35 = vadd.f32 %v5024_v20, %v2556_v17  ;;  %v1873_v47 = vmul.f32 %v5031_v27, %v1748_v33  ;;  %v3949_v34 = vpop.f32.mrb[151].mxu0  ;;  %v4051_v13 = vpop.f32.mrb[151].mxu1 }
 0x207   :  { %v2557_v30 = vmul.f32 %v5031_v27, %v2432_v26 }
 0x208   :  { %v3497_v41 = vpack.c.bf16 %v2705_v25, %v2704_v39  ;;  %v1972_v58 = vmax.f32 %v1922_v19, 0.0  ;;  %v2656_v52 = vmax.f32 %v2606_v35, 0.0  ;;  %v1923_v43 = vadd.f32 %v5024_v20, %v1873_v47 }
 0x209   :  { %v2607_v54 = vadd.f32 %v5024_v20, %v2557_v30 }
 0x20a   :  { %3574 = vst [vmem:[%s5502_s4 + $0x58] sm:$0xff] %v3497_v41   ;;  %v2022_v32 = vmax.f32 %v4889_v10, %v1972_v58  ;;  %v1973_v6 = vmax.f32 %v1923_v43, 0.0  ;;  %v5334_v10 = vld [vmem:[%s5501_s3] ss:$0 sm:$0xff] }
 0x20b   :  { %v2657_v62 = vmax.f32 %v2607_v54, 0.0  ;;  %v1753_v2 = vpop.f32.mrb[152].mxu0  ;;  %v2437_v24 = vpop.f32.mrb[152].mxu1 }
 0x20c   :  { %v2706_v42 = vmax.f32 %v2022_v32, %v2656_v52  ;;  %v2023_v38 = vmax.f32 %v4891_v16, %v1973_v6  ;;  %v1874_v37 = vmul.f32 %v5031_v27, %v1753_v2  ;;  %v2558_v57 = vmul.f32 %v5031_v27, %v2437_v24  ;;  %v3952_v48 = vpop.f32.mrb[153].mxu0  ;;  %v4054_v21 = vpop.f32.mrb[153].mxu1  ;;  %v5341_v16 = vld [vmem:[%s5500_s2] ss:$0 sm:$0xff] }
 0x20d   :  { %v1756_v20 = vpop.f32.mrb[154].mxu0  ;;  %v2440_v11 = vpop.f32.mrb[154].mxu1 }
 0x20e   :  { %v2707_v0 = vmax.f32 %v2023_v38, %v2657_v62  ;;  %v1924_v5 = vadd.f32 %v5334_v10, %v1874_v37  ;;  %v2608_v55 = vadd.f32 %v5334_v10, %v2558_v57  ;;  %v1875_v27 = vmul.f32 %v5341_v16, %v1756_v20  ;;  %v3953_v29 = vpop.f32.mrb[155].mxu0  ;;  %v4055_v28 = vpop.f32.mrb[155].mxu1 }
 0x20f   :  { %v2559_v36 = vmul.f32 %v5341_v16, %v2440_v11 }
 0x210   :  { %v3502_v61 = vpack.c.bf16 %v2707_v0, %v2706_v42  ;;  %v1974_v9 = vmax.f32 %v1924_v5, 0.0  ;;  %v2658_v44 = vmax.f32 %v2608_v55, 0.0  ;;  %v1925_v53 = vadd.f32 %v5334_v10, %v1875_v27 }
 0x211   :  { %v2609_v15 = vadd.f32 %v5334_v10, %v2559_v36 }
 0x212   :  { %3575 = vst [vmem:[%s5502_s4 + $0x60] sm:$0xff] %v3502_v61   ;;  %v2024_v39 = vmax.f32 %v4913_v49, %v1974_v9  ;;  %v1975_v23 = vmax.f32 %v1925_v53, 0.0 }
 0x213   :  { %v2659_v18 = vmax.f32 %v2609_v15, 0.0  ;;  %v1761_v17 = vpop.f32.mrb[156].mxu0  ;;  %v2445_v59 = vpop.f32.mrb[156].mxu1 }
 0x214   :  { %v2708_v60 = vmax.f32 %v2024_v39, %v2658_v44  ;;  %v2025_v33 = vmax.f32 %v4915_v56, %v1975_v23  ;;  %v1876_v26 = vmul.f32 %v5341_v16, %v1761_v17  ;;  %v2560_v25 = vmul.f32 %v5341_v16, %v2445_v59  ;;  %v3956_v19 = vpop.f32.mrb[157].mxu0  ;;  %v4058_v35 = vpop.f32.mrb[157].mxu1 }
 0x215   :  { %v1764_v47 = vpop.f32.mrb[158].mxu0  ;;  %v2448_v34 = vpop.f32.mrb[158].mxu1 }
 0x216   :  { %v2709_v13 = vmax.f32 %v2025_v33, %v2659_v18  ;;  %v1926_v30 = vadd.f32 %v5334_v10, %v1876_v26  ;;  %v2610_v49 = vadd.f32 %v5334_v10, %v2560_v25  ;;  %v1877_v41 = vmul.f32 %v5341_v16, %v1764_v47  ;;  %v3957_v58 = vpop.f32.mrb[159].mxu0  ;;  %v4059_v52 = vpop.f32.mrb[159].mxu1 }
 0x217   :  { %v2561_v43 = vmul.f32 %v5341_v16, %v2448_v34 }
 0x218   :  { %v3507_v56 = vpack.c.bf16 %v2709_v13, %v2708_v60  ;;  %v1976_v54 = vmax.f32 %v1926_v30, 0.0  ;;  %v2660_v32 = vmax.f32 %v2610_v49, 0.0  ;;  %v1927_v6 = vadd.f32 %v5334_v10, %v1877_v41 }
 0x219   :  { %v2611_v62 = vadd.f32 %v5334_v10, %v2561_v43 }
 0x21a   :  { %3576 = vst [vmem:[%s5502_s4 + $0x68] sm:$0xff] %v3507_v56   ;;  %v2026_v2 = vmax.f32 %v4937_v31, %v1976_v54  ;;  %v1977_v24 = vmax.f32 %v1927_v6, 0.0 }
 0x21b   :  { %v2661_v42 = vmax.f32 %v2611_v62, 0.0  ;;  %v1769_v38 = vpop.f32.mrb[160].mxu0  ;;  %v2453_v37 = vpop.f32.mrb[160].mxu1 }
 0x21c   :  { %v2710_v57 = vmax.f32 %v2026_v2, %v2660_v32  ;;  %v2027_v48 = vmax.f32 %v4939_v40, %v1977_v24  ;;  %v1878_v21 = vmul.f32 %v5341_v16, %v1769_v38  ;;  %v2562_v20 = vmul.f32 %v5341_v16, %v2453_v37  ;;  %v3960_v11 = vpop.f32.mrb[161].mxu0  ;;  %v4062_v0 = vpop.f32.mrb[161].mxu1 }
 0x21d   :  { %v1772_v5 = vpop.f32.mrb[162].mxu0  ;;  %v2456_v55 = vpop.f32.mrb[162].mxu1 }
 0x21e   :  { %v2711_v27 = vmax.f32 %v2027_v48, %v2661_v42  ;;  %v1928_v29 = vadd.f32 %v5334_v10, %v1878_v21  ;;  %v2612_v31 = vadd.f32 %v5334_v10, %v2562_v20  ;;  %v1879_v28 = vmul.f32 %v5341_v16, %v1772_v5  ;;  %v3961_v36 = vpop.f32.mrb[163].mxu0  ;;  %v4063_v61 = vpop.f32.mrb[163].mxu1 }
 0x21f   :  { %v2563_v9 = vmul.f32 %v5341_v16, %v2456_v55 }
 0x220   :  { %v3512_v40 = vpack.c.bf16 %v2711_v27, %v2710_v57  ;;  %v1978_v44 = vmax.f32 %v1928_v29, 0.0  ;;  %v2662_v53 = vmax.f32 %v2612_v31, 0.0  ;;  %v1929_v15 = vadd.f32 %v5334_v10, %v1879_v28 }
 0x221   :  { %v2613_v39 = vadd.f32 %v5334_v10, %v2563_v9 }
 0x222   :  { %3577 = vst [vmem:[%s5502_s4 + $0x70] sm:$0xff] %v3512_v40   ;;  %v2028_v23 = vmax.f32 %v4961_v14, %v1978_v44  ;;  %v1979_v18 = vmax.f32 %v1929_v15, 0.0 }
 0x223   :  { %v2663_v17 = vmax.f32 %v2613_v39, 0.0  ;;  %v1777_v59 = vpop.f32.mrb[164].mxu0  ;;  %v2461_v60 = vpop.f32.mrb[164].mxu1 }
 0x224   :  { %v2712_v33 = vmax.f32 %v2028_v23, %v2662_v53  ;;  %v2029_v26 = vmax.f32 %v4963_v22, %v1979_v18  ;;  %v1880_v25 = vmul.f32 %v5341_v16, %v1777_v59  ;;  %v2564_v19 = vmul.f32 %v5341_v16, %v2461_v60  ;;  %v3964_v35 = vpop.f32.mrb[165].mxu0  ;;  %v4066_v47 = vpop.f32.mrb[165].mxu1 }
 0x225   :  { %v1780_v34 = vpop.f32.mrb[166].mxu0  ;;  %v2464_v13 = vpop.f32.mrb[166].mxu1 }
 0x226   :  { %v2713_v30 = vmax.f32 %v2029_v26, %v2663_v17  ;;  %v1930_v49 = vadd.f32 %v5334_v10, %v1880_v25  ;;  %v2614_v14 = vadd.f32 %v5334_v10, %v2564_v19  ;;  %v1881_v41 = vmul.f32 %v5341_v16, %v1780_v34  ;;  %v3965_v58 = vpop.f32.mrb[167].mxu0  ;;  %v4067_v52 = vpop.f32.mrb[167].mxu1 }
 0x227   :  { %v2565_v43 = vmul.f32 %v5341_v16, %v2464_v13 }
 0x228   :  { %v3517_v22 = vpack.c.bf16 %v2713_v30, %v2712_v33  ;;  %v1980_v56 = vmax.f32 %v1930_v49, 0.0  ;;  %v2664_v54 = vmax.f32 %v2614_v14, 0.0  ;;  %v1931_v32 = vadd.f32 %v5334_v10, %v1881_v41 }
 0x229   :  { %v2615_v6 = vadd.f32 %v5334_v10, %v2565_v43 }
 0x22a   :  { %3578 = vst [vmem:[%s5502_s4 + $0x78] sm:$0xff] %v3517_v22   ;;  %v2030_v62 = vmax.f32 %v4985_v3, %v1980_v56  ;;  %v1981_v2 = vmax.f32 %v1931_v32, 0.0 }
 0x22b   :  { %v2665_v24 = vmax.f32 %v2615_v6, 0.0  ;;  %v1785_v42 = vpop.f32.mrb[168].mxu0  ;;  %v2469_v38 = vpop.f32.mrb[168].mxu1 }
 0x22c   :  { %v2714_v37 = vmax.f32 %v2030_v62, %v2664_v54  ;;  %v2031_v57 = vmax.f32 %v4987_v12, %v1981_v2  ;;  %v1882_v48 = vmul.f32 %v5341_v16, %v1785_v42  ;;  %v2566_v21 = vmul.f32 %v5341_v16, %v2469_v38  ;;  %v3968_v20 = vpop.f32.mrb[169].mxu0  ;;  %v4070_v11 = vpop.f32.mrb[169].mxu1 }
 0x22d   :  { %v1788_v0 = vpop.f32.mrb[170].mxu0  ;;  %v2472_v5 = vpop.f32.mrb[170].mxu1 }
 0x22e   :  { %v2715_v55 = vmax.f32 %v2031_v57, %v2665_v24  ;;  %v1932_v27 = vadd.f32 %v5334_v10, %v1882_v48  ;;  %v2616_v3 = vadd.f32 %v5334_v10, %v2566_v21  ;;  %v1883_v29 = vmul.f32 %v5341_v16, %v1788_v0  ;;  %v3969_v31 = vpop.f32.mrb[171].mxu0  ;;  %v4071_v28 = vpop.f32.mrb[171].mxu1 }
 0x22f   :  { %v2567_v36 = vmul.f32 %v5341_v16, %v2472_v5 }
 0x230   :  { %v3522_v12 = vpack.c.bf16 %v2715_v55, %v2714_v37  ;;  %v1982_v61 = vmax.f32 %v1932_v27, 0.0  ;;  %v2666_v9 = vmax.f32 %v2616_v3, 0.0  ;;  %v1933_v40 = vadd.f32 %v5334_v10, %v1883_v29 }
 0x231   :  { %v2617_v44 = vadd.f32 %v5334_v10, %v2567_v36 }
 0x232   :  { %3579 = vst [vmem:[%s5502_s4 + $0x80] sm:$0xff] %v3522_v12   ;;  %v2032_v53 = vmax.f32 %v5009_v51, %v1982_v61  ;;  %v1983_v15 = vmax.f32 %v1933_v40, 0.0 }
 0x233   :  { %v2667_v39 = vmax.f32 %v2617_v44, 0.0  ;;  %v1793_v23 = vpop.f32.mrb[172].mxu0  ;;  %v2477_v18 = vpop.f32.mrb[172].mxu1 }
 0x234   :  { %v2716_v17 = vmax.f32 %v2032_v53, %v2666_v9  ;;  %v2033_v59 = vmax.f32 %v5011_v4, %v1983_v15  ;;  %v1884_v60 = vmul.f32 %v5341_v16, %v1793_v23  ;;  %v2568_v33 = vmul.f32 %v5341_v16, %v2477_v18  ;;  %v3972_v26 = vpop.f32.mrb[173].mxu0  ;;  %v4074_v25 = vpop.f32.mrb[173].mxu1 }
 0x235   :  { %v1796_v19 = vpop.f32.mrb[174].mxu0  ;;  %v2480_v35 = vpop.f32.mrb[174].mxu1 }
 0x236   :  { %v2717_v47 = vmax.f32 %v2033_v59, %v2667_v39  ;;  %v1934_v34 = vadd.f32 %v5334_v10, %v1884_v60  ;;  %v2618_v51 = vadd.f32 %v5334_v10, %v2568_v33  ;;  %v1885_v13 = vmul.f32 %v5341_v16, %v1796_v19  ;;  %v3973_v30 = vpop.f32.mrb[175].mxu0  ;;  %v4075_v49 = vpop.f32.mrb[175].mxu1 }
 0x237   :  { %v2569_v14 = vmul.f32 %v5341_v16, %v2480_v35 }
 0x238   :  { %v3527_v4 = vpack.c.bf16 %v2717_v47, %v2716_v17  ;;  %v1984_v41 = vmax.f32 %v1934_v34, 0.0  ;;  %v2668_v58 = vmax.f32 %v2618_v51, 0.0  ;;  %v1935_v52 = vadd.f32 %v5334_v10, %v1885_v13 }
 0x239   :  { %v2619_v43 = vadd.f32 %v5334_v10, %v2569_v14 }
 0x23a   :  { %3580 = vst [vmem:[%s5502_s4 + $0x88] sm:$0xff] %v3527_v4   ;;  %v2034_v22 = vmax.f32 %v5043_v46, %v1984_v41  ;;  %v1985_v56 = vmax.f32 %v1935_v52, 0.0 }
 0x23b   :  { %v2669_v54 = vmax.f32 %v2619_v43, 0.0  ;;  %v1801_v32 = vpop.f32.mrb[176].mxu0  ;;  %v2485_v6 = vpop.f32.mrb[176].mxu1 }
 0x23c   :  { %v2718_v62 = vmax.f32 %v2034_v22, %v2668_v58  ;;  %v2035_v2 = vmax.f32 %v5045_v63, %v1985_v56  ;;  %v1886_v24 = vmul.f32 %v5341_v16, %v1801_v32  ;;  %v2570_v42 = vmul.f32 %v5341_v16, %v2485_v6  ;;  %v3976_v38 = vpop.f32.mrb[177].mxu0  ;;  %v4078_v37 = vpop.f32.mrb[177].mxu1 }
 0x23d   :  { %v1804_v57 = vpop.f32.mrb[178].mxu0  ;;  %v2488_v48 = vpop.f32.mrb[178].mxu1 }
 0x23e   :  { %v2719_v21 = vmax.f32 %v2035_v2, %v2669_v54  ;;  %v1936_v20 = vadd.f32 %v5334_v10, %v1886_v24  ;;  %v2620_v46 = vadd.f32 %v5334_v10, %v2570_v42  ;;  %v1887_v11 = vmul.f32 %v5341_v16, %v1804_v57  ;;  %v3977_v0 = vpop.f32.mrb[179].mxu0  ;;  %v4079_v5 = vpop.f32.mrb[179].mxu1 }
 0x23f   :  { %v2571_v55 = vmul.f32 %v5341_v16, %v2488_v48 }
 0x240   :  { %v3532_v63 = vpack.c.bf16 %v2719_v21, %v2718_v62  ;;  %v1986_v27 = vmax.f32 %v1936_v20, 0.0  ;;  %v2670_v3 = vmax.f32 %v2620_v46, 0.0  ;;  %v1937_v29 = vadd.f32 %v5334_v10, %v1887_v11 }
 0x241   :  { %v2621_v31 = vadd.f32 %v5334_v10, %v2571_v55 }
 0x242   :  { %3581 = vst [vmem:[%s5502_s4 + $0x90] sm:$0xff] %v3532_v63   ;;  %v2036_v28 = vmax.f32 %v5067_v45, %v1986_v27  ;;  %v1987_v36 = vmax.f32 %v1937_v29, 0.0  ;;  %v5510_v63 = vld [vmem:[#allocation2_spill] sm:$0xff] }
 0x243   :  { %v2671_v12 = vmax.f32 %v2621_v31, 0.0  ;;  %v1809_v61 = vpop.f32.mrb[180].mxu0  ;;  %v2493_v9 = vpop.f32.mrb[180].mxu1 }
 0x244   :  { %v2720_v40 = vmax.f32 %v2036_v28, %v2670_v3  ;;  %v2037_v44 = vmax.f32 %v5069_v1, %v1987_v36  ;;  %v1888_v53 = vmul.f32 %v5341_v16, %v1809_v61  ;;  %v2572_v15 = vmul.f32 %v5341_v16, %v2493_v9  ;;  %v3980_v39 = vpop.f32.mrb[181].mxu0  ;;  %v4082_v23 = vpop.f32.mrb[181].mxu1 }
 0x245   :  { %v1812_v18 = vpop.f32.mrb[182].mxu0  ;;  %v2496_v17 = vpop.f32.mrb[182].mxu1 }
 0x246   :  { %v2721_v59 = vmax.f32 %v2037_v44, %v2671_v12  ;;  %v1938_v60 = vadd.f32 %v5334_v10, %v1888_v53  ;;  %v2622_v45 = vadd.f32 %v5334_v10, %v2572_v15  ;;  %v1889_v33 = vmul.f32 %v5341_v16, %v1812_v18  ;;  %v3981_v26 = vpop.f32.mrb[183].mxu0  ;;  %v4083_v25 = vpop.f32.mrb[183].mxu1 }
 0x247   :  { %v2573_v19 = vmul.f32 %v5341_v16, %v2496_v17 }
 0x248   :  { %v3537_v1 = vpack.c.bf16 %v2721_v59, %v2720_v40  ;;  %v1988_v35 = vmax.f32 %v1938_v60, 0.0  ;;  %v2672_v47 = vmax.f32 %v2622_v45, 0.0  ;;  %v1939_v34 = vadd.f32 %v5334_v10, %v1889_v33  ;;  %v5511_v60 = vld [vmem:[#allocation3_spill] sm:$0xff] }
 0x249   :  { %v2623_v51 = vadd.f32 %v5334_v10, %v2573_v19 }
 0x24a   :  { %3582 = vst [vmem:[%s5502_s4 + $0x98] sm:$0xff] %v3537_v1   ;;  %v2038_v13 = vmax.f32 %v5091_v50, %v1988_v35  ;;  %v1989_v30 = vmax.f32 %v1939_v34, 0.0  ;;  %v5512_v35 = vld [vmem:[#allocation4_spill] sm:$0xff] }
 0x24b   :  { %v2673_v49 = vmax.f32 %v2623_v51, 0.0  ;;  %v1817_v14 = vpop.f32.mrb[184].mxu0  ;;  %v2501_v4 = vpop.f32.mrb[184].mxu1 }
 0x24c   :  { %v2722_v41 = vmax.f32 %v2038_v13, %v2672_v47  ;;  %v2039_v58 = vmax.f32 %v5093_v8, %v1989_v30  ;;  %v1890_v52 = vmul.f32 %v5341_v16, %v1817_v14  ;;  %v2574_v43 = vmul.f32 %v5341_v16, %v2501_v4  ;;  %v3984_v22 = vpop.f32.mrb[185].mxu0  ;;  %v4086_v56 = vpop.f32.mrb[185].mxu1 }
 0x24d   :  { %v1820_v54 = vpop.f32.mrb[186].mxu0  ;;  %v2504_v32 = vpop.f32.mrb[186].mxu1 }
 0x24e   :  { %v2723_v6 = vmax.f32 %v2039_v58, %v2673_v49  ;;  %v1940_v62 = vadd.f32 %v5334_v10, %v1890_v52  ;;  %v2624_v50 = vadd.f32 %v5334_v10, %v2574_v43  ;;  %v1891_v2 = vmul.f32 %v5341_v16, %v1820_v54  ;;  %v3985_v24 = vpop.f32.mrb[187].mxu0  ;;  %v4087_v42 = vpop.f32.mrb[187].mxu1 }
 0x24f   :  { %v2575_v38 = vmul.f32 %v5341_v16, %v2504_v32 }
 0x250   :  { %v3542_v8 = vpack.c.bf16 %v2723_v6, %v2722_v41  ;;  %v1990_v37 = vmax.f32 %v1940_v62, 0.0  ;;  %v2674_v57 = vmax.f32 %v2624_v50, 0.0  ;;  %v1941_v48 = vadd.f32 %v5334_v10, %v1891_v2  ;;  %v5513_v2 = vld [vmem:[#allocation5_spill] sm:$0xff] }
 0x251   :  { %v2625_v21 = vadd.f32 %v5334_v10, %v2575_v38 }
 0x252   :  { %3583 = vst [vmem:[%s5502_s4 + $0xa0] sm:$0xff] %v3542_v8   ;;  %v2040_v20 = vmax.f32 %v5115_v7, %v1990_v37  ;;  %v1991_v46 = vmax.f32 %v1941_v48, 0.0  ;;  %v5514_v48 = vld [vmem:[#allocation6_spill] sm:$0xff] }
 0x253   :  { %v2675_v11 = vmax.f32 %v2625_v21, 0.0  ;;  %v1825_v0 = vpop.f32.mrb[188].mxu0  ;;  %v2509_v5 = vpop.f32.mrb[188].mxu1 }
 0x254   :  { %v2724_v55 = vmax.f32 %v2040_v20, %v2674_v57  ;;  %v2041_v27 = vmax.f32 %v5510_v63, %v1991_v46  ;;  %v1892_v3 = vmul.f32 %v5341_v16, %v1825_v0  ;;  %v2576_v29 = vmul.f32 %v5341_v16, %v2509_v5  ;;  %v3988_v31 = vpop.f32.mrb[189].mxu0  ;;  %v4090_v28 = vpop.f32.mrb[189].mxu1 }
 0x255   :  { %v1828_v36 = vpop.f32.mrb[190].mxu0  ;;  %v2512_v12 = vpop.f32.mrb[190].mxu1 }
 0x256   :  { %v2725_v61 = vmax.f32 %v2041_v27, %v2675_v11  ;;  %v1942_v9 = vadd.f32 %v5334_v10, %v1892_v3  ;;  %v2626_v7 = vadd.f32 %v5334_v10, %v2576_v29  ;;  %v1893_v40 = vmul.f32 %v5341_v16, %v1828_v36  ;;  %v3989_v44 = vpop.f32.mrb[191].mxu0  ;;  %v4091_v53 = vpop.f32.mrb[191].mxu1 }
 0x257   :  { %v2577_v15 = vmul.f32 %v5341_v16, %v2512_v12  ;;  %v5515_v44 = vld [vmem:[#allocation7_spill] sm:$0xff] }
 0x258   :  { %v3547_v39 = vpack.c.bf16 %v2725_v61, %v2724_v55  ;;  %v1992_v23 = vmax.f32 %v1942_v9, 0.0  ;;  %v2676_v18 = vmax.f32 %v2626_v7, 0.0  ;;  %v1943_v17 = vadd.f32 %v5334_v10, %v1893_v40 }
 0x259   :  { %v2627_v59 = vadd.f32 %v5334_v10, %v2577_v15 }
 0x25a   :  { %3584 = vst [vmem:[%s5502_s4 + $0xa8] sm:$0xff] %v3547_v39   ;;  %v2042_v45 = vmax.f32 %v5511_v60, %v1992_v23  ;;  %v1993_v33 = vmax.f32 %v1943_v17, 0.0  ;;  %v5516_v23 = vld [vmem:[#allocation8_spill] sm:$0xff] }
 0x25b   :  { %v2677_v26 = vmax.f32 %v2627_v59, 0.0  ;;  %v1833_v25 = vpop.f32.mrb[192].mxu0  ;;  %v2517_v19 = vpop.f32.mrb[192].mxu1 }
 0x25c   :  { %v2726_v1 = vmax.f32 %v2042_v45, %v2676_v18  ;;  %v2043_v47 = vmax.f32 %v5512_v35, %v1993_v33  ;;  %v1894_v34 = vmul.f32 %v5341_v16, %v1833_v25  ;;  %v2578_v51 = vmul.f32 %v5341_v16, %v2517_v19  ;;  %v3992_v13 = vpop.f32.mrb[193].mxu0  ;;  %v4094_v30 = vpop.f32.mrb[193].mxu1 }
 0x25d   :  { %v1836_v49 = vpop.f32.mrb[194].mxu0  ;;  %v2520_v14 = vpop.f32.mrb[194].mxu1 }
 0x25e   :  { %v2727_v4 = vmax.f32 %v2043_v47, %v2677_v26  ;;  %v1944_v41 = vadd.f32 %v5334_v10, %v1894_v34  ;;  %v2628_v58 = vadd.f32 %v5334_v10, %v2578_v51  ;;  %v1895_v52 = vmul.f32 %v5341_v16, %v1836_v49  ;;  %v3993_v43 = vpop.f32.mrb[195].mxu0  ;;  %v4095_v22 = vpop.f32.mrb[195].mxu1 }
 0x25f   :  { %v2579_v56 = vmul.f32 %v5341_v16, %v2520_v14 }
 0x260   :  { %v3552_v54 = vpack.c.bf16 %v2727_v4, %v2726_v1  ;;  %v1994_v32 = vmax.f32 %v1944_v41, 0.0  ;;  %v2678_v6 = vmax.f32 %v2628_v58, 0.0  ;;  %v1945_v62 = vadd.f32 %v5334_v10, %v1895_v52 }
 0x261   :  { %v2629_v50 = vadd.f32 %v5334_v10, %v2579_v56 }
 0x262   :  { %3585 = vst [vmem:[%s5502_s4 + $0xb0] sm:$0xff] %v3552_v54   ;;  %v2044_v24 = vmax.f32 %v5513_v2, %v1994_v32  ;;  %v1995_v42 = vmax.f32 %v1945_v62, 0.0 }
 0x263   :  { %v2679_v38 = vmax.f32 %v2629_v50, 0.0  ;;  %v1841_v8 = vpop.f32.mrb[196].mxu0  ;;  %v2525_v37 = vpop.f32.mrb[196].mxu1 }
 0x264   :  { %v2728_v57 = vmax.f32 %v2044_v24, %v2678_v6  ;;  %v2045_v21 = vmax.f32 %v5514_v48, %v1995_v42  ;;  %v1896_v20 = vmul.f32 %v5341_v16, %v1841_v8  ;;  %v2580_v46 = vmul.f32 %v5341_v16, %v2525_v37  ;;  %v3996_v11 = vpop.f32.mrb[197].mxu0  ;;  %v4098_v0 = vpop.f32.mrb[197].mxu1 }
 0x265   :  { %v1844_v5 = vpop.f32.mrb[198].mxu0  ;;  %v2528_v55 = vpop.f32.mrb[198].mxu1 }
 0x266   :  { %v2729_v63 = vmax.f32 %v2045_v21, %v2679_v38  ;;  %v1946_v27 = vadd.f32 %v5334_v10, %v1896_v20  ;;  %v2630_v3 = vadd.f32 %v5334_v10, %v2580_v46  ;;  %v1897_v29 = vmul.f32 %v5341_v16, %v1844_v5  ;;  %v3997_v31 = vpop.f32.mrb[199].mxu0  ;;  %v4099_v28 = vpop.f32.mrb[199].mxu1 }
 0x267   :  { %v2581_v36 = vmul.f32 %v5341_v16, %v2528_v55 }
 0x268   :  { %v3557_v12 = vpack.c.bf16 %v2729_v63, %v2728_v57  ;;  %v1996_v61 = vmax.f32 %v1946_v27, 0.0  ;;  %v2680_v9 = vmax.f32 %v2630_v3, 0.0  ;;  %v1947_v7 = vadd.f32 %v5334_v10, %v1897_v29 }
 0x269   :  { %v2631_v40 = vadd.f32 %v5334_v10, %v2581_v36 }
 0x26a   :  { %3586 = vst [vmem:[%s5502_s4 + $0xb8] sm:$0xff] %v3557_v12   ;;  %v2046_v53 = vmax.f32 %v5515_v44, %v1996_v61  ;;  %v1997_v15 = vmax.f32 %v1947_v7, 0.0 }
 0x26b   :  { %v2681_v17 = vmax.f32 %v2631_v40, 0.0 }
 0x26c   :  { %v2730_v39 = vmax.f32 %v2046_v53, %v2680_v9  ;;  %v2047_v18 = vmax.f32 %v5516_v23, %v1997_v15 }
 0x26e   :  { %v2731_v59 = vmax.f32 %v2047_v18, %v2681_v17 }
 0x270   :  { %v3562_v16 = vpack.c.bf16 %v2731_v59, %v2730_v39 }
 0x272   :  { %3587 = vst [vmem:[%s5502_s4 + $0xc0] sm:$0xff] %v3562_v16  }

// kernel: cnn_forward.4
= control target key start
LH: loop header
LB: loop body
LE: loop exit
PB: predicated region body
PF: predicated region fallthrough
CT: control target
= control target key end

     0   :  { %v1424_v0 = vmov 0   ;;  %vm197_vm0 = vcmask 588800   ;;  %vm219_vm1 = vcmask 1043456   ;;  %s2084_s1 = inlined_call_operand.vmem [shape: bf16[200,128], index: 1, kind: input, shape index: {}]   ;;  %s2085_s0 = inlined_call_operand.vmem [shape: bf16[4,112,200], index: 0, kind: input, shape index: {}]   ;;  %s2086_s2 = inlined_call_operand.vmem [shape: f32[1,128], index: 2, kind: input, shape index: {}]   ;;  %s2087_s3 = inlined_call_operand.vmem [shape: f32[1,128], index: 3, kind: input, shape index: {}]   ;;  %s2088_s4 = inlined_call_operand.vmem [shape: bf16[112,128], index: 4, kind: output, shape index: {}]  }
   0x1   :  { %223 = vmatprep.subr.bf16.mxu0 %v1424_v0  ;;  %451 = vmatprep.subr.bf16.mxu1 %v1424_v0  ;;  %v1455_v1 = vld [vmem:[%s2084_s1] sm:$0xff]   ;;  %v1462_v2 = vld [vmem:[%s2084_s1 + $0x8] sm:$0xff]   ;;  %v1471_v3 = vld [vmem:[%s2084_s1 + $0x10] sm:$0xff]  }
   0x2   :  { %224 = vmatpush1.bf16.msra.mxu0 %v1455_v1  ;;  %452 = vmatpush1.bf16.msra.mxu1 %v1455_v1  ;;  %v1480_v4 = vld [vmem:[%s2084_s1 + $0x18] sm:$0xff]   ;;  %v1342_v5 = vld [vmem:[%s2085_s0 + $0x4] ss:$8 sps:$4 sm:$0xff]   ;;  %v1515_v9 = vld [vmem:[%s2084_s1 + $0x30] sm:$0xff]  }
   0x3   :  { %225 = vmatprep.subr.bf16.mxu0 %v1424_v0  ;;  %453 = vmatprep.subr.bf16.mxu1 %v1424_v0  ;;  %v1492_v6 = vld [vmem:[%s2084_s1 + $0x20] sm:$0xff]   ;;  %v1345_v7 = vld [vmem:[%s2085_s0 + $0x74] ss:$8 sps:$4 sm:$0xff]   ;;  %v1506_v8 = vld [vmem:[%s2084_s1 + $0x28] sm:$0xff]  }
   0x4   :  { %1143 = vmatprep.mubr.msk.bf16.mxu0 %vm197_vm0, %v1342_v5  ;;  %1180 = vmatprep.mubr.msk.bf16.mxu1 %vm197_vm0, %v1345_v7  ;;  %v1524_v10 = vld [vmem:[%s2084_s1 + $0x38] sm:$0xff]   ;;  %v1533_v11 = vld [vmem:[%s2084_s1 + $0x40] sm:$0xff]   ;;  %v1542_v12 = vld [vmem:[%s2084_s1 + $0x48] sm:$0xff]  }
   0x5   :  { %v1551_v13 = vld [vmem:[%s2084_s1 + $0x50] sm:$0xff]   ;;  %v1560_v14 = vld [vmem:[%s2084_s1 + $0x58] sm:$0xff]   ;;  %v1339_v15 = vld [vmem:[%s2084_s1 + $0x60] ss:$0 sps:$4 sm:$0xff]  }
   0x6   :  { %226 = vmatpush1.bf16.msra.mxu0 %v1462_v2  ;;  %454 = vmatpush1.bf16.msra.mxu1 %v1462_v2  ;;  %v1571_v16 = vsel %vm219_vm1, %v1339_v15, 0  ;;  %v1340_v17 = vld [vmem:[%s2085_s0] ss:$8 sps:$4 sm:$0xff]   ;;  %v1343_v18 = vld [vmem:[%s2085_s0 + $0x70] ss:$8 sps:$4 sm:$0xff]  }
   0x7   :  { %227 = vmatprep.subr.bf16.mxu0 %v1424_v0  ;;  %455 = vmatprep.subr.bf16.mxu1 %v1424_v0  ;;  %v1346_v19 = vld [vmem:[%s2085_s0 + $0x14] ss:$8 sps:$4 sm:$0xff]   ;;  %v1348_v20 = vld [vmem:[%s2085_s0 + $0x84] ss:$8 sps:$4 sm:$0xff]   ;;  %v1350_v21 = vld [vmem:[%s2085_s0 + $0x10] ss:$8 sps:$4 sm:$0xff]  }
   0x8   :  { %v1351_v22 = vld [vmem:[%s2085_s0 + $0x80] ss:$8 sps:$4 sm:$0xff]   ;;  %v1352_v23 = vld [vmem:[%s2085_s0 + $0x24] ss:$8 sps:$4 sm:$0xff]   ;;  %v1354_v24 = vld [vmem:[%s2085_s0 + $0x94] ss:$8 sps:$4 sm:$0xff]  }
   0x9   :  { %v1356_v25 = vld [vmem:[%s2085_s0 + $0x20] ss:$8 sps:$4 sm:$0xff]   ;;  %v1357_v26 = vld [vmem:[%s2085_s0 + $0x90] ss:$8 sps:$4 sm:$0xff]   ;;  %v1358_v27 = vld [vmem:[%s2085_s0 + $0x34] ss:$8 sps:$4 sm:$0xff]  }
   0xa   :  { %228 = vmatpush1.bf16.msra.mxu0 %v1471_v3  ;;  %456 = vmatpush1.bf16.msra.mxu1 %v1471_v3  ;;  %v1360_v28 = vld [vmem:[%s2085_s0 + $0xa4] ss:$8 sps:$4 sm:$0xff]   ;;  %v1362_v29 = vld [vmem:[%s2085_s0 + $0x30] ss:$8 sps:$4 sm:$0xff]   ;;  %v1363_v30 = vld [vmem:[%s2085_s0 + $0xa0] ss:$8 sps:$4 sm:$0xff]  }
   0xb   :  { %229 = vmatprep.subr.bf16.mxu0 %v1424_v0  ;;  %457 = vmatprep.subr.bf16.mxu1 %v1424_v0  ;;  %v1364_v31 = vld [vmem:[%s2085_s0 + $0x44] ss:$8 sps:$4 sm:$0xff]   ;;  %v1366_v32 = vld [vmem:[%s2085_s0 + $0xb4] ss:$8 sps:$4 sm:$0xff]   ;;  %v1368_v33 = vld [vmem:[%s2085_s0 + $0x40] ss:$8 sps:$4 sm:$0xff]  }
   0xc   :  { %v1369_v34 = vld [vmem:[%s2085_s0 + $0xb0] ss:$8 sps:$4 sm:$0xff]   ;;  %v1370_v35 = vld [vmem:[%s2085_s0 + $0x54] ss:$8 sps:$4 sm:$0xff]   ;;  %v1372_v36 = vld [vmem:[%s2085_s0 + $0xc4] ss:$8 sps:$4 sm:$0xff]  }
   0xd   :  { %v1374_v37 = vld [vmem:[%s2085_s0 + $0x50] ss:$8 sps:$4 sm:$0xff]   ;;  %v1375_v38 = vld [vmem:[%s2085_s0 + $0xc0] ss:$8 sps:$4 sm:$0xff]   ;;  %v1376_v39 = vld [vmem:[%s2085_s0 + $0x64] ss:$8 sps:$4 sm:$0xff]  }
   0xe   :  { %230 = vmatpush1.bf16.msra.mxu0 %v1480_v4  ;;  %458 = vmatpush1.bf16.msra.mxu1 %v1480_v4  ;;  %v1378_v40 = vld [vmem:[%s2085_s0 + $0xd4] ss:$8 sps:$4 sm:$0xff]   ;;  %v1380_v41 = vld [vmem:[%s2085_s0 + $0x60] ss:$8 sps:$4 sm:$0xff]   ;;  %v1381_v42 = vld [vmem:[%s2085_s0 + $0xd0] ss:$8 sps:$4 sm:$0xff]  }
   0xf   :  { %231 = vmatprep.subr.bf16.mxu0 %v1424_v0  ;;  %459 = vmatprep.subr.bf16.mxu1 %v1424_v0  ;;  %v1384_v43 = vld [vmem:[%s2085_s0 + $0xe4] ss:$8 sps:$4 sm:$0xff]   ;;  %v1387_v44 = vld [vmem:[%s2085_s0 + $0x154] ss:$8 sps:$4 sm:$0xff]   ;;  %v1382_v45 = vld [vmem:[%s2085_s0 + $0xe0] ss:$8 sps:$4 sm:$0xff]  }
  0x10   :  { %v1385_v46 = vld [vmem:[%s2085_s0 + $0x150] ss:$8 sps:$4 sm:$0xff]   ;;  %v1388_v47 = vld [vmem:[%s2085_s0 + $0xf4] ss:$8 sps:$4 sm:$0xff]   ;;  %v1390_v48 = vld [vmem:[%s2085_s0 + $0x164] ss:$8 sps:$4 sm:$0xff]  }
  0x11   :  { %v1392_v49 = vld [vmem:[%s2085_s0 + $0xf0] ss:$8 sps:$4 sm:$0xff]   ;;  %v1393_v50 = vld [vmem:[%s2085_s0 + $0x160] ss:$8 sps:$4 sm:$0xff]   ;;  %v1394_v51 = vld [vmem:[%s2085_s0 + $0x104] ss:$8 sps:$4 sm:$0xff]  }
  0x12   :  { %232 = vmatpush1.bf16.msra.mxu0 %v1492_v6  ;;  %460 = vmatpush1.bf16.msra.mxu1 %v1492_v6  ;;  %v1396_v52 = vld [vmem:[%s2085_s0 + $0x174] ss:$8 sps:$4 sm:$0xff]   ;;  %v1398_v53 = vld [vmem:[%s2085_s0 + $0x100] ss:$8 sps:$4 sm:$0xff]   ;;  %v1399_v54 = vld [vmem:[%s2085_s0 + $0x170] ss:$8 sps:$4 sm:$0xff]  }
  0x13   :  { %233 = vmatprep.subr.bf16.mxu0 %v1424_v0  ;;  %461 = vmatprep.subr.bf16.mxu1 %v1424_v0  ;;  %v1400_v55 = vld [vmem:[%s2085_s0 + $0x114] ss:$8 sps:$4 sm:$0xff]   ;;  %v1402_v56 = vld [vmem:[%s2085_s0 + $0x184] ss:$8 sps:$4 sm:$0xff]   ;;  %v1404_v57 = vld [vmem:[%s2085_s0 + $0x110] ss:$8 sps:$4 sm:$0xff]  }
  0x14   :  { %v1405_v58 = vld [vmem:[%s2085_s0 + $0x180] ss:$8 sps:$4 sm:$0xff]   ;;  %v1406_v59 = vld [vmem:[%s2085_s0 + $0x124] ss:$8 sps:$4 sm:$0xff]   ;;  %v1408_v60 = vld [vmem:[%s2085_s0 + $0x194] ss:$8 sps:$4 sm:$0xff]  }
  0x15   :  { %v1410_v61 = vld [vmem:[%s2085_s0 + $0x120] ss:$8 sps:$4 sm:$0xff]   ;;  %v1411_v62 = vld [vmem:[%s2085_s0 + $0x190] ss:$8 sps:$4 sm:$0xff]   ;;  %v1412_v63 = vld [vmem:[%s2085_s0 + $0x134] ss:$8 sps:$4 sm:$0xff]  }
  0x16   :  { %234 = vmatpush1.bf16.msra.mxu0 %v1506_v8  ;;  %462 = vmatpush1.bf16.msra.mxu1 %v1506_v8  ;;  %v1422_v5 = vld [vmem:[%s2085_s0 + $0x140] ss:$8 sps:$4 sm:$0xff]  }
  0x17   :  { %235 = vmatprep.subr.bf16.mxu0 %v1424_v0  ;;  %463 = vmatprep.subr.bf16.mxu1 %v1424_v0  ;;  %v1818_v7 = vld [vmem:[%s2086_s2] ss:$0 sm:$0xff] }
  0x1a   :  { %236 = vmatpush1.bf16.msra.mxu0 %v1515_v9  ;;  %464 = vmatpush1.bf16.msra.mxu1 %v1515_v9 }
  0x1b   :  { %237 = vmatprep.subr.bf16.mxu0 %v1424_v0  ;;  %465 = vmatprep.subr.bf16.mxu1 %v1424_v0 }
  0x1e   :  { %238 = vmatpush1.bf16.msra.mxu0 %v1524_v10  ;;  %466 = vmatpush1.bf16.msra.mxu1 %v1524_v10 }
  0x1f   :  { %239 = vmatprep.subr.bf16.mxu0 %v1424_v0  ;;  %467 = vmatprep.subr.bf16.mxu1 %v1424_v0 }
  0x22   :  { %240 = vmatpush1.bf16.msra.mxu0 %v1533_v11  ;;  %468 = vmatpush1.bf16.msra.mxu1 %v1533_v11 }
  0x23   :  { %241 = vmatprep.subr.bf16.mxu0 %v1424_v0  ;;  %469 = vmatprep.subr.bf16.mxu1 %v1424_v0 }
  0x26   :  { %242 = vmatpush1.bf16.msra.mxu0 %v1542_v12  ;;  %470 = vmatpush1.bf16.msra.mxu1 %v1542_v12 }
  0x27   :  { %243 = vmatprep.subr.bf16.mxu0 %v1424_v0  ;;  %471 = vmatprep.subr.bf16.mxu1 %v1424_v0 }
  0x2a   :  { %244 = vmatpush1.bf16.msra.mxu0 %v1551_v13  ;;  %472 = vmatpush1.bf16.msra.mxu1 %v1551_v13 }
  0x2b   :  { %245 = vmatprep.subr.bf16.mxu0 %v1424_v0  ;;  %473 = vmatprep.subr.bf16.mxu1 %v1424_v0 }
  0x2e   :  { %246 = vmatpush1.bf16.msra.mxu0 %v1560_v14  ;;  %474 = vmatpush1.bf16.msra.mxu1 %v1560_v14 }
  0x2f   :  { %247 = vmatprep.subr.bf16.mxu0 %v1424_v0  ;;  %475 = vmatprep.subr.bf16.mxu1 %v1424_v0 }
  0x32   :  { %248 = vmatpush1.bf16.msra.mxu0 %v1571_v16  ;;  %476 = vmatpush1.bf16.msra.mxu1 %v1571_v16 }
  0x33   :  { %681 = vmatprep.subr.bf16.mxu0 %v1424_v0  ;;  %911 = vmatprep.subr.bf16.mxu1 %v1424_v0 }
  0x35   :  { %256 = vmatmul.mubr.bf16.vlgmr.msra.gmra.mrb[0].mxu0 %v1340_v17  ;;  %484 = vmatmul.mubr.bf16.vlgmr.msra.gmra.mrb[0].mxu1 %v1343_v18 }
  0x36   :  { %682 = vmatpush1.bf16.msra.mxu0 %v1455_v1  ;;  %912 = vmatpush1.bf16.msra.mxu1 %v1455_v1  ;;  %v1416_v1 = vld [vmem:[%s2085_s0 + $0x130] ss:$8 sps:$4 sm:$0xff]  }
  0x37   :  { %683 = vmatprep.subr.bf16.mxu0 %v1424_v0  ;;  %1144 = vmatprep.mubr.msk.bf16.mxu0 %vm197_vm0, %v1346_v19 }
  0x38   :  { %1181 = vmatprep.mubr.msk.bf16.mxu1 %vm197_vm0, %v1348_v20  ;;  %913 = vmatprep.subr.bf16.mxu1 %v1424_v0 }
  0x3a   :  { %684 = vmatpush1.bf16.msra.mxu0 %v1462_v2  ;;  %914 = vmatpush1.bf16.msra.mxu1 %v1462_v2  ;;  %v1417_v2 = vld [vmem:[%s2085_s0 + $0x1a0] ss:$8 sps:$4 sm:$0xff]  }
  0x3b   :  { %685 = vmatprep.subr.bf16.mxu0 %v1424_v0  ;;  %915 = vmatprep.subr.bf16.mxu1 %v1424_v0 }
  0x3d   :  { %264 = vmatmul.mubr.bf16.gmra.mrb[4].mxu0 %v1350_v21  ;;  %492 = vmatmul.mubr.bf16.gmra.mrb[4].mxu1 %v1351_v22 }
  0x3e   :  { %686 = vmatpush1.bf16.msra.mxu0 %v1471_v3  ;;  %916 = vmatpush1.bf16.msra.mxu1 %v1471_v3  ;;  %v1418_v3 = vld [vmem:[%s2085_s0 + $0x144] ss:$8 sps:$4 sm:$0xff]  }
  0x3f   :  { %687 = vmatprep.subr.bf16.mxu0 %v1424_v0  ;;  %1145 = vmatprep.mubr.msk.bf16.mxu0 %vm197_vm0, %v1352_v23 }
  0x40   :  { %1182 = vmatprep.mubr.msk.bf16.mxu1 %vm197_vm0, %v1354_v24  ;;  %917 = vmatprep.subr.bf16.mxu1 %v1424_v0 }
  0x42   :  { %688 = vmatpush1.bf16.msra.mxu0 %v1480_v4  ;;  %918 = vmatpush1.bf16.msra.mxu1 %v1480_v4  ;;  %v1420_v4 = vld [vmem:[%s2085_s0 + $0x1b4] ss:$8 sps:$4 sm:$0xff]  }
  0x43   :  { %689 = vmatprep.subr.bf16.mxu0 %v1424_v0  ;;  %919 = vmatprep.subr.bf16.mxu1 %v1424_v0 }
  0x45   :  { %272 = vmatmul.mubr.bf16.gmra.mrb[8].mxu0 %v1356_v25  ;;  %500 = vmatmul.mubr.bf16.gmra.mrb[8].mxu1 %v1357_v26 }
  0x46   :  { %690 = vmatpush1.bf16.msra.mxu0 %v1492_v6  ;;  %920 = vmatpush1.bf16.msra.mxu1 %v1492_v6  ;;  %v1423_v6 = vld [vmem:[%s2085_s0 + $0x1b0] ss:$8 sps:$4 sm:$0xff]  }
  0x47   :  { %691 = vmatprep.subr.bf16.mxu0 %v1424_v0  ;;  %1146 = vmatprep.mubr.msk.bf16.mxu0 %vm197_vm0, %v1358_v27 }
  0x48   :  { %1183 = vmatprep.mubr.msk.bf16.mxu1 %vm197_vm0, %v1360_v28  ;;  %921 = vmatprep.subr.bf16.mxu1 %v1424_v0 }
  0x4a   :  { %692 = vmatpush1.bf16.msra.mxu0 %v1506_v8  ;;  %922 = vmatpush1.bf16.msra.mxu1 %v1506_v8  ;;  %v1823_v8 = vld [vmem:[%s2087_s3] ss:$0 sm:$0xff] }
  0x4b   :  { %693 = vmatprep.subr.bf16.mxu0 %v1424_v0  ;;  %923 = vmatprep.subr.bf16.mxu1 %v1424_v0 }
  0x4d   :  { %280 = vmatmul.mubr.bf16.gmra.mrb[12].mxu0 %v1362_v29  ;;  %508 = vmatmul.mubr.bf16.gmra.mrb[12].mxu1 %v1363_v30 }
  0x4e   :  { %694 = vmatpush1.bf16.msra.mxu0 %v1515_v9  ;;  %924 = vmatpush1.bf16.msra.mxu1 %v1515_v9 }
  0x4f   :  { %1147 = vmatprep.mubr.msk.bf16.mxu0 %vm197_vm0, %v1364_v31  ;;  %1184 = vmatprep.mubr.msk.bf16.mxu1 %vm197_vm0, %v1366_v32 }
  0x50   :  { %695 = vmatprep.subr.bf16.mxu0 %v1424_v0  ;;  %925 = vmatprep.subr.bf16.mxu1 %v1424_v0 }
  0x52   :  { %696 = vmatpush1.bf16.msra.mxu0 %v1524_v10  ;;  %926 = vmatpush1.bf16.msra.mxu1 %v1524_v10 }
  0x53   :  { %697 = vmatprep.subr.bf16.mxu0 %v1424_v0  ;;  %927 = vmatprep.subr.bf16.mxu1 %v1424_v0 }
  0x55   :  { %288 = vmatmul.mubr.bf16.gmra.mrb[16].mxu0 %v1368_v33  ;;  %516 = vmatmul.mubr.bf16.gmra.mrb[16].mxu1 %v1369_v34 }
  0x56   :  { %698 = vmatpush1.bf16.msra.mxu0 %v1533_v11  ;;  %928 = vmatpush1.bf16.msra.mxu1 %v1533_v11 }
  0x57   :  { %1148 = vmatprep.mubr.msk.bf16.mxu0 %vm197_vm0, %v1370_v35  ;;  %1185 = vmatprep.mubr.msk.bf16.mxu1 %vm197_vm0, %v1372_v36 }
  0x58   :  { %699 = vmatprep.subr.bf16.mxu0 %v1424_v0  ;;  %929 = vmatprep.subr.bf16.mxu1 %v1424_v0 }
  0x5a   :  { %700 = vmatpush1.bf16.msra.mxu0 %v1542_v12  ;;  %930 = vmatpush1.bf16.msra.mxu1 %v1542_v12 }
  0x5b   :  { %701 = vmatprep.subr.bf16.mxu0 %v1424_v0  ;;  %931 = vmatprep.subr.bf16.mxu1 %v1424_v0 }
  0x5d   :  { %296 = vmatmul.mubr.bf16.gmra.mrb[20].mxu0 %v1374_v37  ;;  %524 = vmatmul.mubr.bf16.gmra.mrb[20].mxu1 %v1375_v38 }
  0x5e   :  { %702 = vmatpush1.bf16.msra.mxu0 %v1551_v13  ;;  %932 = vmatpush1.bf16.msra.mxu1 %v1551_v13 }
  0x5f   :  { %1149 = vmatprep.mubr.msk.bf16.mxu0 %vm197_vm0, %v1376_v39  ;;  %1186 = vmatprep.mubr.msk.bf16.mxu1 %vm197_vm0, %v1378_v40 }
  0x60   :  { %703 = vmatprep.subr.bf16.mxu0 %v1424_v0  ;;  %933 = vmatprep.subr.bf16.mxu1 %v1424_v0 }
  0x62   :  { %704 = vmatpush1.bf16.msra.mxu0 %v1560_v14  ;;  %934 = vmatpush1.bf16.msra.mxu1 %v1560_v14 }
  0x63   :  { %705 = vmatprep.subr.bf16.mxu0 %v1424_v0  ;;  %935 = vmatprep.subr.bf16.mxu1 %v1424_v0  ;;  %v1414_v0 = vld [vmem:[%s2085_s0 + $0x1a4] ss:$8 sps:$4 sm:$0xff]  }
  0x65   :  { %304 = vmatmul.mubr.bf16.gmra.mrb[24].mxu0 %v1380_v41  ;;  %532 = vmatmul.mubr.bf16.gmra.mrb[24].mxu1 %v1381_v42 }
  0x66   :  { %706 = vmatpush1.bf16.msra.mxu0 %v1571_v16  ;;  %936 = vmatpush1.bf16.msra.mxu1 %v1571_v16 }
  0x67   :  { %1215 = vmatprep.mubr.msk.bf16.mxu0 %vm197_vm0, %v1384_v43  ;;  %1250 = vmatprep.mubr.msk.bf16.mxu1 %vm197_vm0, %v1387_v44 }
  0x6d   :  { %714 = vmatmul.mubr.bf16.vlgmr.msra.gmra.mrb[28].mxu0 %v1382_v45  ;;  %944 = vmatmul.mubr.bf16.vlgmr.msra.gmra.mrb[28].mxu1 %v1385_v46 }
  0x6e   :  { %1216 = vmatprep.mubr.msk.bf16.mxu0 %vm197_vm0, %v1388_v47  ;;  %1251 = vmatprep.mubr.msk.bf16.mxu1 %vm197_vm0, %v1390_v48 }
  0x75   :  { %722 = vmatmul.mubr.bf16.gmra.mrb[32].mxu0 %v1392_v49  ;;  %952 = vmatmul.mubr.bf16.gmra.mrb[32].mxu1 %v1393_v50 }
  0x76   :  { %1217 = vmatprep.mubr.msk.bf16.mxu0 %vm197_vm0, %v1394_v51  ;;  %1252 = vmatprep.mubr.msk.bf16.mxu1 %vm197_vm0, %v1396_v52 }
  0x7d   :  { %730 = vmatmul.mubr.bf16.gmra.mrb[36].mxu0 %v1398_v53  ;;  %960 = vmatmul.mubr.bf16.gmra.mrb[36].mxu1 %v1399_v54 }
  0x7e   :  { %1218 = vmatprep.mubr.msk.bf16.mxu0 %vm197_vm0, %v1400_v55  ;;  %1253 = vmatprep.mubr.msk.bf16.mxu1 %vm197_vm0, %v1402_v56 }
  0x85   :  { %738 = vmatmul.mubr.bf16.gmra.mrb[40].mxu0 %v1404_v57  ;;  %968 = vmatmul.mubr.bf16.gmra.mrb[40].mxu1 %v1405_v58 }
  0x86   :  { %1219 = vmatprep.mubr.msk.bf16.mxu0 %vm197_vm0, %v1406_v59  ;;  %1254 = vmatprep.mubr.msk.bf16.mxu1 %vm197_vm0, %v1408_v60 }
  0x8d   :  { %746 = vmatmul.mubr.bf16.gmra.mrb[44].mxu0 %v1410_v61  ;;  %976 = vmatmul.mubr.bf16.gmra.mrb[44].mxu1 %v1411_v62 }
  0x8e   :  { %1220 = vmatprep.mubr.msk.bf16.mxu0 %vm197_vm0, %v1412_v63  ;;  %1255 = vmatprep.mubr.msk.bf16.mxu1 %vm197_vm0, %v1414_v0 }
  0x95   :  { %754 = vmatmul.mubr.bf16.gmra.mrb[48].mxu0 %v1416_v1  ;;  %984 = vmatmul.mubr.bf16.gmra.mrb[48].mxu1 %v1417_v2 }
  0x96   :  { %1221 = vmatprep.mubr.msk.bf16.mxu0 %vm197_vm0, %v1418_v3  ;;  %1256 = vmatprep.mubr.msk.bf16.mxu1 %vm197_vm0, %v1420_v4 }
  0x9d   :  { %762 = vmatmul.mubr.bf16.gmra.mrb[52].mxu0 %v1422_v5  ;;  %992 = vmatmul.mubr.bf16.gmra.mrb[52].mxu1 %v1423_v6 }
 0x108   :  { %v257_v9 = vpop.f32.mrb[0].mxu0  ;;  %v485_v10 = vpop.f32.mrb[0].mxu1 }
 0x109   :  { %v318_v11 = vmul.f32 %v1818_v7, %v257_v9  ;;  %v540_v12 = vmul.f32 %v1818_v7, %v485_v10  ;;  %v259_v13 = vpop.f32.mrb[1].mxu0  ;;  %v487_v14 = vpop.f32.mrb[1].mxu1 }
 0x10a   :  { %v260_v15 = vpop.f32.mrb[2].mxu0  ;;  %v488_v16 = vpop.f32.mrb[2].mxu1 }
 0x10b   :  { %v1828_v17 = vadd.f32 %v1823_v8, %v318_v11  ;;  %v1831_v18 = vadd.f32 %v1823_v8, %v540_v12  ;;  %v319_v19 = vmul.f32 %v1818_v7, %v260_v15  ;;  %v541_v20 = vmul.f32 %v1818_v7, %v488_v16  ;;  %v262_v21 = vpop.f32.mrb[3].mxu0  ;;  %v490_v22 = vpop.f32.mrb[3].mxu1 }
 0x10d   :  { %v568_v23 = vmax.f32 %v1828_v17, %v1831_v18  ;;  %v1838_v24 = vadd.f32 %v1823_v8, %v319_v19  ;;  %v1841_v25 = vadd.f32 %v1823_v8, %v541_v20 }
 0x10f   :  { %v569_v26 = vmax.f32 %v1838_v24, %v1841_v25 }
 0x110   :  { %v265_v27 = vpop.f32.mrb[4].mxu0  ;;  %v493_v28 = vpop.f32.mrb[4].mxu1 }
 0x111   :  { %v320_v29 = vmul.f32 %v1818_v7, %v265_v27  ;;  %v542_v30 = vmul.f32 %v1818_v7, %v493_v28  ;;  %v267_v31 = vpop.f32.mrb[5].mxu0  ;;  %v495_v32 = vpop.f32.mrb[5].mxu1 }
 0x112   :  { %v268_v33 = vpop.f32.mrb[6].mxu0  ;;  %v496_v34 = vpop.f32.mrb[6].mxu1 }
 0x113   :  { %v1848_v35 = vadd.f32 %v1823_v8, %v320_v29  ;;  %v1851_v36 = vadd.f32 %v1823_v8, %v542_v30  ;;  %v321_v37 = vmul.f32 %v1818_v7, %v268_v33  ;;  %v543_v38 = vmul.f32 %v1818_v7, %v496_v34  ;;  %v270_v39 = vpop.f32.mrb[7].mxu0  ;;  %v498_v40 = vpop.f32.mrb[7].mxu1 }
 0x115   :  { %v570_v41 = vmax.f32 %v1848_v35, %v1851_v36  ;;  %v1858_v42 = vadd.f32 %v1823_v8, %v321_v37  ;;  %v1861_v43 = vadd.f32 %v1823_v8, %v543_v38 }
 0x117   :  { %v571_v44 = vmax.f32 %v1858_v42, %v1861_v43 }
 0x118   :  { %v273_v45 = vpop.f32.mrb[8].mxu0  ;;  %v501_v46 = vpop.f32.mrb[8].mxu1 }
 0x119   :  { %v322_v47 = vmul.f32 %v1818_v7, %v273_v45  ;;  %v544_v48 = vmul.f32 %v1818_v7, %v501_v46  ;;  %v275_v49 = vpop.f32.mrb[9].mxu0  ;;  %v503_v50 = vpop.f32.mrb[9].mxu1 }
 0x11a   :  { %v276_v51 = vpop.f32.mrb[10].mxu0  ;;  %v504_v52 = vpop.f32.mrb[10].mxu1 }
 0x11b   :  { %v1868_v53 = vadd.f32 %v1823_v8, %v322_v47  ;;  %v1871_v54 = vadd.f32 %v1823_v8, %v544_v48  ;;  %v323_v55 = vmul.f32 %v1818_v7, %v276_v51  ;;  %v545_v56 = vmul.f32 %v1818_v7, %v504_v52  ;;  %v278_v57 = vpop.f32.mrb[11].mxu0  ;;  %v506_v58 = vpop.f32.mrb[11].mxu1 }
 0x11d   :  { %v572_v59 = vmax.f32 %v1868_v53, %v1871_v54  ;;  %v1878_v60 = vadd.f32 %v1823_v8, %v323_v55  ;;  %v1881_v61 = vadd.f32 %v1823_v8, %v545_v56 }
 0x11f   :  { %v573_v62 = vmax.f32 %v1878_v60, %v1881_v61 }
 0x120   :  { %v281_v63 = vpop.f32.mrb[12].mxu0  ;;  %v509_v0 = vpop.f32.mrb[12].mxu1 }
 0x121   :  { %v324_v1 = vmul.f32 %v1818_v7, %v281_v63  ;;  %v546_v2 = vmul.f32 %v1818_v7, %v509_v0  ;;  %v283_v3 = vpop.f32.mrb[13].mxu0  ;;  %v511_v4 = vpop.f32.mrb[13].mxu1 }
 0x122   :  { %v284_v5 = vpop.f32.mrb[14].mxu0  ;;  %v512_v6 = vpop.f32.mrb[14].mxu1 }
 0x123   :  { %v1888_v9 = vadd.f32 %v1823_v8, %v324_v1  ;;  %v1891_v10 = vadd.f32 %v1823_v8, %v546_v2  ;;  %v325_v11 = vmul.f32 %v1818_v7, %v284_v5  ;;  %v547_v12 = vmul.f32 %v1818_v7, %v512_v6  ;;  %v286_v13 = vpop.f32.mrb[15].mxu0  ;;  %v514_v14 = vpop.f32.mrb[15].mxu1 }
 0x125   :  { %v574_v15 = vmax.f32 %v1888_v9, %v1891_v10  ;;  %v1898_v16 = vadd.f32 %v1823_v8, %v325_v11  ;;  %v1901_v19 = vadd.f32 %v1823_v8, %v547_v12 }
 0x127   :  { %v575_v20 = vmax.f32 %v1898_v16, %v1901_v19 }
 0x128   :  { %v289_v21 = vpop.f32.mrb[16].mxu0  ;;  %v517_v22 = vpop.f32.mrb[16].mxu1 }
 0x129   :  { %v326_v27 = vmul.f32 %v1818_v7, %v289_v21  ;;  %v548_v28 = vmul.f32 %v1818_v7, %v517_v22  ;;  %v291_v29 = vpop.f32.mrb[17].mxu0  ;;  %v519_v30 = vpop.f32.mrb[17].mxu1 }
 0x12a   :  { %v292_v31 = vpop.f32.mrb[18].mxu0  ;;  %v520_v32 = vpop.f32.mrb[18].mxu1 }
 0x12b   :  { %v1908_v33 = vadd.f32 %v1823_v8, %v326_v27  ;;  %v1911_v34 = vadd.f32 %v1823_v8, %v548_v28  ;;  %v327_v37 = vmul.f32 %v1818_v7, %v292_v31  ;;  %v549_v38 = vmul.f32 %v1818_v7, %v520_v32  ;;  %v294_v39 = vpop.f32.mrb[19].mxu0  ;;  %v522_v40 = vpop.f32.mrb[19].mxu1 }
 0x12d   :  { %v576_v45 = vmax.f32 %v1908_v33, %v1911_v34  ;;  %v1918_v46 = vadd.f32 %v1823_v8, %v327_v37  ;;  %v1921_v47 = vadd.f32 %v1823_v8, %v549_v38 }
 0x12f   :  { %v577_v48 = vmax.f32 %v1918_v46, %v1921_v47 }
 0x130   :  { %v297_v49 = vpop.f32.mrb[20].mxu0  ;;  %v525_v50 = vpop.f32.mrb[20].mxu1 }
 0x131   :  { %v328_v51 = vmul.f32 %v1818_v7, %v297_v49  ;;  %v550_v52 = vmul.f32 %v1818_v7, %v525_v50  ;;  %v299_v55 = vpop.f32.mrb[21].mxu0  ;;  %v527_v56 = vpop.f32.mrb[21].mxu1 }
 0x132   :  { %v300_v57 = vpop.f32.mrb[22].mxu0  ;;  %v528_v58 = vpop.f32.mrb[22].mxu1 }
 0x133   :  { %v1928_v63 = vadd.f32 %v1823_v8, %v328_v51  ;;  %v1931_v0 = vadd.f32 %v1823_v8, %v550_v52  ;;  %v329_v1 = vmul.f32 %v1818_v7, %v300_v57  ;;  %v551_v2 = vmul.f32 %v1818_v7, %v528_v58  ;;  %v302_v3 = vpop.f32.mrb[23].mxu0  ;;  %v530_v4 = vpop.f32.mrb[23].mxu1 }
 0x135   :  { %v578_v5 = vmax.f32 %v1928_v63, %v1931_v0  ;;  %v1938_v6 = vadd.f32 %v1823_v8, %v329_v1  ;;  %v1941_v11 = vadd.f32 %v1823_v8, %v551_v2 }
 0x137   :  { %v579_v12 = vmax.f32 %v1938_v6, %v1941_v11 }
 0x138   :  { %v305_v13 = vpop.f32.mrb[24].mxu0  ;;  %v533_v14 = vpop.f32.mrb[24].mxu1 }
 0x139   :  { %v330_v21 = vmul.f32 %v1818_v7, %v305_v13  ;;  %v552_v22 = vmul.f32 %v1818_v7, %v533_v14  ;;  %v307_v27 = vpop.f32.mrb[25].mxu0  ;;  %v535_v28 = vpop.f32.mrb[25].mxu1 }
 0x13a   :  { %v308_v29 = vpop.f32.mrb[26].mxu0  ;;  %v536_v30 = vpop.f32.mrb[26].mxu1 }
 0x13b   :  { %v1948_v31 = vadd.f32 %v1823_v8, %v330_v21  ;;  %v1951_v32 = vadd.f32 %v1823_v8, %v552_v22  ;;  %v331_v37 = vmul.f32 %v1818_v7, %v308_v29  ;;  %v553_v38 = vmul.f32 %v1818_v7, %v536_v30  ;;  %v310_v39 = vpop.f32.mrb[27].mxu0  ;;  %v538_v40 = vpop.f32.mrb[27].mxu1 }
 0x13d   :  { %v580_v49 = vmax.f32 %v1948_v31, %v1951_v32  ;;  %v1958_v50 = vadd.f32 %v1823_v8, %v331_v37  ;;  %v1961_v51 = vadd.f32 %v1823_v8, %v553_v38 }
 0x13f   :  { %v581_v52 = vmax.f32 %v1958_v50, %v1961_v51 }
 0x140   :  { %v715_v55 = vpop.f32.mrb[28].mxu0  ;;  %v945_v56 = vpop.f32.mrb[28].mxu1 }
 0x141   :  { %v770_v57 = vmul.f32 %v1818_v7, %v715_v55  ;;  %v1000_v58 = vmul.f32 %v1818_v7, %v945_v56  ;;  %v717_v1 = vpop.f32.mrb[29].mxu0  ;;  %v947_v2 = vpop.f32.mrb[29].mxu1 }
 0x142   :  { %v718_v3 = vpop.f32.mrb[30].mxu0  ;;  %v948_v4 = vpop.f32.mrb[30].mxu1 }
 0x143   :  { %v784_v13 = vadd.f32 %v1823_v8, %v770_v57  ;;  %v1014_v14 = vadd.f32 %v1823_v8, %v1000_v58  ;;  %v771_v21 = vmul.f32 %v1818_v7, %v718_v3  ;;  %v1001_v22 = vmul.f32 %v1818_v7, %v948_v4  ;;  %v720_v27 = vpop.f32.mrb[31].mxu0  ;;  %v950_v28 = vpop.f32.mrb[31].mxu1 }
 0x145   :  { %v798_v29 = vmax.f32 %v568_v23, %v784_v13  ;;  %v785_v30 = vadd.f32 %v1823_v8, %v771_v21  ;;  %v1015_v39 = vadd.f32 %v1823_v8, %v1001_v22 }
 0x147   :  { %v1028_v37 = vmax.f32 %v798_v29, %v1014_v14  ;;  %v799_v38 = vmax.f32 %v569_v26, %v785_v30 }
 0x148   :  { %v723_v40 = vpop.f32.mrb[32].mxu0  ;;  %v953_v55 = vpop.f32.mrb[32].mxu1 }
 0x149   :  { %v1029_v56 = vmax.f32 %v799_v38, %v1015_v39  ;;  %v772_v57 = vmul.f32 %v1818_v7, %v723_v40  ;;  %v1002_v58 = vmul.f32 %v1818_v7, %v953_v55  ;;  %v725_v1 = vpop.f32.mrb[33].mxu0  ;;  %v955_v2 = vpop.f32.mrb[33].mxu1 }
 0x14a   :  { %v726_v17 = vpop.f32.mrb[34].mxu0  ;;  %v956_v18 = vpop.f32.mrb[34].mxu1 }
 0x14b   :  { %v1288_v23 = vpack.c.bf16 %v1029_v56, %v1028_v37  ;;  %v786_v3 = vadd.f32 %v1823_v8, %v772_v57  ;;  %v1016_v4 = vadd.f32 %v1823_v8, %v1002_v58  ;;  %v773_v24 = vmul.f32 %v1818_v7, %v726_v17  ;;  %v728_v25 = vpop.f32.mrb[35].mxu0  ;;  %v958_v26 = vpop.f32.mrb[35].mxu1 }
 0x14c   :  { %v1003_v13 = vmul.f32 %v1818_v7, %v956_v18 }
 0x14d   :  { %1289 = vst [vmem:[%s2088_s4] sm:$0xff] %v1288_v23   ;;  %v800_v14 = vmax.f32 %v570_v41, %v786_v3  ;;  %v787_v21 = vadd.f32 %v1823_v8, %v773_v24 }
 0x14e   :  { %v1017_v28 = vadd.f32 %v1823_v8, %v1003_v13 }
 0x14f   :  { %v1030_v22 = vmax.f32 %v800_v14, %v1016_v4  ;;  %v801_v27 = vmax.f32 %v571_v44, %v787_v21 }
 0x150   :  { %v731_v29 = vpop.f32.mrb[36].mxu0  ;;  %v961_v30 = vpop.f32.mrb[36].mxu1 }
 0x151   :  { %v1031_v37 = vmax.f32 %v801_v27, %v1017_v28  ;;  %v774_v38 = vmul.f32 %v1818_v7, %v731_v29  ;;  %v1004_v39 = vmul.f32 %v1818_v7, %v961_v30  ;;  %v733_v40 = vpop.f32.mrb[37].mxu0  ;;  %v963_v55 = vpop.f32.mrb[37].mxu1 }
 0x152   :  { %v734_v35 = vpop.f32.mrb[38].mxu0  ;;  %v964_v36 = vpop.f32.mrb[38].mxu1 }
 0x153   :  { %v1293_v41 = vpack.c.bf16 %v1031_v37, %v1030_v22  ;;  %v788_v56 = vadd.f32 %v1823_v8, %v774_v38  ;;  %v1018_v57 = vadd.f32 %v1823_v8, %v1004_v39  ;;  %v775_v42 = vmul.f32 %v1818_v7, %v734_v35  ;;  %v736_v43 = vpop.f32.mrb[39].mxu0  ;;  %v966_v44 = vpop.f32.mrb[39].mxu1 }
 0x154   :  { %v1005_v58 = vmul.f32 %v1818_v7, %v964_v36 }
 0x155   :  { %1320 = vst [vmem:[%s2088_s4 + $0x8] sm:$0xff] %v1293_v41   ;;  %v802_v1 = vmax.f32 %v572_v59, %v788_v56  ;;  %v789_v2 = vadd.f32 %v1823_v8, %v775_v42 }
 0x156   :  { %v1019_v23 = vadd.f32 %v1823_v8, %v1005_v58 }
 0x157   :  { %v1032_v17 = vmax.f32 %v802_v1, %v1018_v57  ;;  %v803_v18 = vmax.f32 %v573_v62, %v789_v2 }
 0x158   :  { %v739_v3 = vpop.f32.mrb[40].mxu0  ;;  %v969_v4 = vpop.f32.mrb[40].mxu1 }
 0x159   :  { %v1033_v24 = vmax.f32 %v803_v18, %v1019_v23  ;;  %v776_v25 = vmul.f32 %v1818_v7, %v739_v3  ;;  %v1006_v26 = vmul.f32 %v1818_v7, %v969_v4  ;;  %v741_v13 = vpop.f32.mrb[41].mxu0  ;;  %v971_v14 = vpop.f32.mrb[41].mxu1 }
 0x15a   :  { %v742_v53 = vpop.f32.mrb[42].mxu0  ;;  %v972_v54 = vpop.f32.mrb[42].mxu1 }
 0x15b   :  { %v1298_v59 = vpack.c.bf16 %v1033_v24, %v1032_v17  ;;  %v790_v21 = vadd.f32 %v1823_v8, %v776_v25  ;;  %v1020_v22 = vadd.f32 %v1823_v8, %v1006_v26  ;;  %v777_v60 = vmul.f32 %v1818_v7, %v742_v53  ;;  %v744_v61 = vpop.f32.mrb[43].mxu0  ;;  %v974_v62 = vpop.f32.mrb[43].mxu1 }
 0x15c   :  { %v1007_v27 = vmul.f32 %v1818_v7, %v972_v54 }
 0x15d   :  { %1321 = vst [vmem:[%s2088_s4 + $0x10] sm:$0xff] %v1298_v59   ;;  %v804_v28 = vmax.f32 %v574_v15, %v790_v21  ;;  %v791_v29 = vadd.f32 %v1823_v8, %v777_v60 }
 0x15e   :  { %v1021_v38 = vadd.f32 %v1823_v8, %v1007_v27 }
 0x15f   :  { %v1034_v30 = vmax.f32 %v804_v28, %v1020_v22  ;;  %v805_v37 = vmax.f32 %v575_v20, %v791_v29 }
 0x160   :  { %v747_v39 = vpop.f32.mrb[44].mxu0  ;;  %v977_v40 = vpop.f32.mrb[44].mxu1 }
 0x161   :  { %v1035_v55 = vmax.f32 %v805_v37, %v1021_v38  ;;  %v778_v35 = vmul.f32 %v1818_v7, %v747_v39  ;;  %v1008_v36 = vmul.f32 %v1818_v7, %v977_v40  ;;  %v749_v41 = vpop.f32.mrb[45].mxu0  ;;  %v979_v56 = vpop.f32.mrb[45].mxu1 }
 0x162   :  { %v750_v9 = vpop.f32.mrb[46].mxu0  ;;  %v980_v10 = vpop.f32.mrb[46].mxu1 }
 0x163   :  { %v1303_v15 = vpack.c.bf16 %v1035_v55, %v1034_v30  ;;  %v792_v57 = vadd.f32 %v1823_v8, %v778_v35  ;;  %v1022_v42 = vadd.f32 %v1823_v8, %v1008_v36  ;;  %v779_v16 = vmul.f32 %v1818_v7, %v750_v9  ;;  %v752_v19 = vpop.f32.mrb[47].mxu0  ;;  %v982_v20 = vpop.f32.mrb[47].mxu1 }
 0x164   :  { %v1009_v43 = vmul.f32 %v1818_v7, %v980_v10 }
 0x165   :  { %1322 = vst [vmem:[%s2088_s4 + $0x18] sm:$0xff] %v1303_v15   ;;  %v806_v44 = vmax.f32 %v576_v45, %v792_v57  ;;  %v793_v58 = vadd.f32 %v1823_v8, %v779_v16 }
 0x166   :  { %v1023_v17 = vadd.f32 %v1823_v8, %v1009_v43 }
 0x167   :  { %v1036_v1 = vmax.f32 %v806_v44, %v1022_v42  ;;  %v807_v2 = vmax.f32 %v577_v48, %v793_v58 }
 0x168   :  { %v755_v18 = vpop.f32.mrb[48].mxu0  ;;  %v985_v23 = vpop.f32.mrb[48].mxu1 }
 0x169   :  { %v1037_v3 = vmax.f32 %v807_v2, %v1023_v17  ;;  %v780_v4 = vmul.f32 %v1818_v7, %v755_v18  ;;  %v1010_v24 = vmul.f32 %v1818_v7, %v985_v23  ;;  %v757_v25 = vpop.f32.mrb[49].mxu0  ;;  %v987_v26 = vpop.f32.mrb[49].mxu1 }
 0x16a   :  { %v758_v33 = vpop.f32.mrb[50].mxu0  ;;  %v988_v34 = vpop.f32.mrb[50].mxu1 }
 0x16b   :  { %v1308_v45 = vpack.c.bf16 %v1037_v3, %v1036_v1  ;;  %v794_v13 = vadd.f32 %v1823_v8, %v780_v4  ;;  %v1024_v14 = vadd.f32 %v1823_v8, %v1010_v24  ;;  %v781_v46 = vmul.f32 %v1818_v7, %v758_v33  ;;  %v760_v47 = vpop.f32.mrb[51].mxu0  ;;  %v990_v48 = vpop.f32.mrb[51].mxu1 }
 0x16c   :  { %v1011_v53 = vmul.f32 %v1818_v7, %v988_v34 }
 0x16d   :  { %1323 = vst [vmem:[%s2088_s4 + $0x20] sm:$0xff] %v1308_v45   ;;  %v808_v54 = vmax.f32 %v578_v5, %v794_v13  ;;  %v795_v59 = vadd.f32 %v1823_v8, %v781_v46 }
 0x16e   :  { %v1025_v60 = vadd.f32 %v1823_v8, %v1011_v53 }
 0x16f   :  { %v1038_v21 = vmax.f32 %v808_v54, %v1024_v14  ;;  %v809_v22 = vmax.f32 %v579_v12, %v795_v59 }
 0x170   :  { %v763_v61 = vpop.f32.mrb[52].mxu0  ;;  %v993_v62 = vpop.f32.mrb[52].mxu1 }
 0x171   :  { %v1039_v27 = vmax.f32 %v809_v22, %v1025_v60  ;;  %v782_v28 = vmul.f32 %v1818_v7, %v763_v61  ;;  %v1012_v29 = vmul.f32 %v1818_v7, %v993_v62  ;;  %v765_v30 = vpop.f32.mrb[53].mxu0  ;;  %v995_v37 = vpop.f32.mrb[53].mxu1 }
 0x172   :  { %v766_v63 = vpop.f32.mrb[54].mxu0  ;;  %v996_v0 = vpop.f32.mrb[54].mxu1 }
 0x173   :  { %v1313_v5 = vpack.c.bf16 %v1039_v27, %v1038_v21  ;;  %v796_v38 = vadd.f32 %v1823_v8, %v782_v28  ;;  %v1026_v39 = vadd.f32 %v1823_v8, %v1012_v29  ;;  %v783_v6 = vmul.f32 %v1818_v7, %v766_v63  ;;  %v768_v11 = vpop.f32.mrb[55].mxu0  ;;  %v998_v12 = vpop.f32.mrb[55].mxu1 }
 0x174   :  { %v1013_v40 = vmul.f32 %v1818_v7, %v996_v0 }
 0x175   :  { %1324 = vst [vmem:[%s2088_s4 + $0x28] sm:$0xff] %v1313_v5   ;;  %v810_v55 = vmax.f32 %v580_v49, %v796_v38  ;;  %v797_v35 = vadd.f32 %v1823_v8, %v783_v6 }
 0x176   :  { %v1027_v56 = vadd.f32 %v1823_v8, %v1013_v40 }
 0x177   :  { %v1040_v36 = vmax.f32 %v810_v55, %v1026_v39  ;;  %v811_v41 = vmax.f32 %v581_v52, %v797_v35 }
 0x179   :  { %v1041_v9 = vmax.f32 %v811_v41, %v1027_v56 }
 0x17b   :  { %v1318_v10 = vpack.c.bf16 %v1041_v9, %v1040_v36 }
 0x17d   :  { %1325 = vst [vmem:[%s2088_s4 + $0x30] sm:$0xff] %v1318_v10  }

// kernel: cnn_forward.5
= control target key start
LH: loop header
LB: loop body
LE: loop exit
PB: predicated region body
PF: predicated region fallthrough
CT: control target
= control target key end

     0   :  { %vm6483_vm0 = vmmov 0   ;;  %s8315_s1 = inlined_call_operand.vmem [shape: bf16[1664,640], index: 1, kind: input, shape index: {}]   ;;  %s8316_s0 = inlined_call_operand.vmem [shape: bf16[16,1664], index: 0, kind: input, shape index: {}]   ;;  %s8317_s3 = inlined_call_operand.vmem [shape: bf16[640,128], index: 3, kind: input, shape index: {}]   ;;  %s8318_s2 = inlined_call_operand.vmem [shape: f32[1,640], index: 2, kind: input, shape index: {}]   ;;  %s8319_s4 = inlined_call_operand.vmem [shape: f32[1,128], index: 4, kind: input, shape index: {}]   ;;  %s8320_s5 = inlined_call_operand.vmem [shape: f32[16,128], index: 5, kind: output, shape index: {}]  }
   0x1   :  { %v5683_v0 = vld [vmem:[%s8315_s1 + $0x4] ss:$20 sps:$4 sm:$0xff]   ;;  %v5685_v1 = vld [vmem:[%s8315_s1 + $0xc] ss:$20 sps:$4 sm:$0xff]   ;;  %v5688_v3 = vld [vmem:[%s8315_s1 + $0x8] ss:$20 sps:$4 sm:$0xff]  }
   0x2   :  { %3456 = vmatprep.subr.bf16.mxu0 %v5683_v0  ;;  %v5687_v2 = vld [vmem:[%s8315_s1] ss:$20 sps:$4 sm:$0xff]   ;;  %3757 = vmatprep.subr.bf16.mxu1 %v5685_v1  ;;  %v5693_v6 = vld [vmem:[%s8315_s1 + $0x28] ss:$20 sps:$4 sm:$0xff]   ;;  %v5694_v7 = vld [vmem:[%s8315_s1 + $0x30] ss:$20 sps:$4 sm:$0xff]  }
   0x3   :  { %v5689_v4 = vld [vmem:[%s8315_s1 + $0x2c] ss:$20 sps:$4 sm:$0xff]   ;;  %3457 = vmatpush1.bf16.msra.mxu0 %v5687_v2  ;;  %3758 = vmatpush1.bf16.msra.mxu1 %v5688_v3  ;;  %v5691_v5 = vld [vmem:[%s8315_s1 + $0x34] ss:$20 sps:$4 sm:$0xff]   ;;  %v5697_v9 = vld [vmem:[%s8315_s1 + $0x5c] ss:$20 sps:$4 sm:$0xff]  }
   0x4   :  { %3458 = vmatprep.subr.bf16.mxu0 %v5689_v4  ;;  %3759 = vmatprep.subr.bf16.mxu1 %v5691_v5  ;;  %v5695_v8 = vld [vmem:[%s8315_s1 + $0x54] ss:$20 sps:$4 sm:$0xff]   ;;  %v5699_v10 = vld [vmem:[%s8315_s1 + $0x50] ss:$20 sps:$4 sm:$0xff]   ;;  %v5700_v11 = vld [vmem:[%s8315_s1 + $0x58] ss:$20 sps:$4 sm:$0xff]  }
   0x5   :  { %v5701_v12 = vld [vmem:[%s8315_s1 + $0x7c] ss:$20 sps:$4 sm:$0xff]   ;;  %v5703_v13 = vld [vmem:[%s8315_s1 + $0x84] ss:$20 sps:$4 sm:$0xff]   ;;  %v5706_v15 = vld [vmem:[%s8315_s1 + $0x80] ss:$20 sps:$4 sm:$0xff]  }
   0x6   :  { %v5705_v14 = vld [vmem:[%s8315_s1 + $0x78] ss:$20 sps:$4 sm:$0xff]   ;;  %v5711_v18 = vld [vmem:[%s8315_s1 + $0xa0] ss:$20 sps:$4 sm:$0xff]   ;;  %v5712_v19 = vld [vmem:[%s8315_s1 + $0xa8] ss:$20 sps:$4 sm:$0xff]  }
   0x7   :  { %3459 = vmatpush1.bf16.msra.mxu0 %v5693_v6  ;;  %3760 = vmatpush1.bf16.msra.mxu1 %v5694_v7  ;;  %v5707_v16 = vld [vmem:[%s8315_s1 + $0xa4] ss:$20 sps:$4 sm:$0xff]   ;;  %v5709_v17 = vld [vmem:[%s8315_s1 + $0xac] ss:$20 sps:$4 sm:$0xff]   ;;  %v5715_v21 = vld [vmem:[%s8315_s1 + $0xd4] ss:$20 sps:$4 sm:$0xff]  }
   0x8   :  { %3460 = vmatprep.subr.bf16.mxu0 %v5695_v8  ;;  %3761 = vmatprep.subr.bf16.mxu1 %v5697_v9  ;;  %v5713_v20 = vld [vmem:[%s8315_s1 + $0xcc] ss:$20 sps:$4 sm:$0xff]   ;;  %v5717_v22 = vld [vmem:[%s8315_s1 + $0xc8] ss:$20 sps:$4 sm:$0xff]   ;;  %v5718_v23 = vld [vmem:[%s8315_s1 + $0xd0] ss:$20 sps:$4 sm:$0xff]  }
   0x9   :  { %v5719_v24 = vld [vmem:[%s8315_s1 + $0xf4] ss:$20 sps:$4 sm:$0xff]   ;;  %v5721_v25 = vld [vmem:[%s8315_s1 + $0xfc] ss:$20 sps:$4 sm:$0xff]   ;;  %v5724_v27 = vld [vmem:[%s8315_s1 + $0xf8] ss:$20 sps:$4 sm:$0xff]  }
   0xa   :  { %v5723_v26 = vld [vmem:[%s8315_s1 + $0xf0] ss:$20 sps:$4 sm:$0xff]   ;;  %v5729_v30 = vld [vmem:[%s8315_s1 + $0x118] ss:$20 sps:$4 sm:$0xff]   ;;  %v5730_v31 = vld [vmem:[%s8315_s1 + $0x120] ss:$20 sps:$4 sm:$0xff]  }
   0xb   :  { %3461 = vmatpush1.bf16.msra.mxu0 %v5699_v10  ;;  %3762 = vmatpush1.bf16.msra.mxu1 %v5700_v11  ;;  %v5725_v28 = vld [vmem:[%s8315_s1 + $0x11c] ss:$20 sps:$4 sm:$0xff]   ;;  %v5727_v29 = vld [vmem:[%s8315_s1 + $0x124] ss:$20 sps:$4 sm:$0xff]   ;;  %v5733_v33 = vld [vmem:[%s8315_s1 + $0x14c] ss:$20 sps:$4 sm:$0xff]  }
   0xc   :  { %3462 = vmatprep.subr.bf16.mxu0 %v5701_v12  ;;  %3763 = vmatprep.subr.bf16.mxu1 %v5703_v13  ;;  %v5731_v32 = vld [vmem:[%s8315_s1 + $0x144] ss:$20 sps:$4 sm:$0xff]   ;;  %v5735_v34 = vld [vmem:[%s8315_s1 + $0x140] ss:$20 sps:$4 sm:$0xff]   ;;  %v5736_v35 = vld [vmem:[%s8315_s1 + $0x148] ss:$20 sps:$4 sm:$0xff]  }
   0xd   :  { %v5737_v36 = vld [vmem:[%s8315_s1 + $0x16c] ss:$20 sps:$4 sm:$0xff]   ;;  %v5739_v37 = vld [vmem:[%s8315_s1 + $0x174] ss:$20 sps:$4 sm:$0xff]   ;;  %v5742_v39 = vld [vmem:[%s8315_s1 + $0x170] ss:$20 sps:$4 sm:$0xff]  }
   0xe   :  { %v5741_v38 = vld [vmem:[%s8315_s1 + $0x168] ss:$20 sps:$4 sm:$0xff]   ;;  %v5747_v42 = vld [vmem:[%s8315_s1 + $0x190] ss:$20 sps:$4 sm:$0xff]   ;;  %v5748_v43 = vld [vmem:[%s8315_s1 + $0x198] ss:$20 sps:$4 sm:$0xff]  }
   0xf   :  { %3463 = vmatpush1.bf16.msra.mxu0 %v5705_v14  ;;  %3764 = vmatpush1.bf16.msra.mxu1 %v5706_v15  ;;  %v5743_v40 = vld [vmem:[%s8315_s1 + $0x194] ss:$20 sps:$4 sm:$0xff]   ;;  %v5745_v41 = vld [vmem:[%s8315_s1 + $0x19c] ss:$20 sps:$4 sm:$0xff]   ;;  %v5751_v45 = vld [vmem:[%s8315_s1 + $0x1c4] ss:$20 sps:$4 sm:$0xff]  }
  0x10   :  { %3464 = vmatprep.subr.bf16.mxu0 %v5707_v16  ;;  %3765 = vmatprep.subr.bf16.mxu1 %v5709_v17  ;;  %v5749_v44 = vld [vmem:[%s8315_s1 + $0x1bc] ss:$20 sps:$4 sm:$0xff]   ;;  %v5753_v46 = vld [vmem:[%s8315_s1 + $0x1b8] ss:$20 sps:$4 sm:$0xff]   ;;  %v5754_v48 = vld [vmem:[%s8315_s1 + $0x1c0] ss:$20 sps:$4 sm:$0xff]  }
  0x11   :  { %v5779_v47 = vld [vmem:[%s8316_s0 + $0x4] ss:$52 sps:$4 sm:$0xff]   ;;  %v5757_v50 = vld [vmem:[%s8315_s1 + $0x1ec] ss:$20 sps:$4 sm:$0xff]   ;;  %v5760_v52 = vld [vmem:[%s8315_s1 + $0x1e8] ss:$20 sps:$4 sm:$0xff]  }
  0x12   :  { %v5755_v49 = vld [vmem:[%s8315_s1 + $0x1e4] ss:$20 sps:$4 sm:$0xff]   ;;  %3488 = vmatprep.mubr.bf16.mxu0 %v5779_v47  ;;  %3789 = vmatprep.mubr.bf16.mxu1 %v5779_v47  ;;  %v5759_v51 = vld [vmem:[%s8315_s1 + $0x1e0] ss:$20 sps:$4 sm:$0xff]   ;;  %v5765_v55 = vld [vmem:[%s8315_s1 + $0x208] ss:$20 sps:$4 sm:$0xff]  }
  0x13   :  { %3465 = vmatpush1.bf16.msra.mxu0 %v5711_v18  ;;  %3766 = vmatpush1.bf16.msra.mxu1 %v5712_v19  ;;  %v5761_v53 = vld [vmem:[%s8315_s1 + $0x20c] ss:$20 sps:$4 sm:$0xff]   ;;  %v5763_v54 = vld [vmem:[%s8315_s1 + $0x214] ss:$20 sps:$4 sm:$0xff]   ;;  %v5766_v56 = vld [vmem:[%s8315_s1 + $0x210] ss:$20 sps:$4 sm:$0xff]  }
  0x14   :  { %3466 = vmatprep.subr.bf16.mxu0 %v5713_v20  ;;  %3767 = vmatprep.subr.bf16.mxu1 %v5715_v21  ;;  %v5767_v57 = vld [vmem:[%s8315_s1 + $0x234] ss:$20 sps:$4 sm:$0xff]   ;;  %v5769_v58 = vld [vmem:[%s8315_s1 + $0x23c] ss:$20 sps:$4 sm:$0xff]   ;;  %v5772_v60 = vld [vmem:[%s8315_s1 + $0x238] ss:$20 sps:$4 sm:$0xff]  }
  0x15   :  { %v5771_v59 = vld [vmem:[%s8315_s1 + $0x230] ss:$20 sps:$4 sm:$0xff]   ;;  %v5777_v63 = vld [vmem:[%s8315_s1 + $0x258] ss:$20 sps:$4 sm:$0xff]   ;;  %v5778_v0 = vld [vmem:[%s8315_s1 + $0x260] ss:$20 sps:$4 sm:$0xff]  }
  0x16   :  { %v5773_v61 = vld [vmem:[%s8315_s1 + $0x25c] ss:$20 sps:$4 sm:$0xff]   ;;  %v5775_v62 = vld [vmem:[%s8315_s1 + $0x264] ss:$20 sps:$4 sm:$0xff]   ;;  %v5786_v2 = vld [vmem:[%s8315_s1 + $0x28c] ss:$20 sps:$4 sm:$0xff]  }
  0x17   :  { %3467 = vmatpush1.bf16.msra.mxu0 %v5717_v22  ;;  %3768 = vmatpush1.bf16.msra.mxu1 %v5718_v23  ;;  %v5783_v1 = vld [vmem:[%s8315_s1 + $0x284] ss:$20 sps:$4 sm:$0xff]   ;;  %v5781_v3 = vld [vmem:[%s8315_s1 + $0x280] ss:$20 sps:$4 sm:$0xff]   ;;  %v5784_v4 = vld [vmem:[%s8315_s1 + $0x288] ss:$20 sps:$4 sm:$0xff]  }
  0x18   :  { %3468 = vmatprep.subr.bf16.mxu0 %v5719_v24  ;;  %3769 = vmatprep.subr.bf16.mxu1 %v5721_v25  ;;  %v5787_v5 = vld [vmem:[%s8316_s0] ss:$52 sps:$4 sm:$0xff]   ;;  %v5788_v8 = vld [vmem:[%s8315_s1 + $0x2a8] ss:$20 sps:$4 sm:$0xff]   ;;  %v5791_v9 = vld [vmem:[%s8315_s1 + $0x2b0] ss:$20 sps:$4 sm:$0xff]  }
  0x19   :  { %v5790_v6 = vld [vmem:[%s8315_s1 + $0x2ac] ss:$20 sps:$4 sm:$0xff]   ;;  %v5793_v7 = vld [vmem:[%s8315_s1 + $0x2b4] ss:$20 sps:$4 sm:$0xff]   ;;  %v5799_v11 = vld [vmem:[%s8315_s1 + $0x2dc] ss:$20 sps:$4 sm:$0xff]  }
  0x1a   :  { %v5796_v10 = vld [vmem:[%s8315_s1 + $0x2d4] ss:$20 sps:$4 sm:$0xff]   ;;  %v5794_v12 = vld [vmem:[%s8315_s1 + $0x2d0] ss:$20 sps:$4 sm:$0xff]   ;;  %v5797_v13 = vld [vmem:[%s8315_s1 + $0x2d8] ss:$20 sps:$4 sm:$0xff]  }
  0x1b   :  { %3469 = vmatpush1.bf16.msra.mxu0 %v5723_v26  ;;  %3770 = vmatpush1.bf16.msra.mxu1 %v5724_v27  ;;  %v5802_v14 = vld [vmem:[%s8315_s1 + $0x2fc] ss:$20 sps:$4 sm:$0xff]   ;;  %v5805_v15 = vld [vmem:[%s8315_s1 + $0x304] ss:$20 sps:$4 sm:$0xff]   ;;  %v5803_v17 = vld [vmem:[%s8315_s1 + $0x300] ss:$20 sps:$4 sm:$0xff]  }
  0x1c   :  { %3470 = vmatprep.subr.bf16.mxu0 %v5725_v28  ;;  %3771 = vmatprep.subr.bf16.mxu1 %v5727_v29  ;;  %v5800_v16 = vld [vmem:[%s8315_s1 + $0x2f8] ss:$20 sps:$4 sm:$0xff]   ;;  %v5806_v20 = vld [vmem:[%s8315_s1 + $0x320] ss:$20 sps:$4 sm:$0xff]   ;;  %v5809_v21 = vld [vmem:[%s8315_s1 + $0x328] ss:$20 sps:$4 sm:$0xff]  }
  0x1d   :  { %v5808_v18 = vld [vmem:[%s8315_s1 + $0x324] ss:$20 sps:$4 sm:$0xff]   ;;  %v5811_v19 = vld [vmem:[%s8315_s1 + $0x32c] ss:$20 sps:$4 sm:$0xff]   ;;  %v5817_v23 = vld [vmem:[%s8315_s1 + $0x354] ss:$20 sps:$4 sm:$0xff]  }
  0x1e   :  { %v5814_v22 = vld [vmem:[%s8315_s1 + $0x34c] ss:$20 sps:$4 sm:$0xff]   ;;  %v5812_v24 = vld [vmem:[%s8315_s1 + $0x348] ss:$20 sps:$4 sm:$0xff]   ;;  %v5815_v25 = vld [vmem:[%s8315_s1 + $0x350] ss:$20 sps:$4 sm:$0xff]  }
  0x1f   :  { %3471 = vmatpush1.bf16.msra.mxu0 %v5729_v30  ;;  %3772 = vmatpush1.bf16.msra.mxu1 %v5730_v31  ;;  %v5820_v26 = vld [vmem:[%s8315_s1 + $0x374] ss:$20 sps:$4 sm:$0xff]   ;;  %v5823_v27 = vld [vmem:[%s8315_s1 + $0x37c] ss:$20 sps:$4 sm:$0xff]   ;;  %v5821_v29 = vld [vmem:[%s8315_s1 + $0x378] ss:$20 sps:$4 sm:$0xff]  }
  0x20   :  { %3472 = vmatprep.subr.bf16.mxu0 %v5731_v32  ;;  %3773 = vmatprep.subr.bf16.mxu1 %v5733_v33  ;;  %v5818_v28 = vld [vmem:[%s8315_s1 + $0x370] ss:$20 sps:$4 sm:$0xff]   ;;  %v5880_v30 = vld [vmem:[%s8316_s0 + $0xc] ss:$52 sps:$4 sm:$0xff]  }
  0x21   :  { %v5826_v31 = vld [vmem:[%s8315_s1 + $0x39c] ss:$20 sps:$4 sm:$0xff]   ;;  %v5829_v32 = vld [vmem:[%s8315_s1 + $0x3a4] ss:$20 sps:$4 sm:$0xff]  }
  0x22   :  { %v5824_v33 = vld [vmem:[%s8315_s1 + $0x398] ss:$20 sps:$4 sm:$0xff]   ;;  %v5850_v47 = vld [vmem:[%s8315_s1 + $0x43c] ss:$20 sps:$4 sm:$0xff]  }
  0x23   :  { %3473 = vmatpush1.bf16.msra.mxu0 %v5735_v34  ;;  %3774 = vmatpush1.bf16.msra.mxu1 %v5736_v35  ;;  %v5827_v34 = vld [vmem:[%s8315_s1 + $0x3a0] ss:$20 sps:$4 sm:$0xff]   ;;  %v5832_v35 = vld [vmem:[%s8315_s1 + $0x3c4] ss:$20 sps:$4 sm:$0xff]  }
  0x24   :  { %3474 = vmatprep.subr.bf16.mxu0 %v5737_v36  ;;  %3775 = vmatprep.subr.bf16.mxu1 %v5739_v37  ;;  %v5835_v36 = vld [vmem:[%s8315_s1 + $0x3cc] ss:$20 sps:$4 sm:$0xff]  }
  0x25   :  { %v5830_v37 = vld [vmem:[%s8315_s1 + $0x3c0] ss:$20 sps:$4 sm:$0xff]  }
  0x27   :  { %3475 = vmatpush1.bf16.msra.mxu0 %v5741_v38  ;;  %3776 = vmatpush1.bf16.msra.mxu1 %v5742_v39  ;;  %v5833_v38 = vld [vmem:[%s8315_s1 + $0x3c8] ss:$20 sps:$4 sm:$0xff]   ;;  %v5838_v39 = vld [vmem:[%s8315_s1 + $0x3ec] ss:$20 sps:$4 sm:$0xff]  }
  0x28   :  { %3476 = vmatprep.subr.bf16.mxu0 %v5743_v40  ;;  %3777 = vmatprep.subr.bf16.mxu1 %v5745_v41  ;;  %v5841_v40 = vld [vmem:[%s8315_s1 + $0x3f4] ss:$20 sps:$4 sm:$0xff]  }
  0x29   :  { %v5836_v41 = vld [vmem:[%s8315_s1 + $0x3e8] ss:$20 sps:$4 sm:$0xff]  }
  0x2b   :  { %3477 = vmatpush1.bf16.msra.mxu0 %v5747_v42  ;;  %3778 = vmatpush1.bf16.msra.mxu1 %v5748_v43  ;;  %v5839_v42 = vld [vmem:[%s8315_s1 + $0x3f0] ss:$20 sps:$4 sm:$0xff]   ;;  %v5844_v43 = vld [vmem:[%s8315_s1 + $0x414] ss:$20 sps:$4 sm:$0xff]  }
  0x2c   :  { %3478 = vmatprep.subr.bf16.mxu0 %v5749_v44  ;;  %3779 = vmatprep.subr.bf16.mxu1 %v5751_v45  ;;  %v5847_v44 = vld [vmem:[%s8315_s1 + $0x41c] ss:$20 sps:$4 sm:$0xff]  }
  0x2d   :  { %v5842_v45 = vld [vmem:[%s8315_s1 + $0x410] ss:$20 sps:$4 sm:$0xff]  }
  0x2f   :  { %3479 = vmatpush1.bf16.msra.mxu0 %v5753_v46  ;;  %3780 = vmatpush1.bf16.msra.mxu1 %v5754_v48  ;;  %v5845_v46 = vld [vmem:[%s8315_s1 + $0x418] ss:$20 sps:$4 sm:$0xff]  }
  0x30   :  { %3480 = vmatprep.subr.bf16.mxu0 %v5755_v49  ;;  %3781 = vmatprep.subr.bf16.mxu1 %v5757_v50  ;;  %v5853_v48 = vld [vmem:[%s8315_s1 + $0x444] ss:$20 sps:$4 sm:$0xff]   ;;  %v5851_v50 = vld [vmem:[%s8315_s1 + $0x440] ss:$20 sps:$4 sm:$0xff]  }
  0x31   :  { %v5848_v49 = vld [vmem:[%s8315_s1 + $0x438] ss:$20 sps:$4 sm:$0xff]  }
  0x33   :  { %3481 = vmatpush1.bf16.msra.mxu0 %v5759_v51  ;;  %3782 = vmatpush1.bf16.msra.mxu1 %v5760_v52  ;;  %v5856_v51 = vld [vmem:[%s8315_s1 + $0x464] ss:$20 sps:$4 sm:$0xff]   ;;  %v5859_v52 = vld [vmem:[%s8315_s1 + $0x46c] ss:$20 sps:$4 sm:$0xff]  }
  0x34   :  { %3482 = vmatprep.subr.bf16.mxu0 %v5761_v53  ;;  %3783 = vmatprep.subr.bf16.mxu1 %v5763_v54  ;;  %v5854_v53 = vld [vmem:[%s8315_s1 + $0x460] ss:$20 sps:$4 sm:$0xff]   ;;  %v5857_v54 = vld [vmem:[%s8315_s1 + $0x468] ss:$20 sps:$4 sm:$0xff]  }
  0x37   :  { %3483 = vmatpush1.bf16.msra.mxu0 %v5765_v55  ;;  %3784 = vmatpush1.bf16.msra.mxu1 %v5766_v56  ;;  %v5862_v55 = vld [vmem:[%s8315_s1 + $0x48c] ss:$20 sps:$4 sm:$0xff]   ;;  %v5865_v56 = vld [vmem:[%s8315_s1 + $0x494] ss:$20 sps:$4 sm:$0xff]  }
  0x38   :  { %3484 = vmatprep.subr.bf16.mxu0 %v5767_v57  ;;  %3785 = vmatprep.subr.bf16.mxu1 %v5769_v58  ;;  %v5860_v57 = vld [vmem:[%s8315_s1 + $0x488] ss:$20 sps:$4 sm:$0xff]   ;;  %v5863_v58 = vld [vmem:[%s8315_s1 + $0x490] ss:$20 sps:$4 sm:$0xff]  }
  0x3b   :  { %3485 = vmatpush1.bf16.msra.mxu0 %v5771_v59  ;;  %3786 = vmatpush1.bf16.msra.mxu1 %v5772_v60  ;;  %v5868_v59 = vld [vmem:[%s8315_s1 + $0x4b4] ss:$20 sps:$4 sm:$0xff]   ;;  %v5871_v60 = vld [vmem:[%s8315_s1 + $0x4bc] ss:$20 sps:$4 sm:$0xff]  }
  0x3c   :  { %3486 = vmatprep.subr.bf16.mxu0 %v5773_v61  ;;  %3787 = vmatprep.subr.bf16.mxu1 %v5775_v62  ;;  %v5866_v61 = vld [vmem:[%s8315_s1 + $0x4b0] ss:$20 sps:$4 sm:$0xff]   ;;  %v5869_v62 = vld [vmem:[%s8315_s1 + $0x4b8] ss:$20 sps:$4 sm:$0xff]  }
  0x3f   :  { %3487 = vmatpush1.bf16.msra.mxu0 %v5777_v63  ;;  %3788 = vmatpush1.bf16.msra.mxu1 %v5778_v0  ;;  %v5874_v63 = vld [vmem:[%s8315_s1 + $0x4dc] ss:$20 sps:$4 sm:$0xff]   ;;  %v5877_v0 = vld [vmem:[%s8315_s1 + $0x4e4] ss:$20 sps:$4 sm:$0xff]  }
  0x40   :  { %3499 = vmatprep.subr.bf16.mxu0 %v5783_v1  ;;  %3800 = vmatprep.subr.bf16.mxu1 %v5786_v2  ;;  %v5872_v1 = vld [vmem:[%s8315_s1 + $0x4d8] ss:$20 sps:$4 sm:$0xff]   ;;  %v5875_v2 = vld [vmem:[%s8315_s1 + $0x4e0] ss:$20 sps:$4 sm:$0xff]  }
  0x42   :  { %3489 = vmatmul.mubr.bf16.vlgmr.msra.gmra.mrb[0].mxu0 %v5787_v5  ;;  %3790 = vmatmul.mubr.bf16.vlgmr.msra.gmra.mrb[0].mxu1 %v5787_v5  ;;  %v5878_v5 = vld [vmem:[%s8316_s0 + $0x8] ss:$52 sps:$4 sm:$0xff]  }
  0x43   :  { %3500 = vmatpush1.bf16.msra.mxu0 %v5781_v3  ;;  %3801 = vmatpush1.bf16.msra.mxu1 %v5784_v4  ;;  %v5883_v3 = vld [vmem:[%s8315_s1 + $0x504] ss:$20 sps:$4 sm:$0xff]   ;;  %v5886_v4 = vld [vmem:[%s8315_s1 + $0x50c] ss:$20 sps:$4 sm:$0xff]  }
  0x44   :  { %3501 = vmatprep.subr.bf16.mxu0 %v5790_v6  ;;  %3802 = vmatprep.subr.bf16.mxu1 %v5793_v7  ;;  %v5881_v6 = vld [vmem:[%s8315_s1 + $0x500] ss:$20 sps:$4 sm:$0xff]   ;;  %v5884_v7 = vld [vmem:[%s8315_s1 + $0x508] ss:$20 sps:$4 sm:$0xff]  }
  0x45   :  { %3531 = vmatprep.mubr.bf16.mxu0 %v5880_v30  ;;  %3832 = vmatprep.mubr.bf16.mxu1 %v5880_v30  ;;  %v5922_v30 = vld [vmem:[%s8315_s1 + $0x5fc] ss:$20 sps:$4 sm:$0xff]  }
  0x47   :  { %3502 = vmatpush1.bf16.msra.mxu0 %v5788_v8  ;;  %3803 = vmatpush1.bf16.msra.mxu1 %v5791_v9  ;;  %v5889_v8 = vld [vmem:[%s8315_s1 + $0x52c] ss:$20 sps:$4 sm:$0xff]   ;;  %v5892_v9 = vld [vmem:[%s8315_s1 + $0x534] ss:$20 sps:$4 sm:$0xff]  }
  0x48   :  { %3503 = vmatprep.subr.bf16.mxu0 %v5796_v10  ;;  %3804 = vmatprep.subr.bf16.mxu1 %v5799_v11  ;;  %v5887_v10 = vld [vmem:[%s8315_s1 + $0x528] ss:$20 sps:$4 sm:$0xff]   ;;  %v5890_v11 = vld [vmem:[%s8315_s1 + $0x530] ss:$20 sps:$4 sm:$0xff]  }
  0x4b   :  { %3504 = vmatpush1.bf16.msra.mxu0 %v5794_v12  ;;  %3805 = vmatpush1.bf16.msra.mxu1 %v5797_v13  ;;  %v5979_v12 = vld [vmem:[%s8316_s0 + $0x14] ss:$52 sps:$4 sm:$0xff]  }
  0x4c   :  { %3505 = vmatprep.subr.bf16.mxu0 %v5802_v14  ;;  %3806 = vmatprep.subr.bf16.mxu1 %v5805_v15  ;;  %v5895_v13 = vld [vmem:[%s8315_s1 + $0x554] ss:$20 sps:$4 sm:$0xff]   ;;  %v5898_v14 = vld [vmem:[%s8315_s1 + $0x55c] ss:$20 sps:$4 sm:$0xff]  }
  0x4d   :  { %v5893_v15 = vld [vmem:[%s8315_s1 + $0x550] ss:$20 sps:$4 sm:$0xff]  }
  0x4f   :  { %3506 = vmatpush1.bf16.msra.mxu0 %v5800_v16  ;;  %3807 = vmatpush1.bf16.msra.mxu1 %v5803_v17  ;;  %v5896_v16 = vld [vmem:[%s8315_s1 + $0x558] ss:$20 sps:$4 sm:$0xff]   ;;  %v5901_v17 = vld [vmem:[%s8315_s1 + $0x57c] ss:$20 sps:$4 sm:$0xff]  }
  0x50   :  { %3507 = vmatprep.subr.bf16.mxu0 %v5808_v18  ;;  %3808 = vmatprep.subr.bf16.mxu1 %v5811_v19  ;;  %v5904_v18 = vld [vmem:[%s8315_s1 + $0x584] ss:$20 sps:$4 sm:$0xff]  }
  0x51   :  { %v5899_v19 = vld [vmem:[%s8315_s1 + $0x578] ss:$20 sps:$4 sm:$0xff]  }
  0x53   :  { %3508 = vmatpush1.bf16.msra.mxu0 %v5806_v20  ;;  %3809 = vmatpush1.bf16.msra.mxu1 %v5809_v21  ;;  %v5902_v20 = vld [vmem:[%s8315_s1 + $0x580] ss:$20 sps:$4 sm:$0xff]   ;;  %v5907_v21 = vld [vmem:[%s8315_s1 + $0x5a4] ss:$20 sps:$4 sm:$0xff]  }
  0x54   :  { %3509 = vmatprep.subr.bf16.mxu0 %v5814_v22  ;;  %3810 = vmatprep.subr.bf16.mxu1 %v5817_v23  ;;  %v5910_v22 = vld [vmem:[%s8315_s1 + $0x5ac] ss:$20 sps:$4 sm:$0xff]  }
  0x55   :  { %v5905_v23 = vld [vmem:[%s8315_s1 + $0x5a0] ss:$20 sps:$4 sm:$0xff]  }
  0x57   :  { %3510 = vmatpush1.bf16.msra.mxu0 %v5812_v24  ;;  %3811 = vmatpush1.bf16.msra.mxu1 %v5815_v25  ;;  %v5908_v24 = vld [vmem:[%s8315_s1 + $0x5a8] ss:$20 sps:$4 sm:$0xff]   ;;  %v5913_v25 = vld [vmem:[%s8315_s1 + $0x5cc] ss:$20 sps:$4 sm:$0xff]  }
  0x58   :  { %3511 = vmatprep.subr.bf16.mxu0 %v5820_v26  ;;  %3812 = vmatprep.subr.bf16.mxu1 %v5823_v27  ;;  %v5916_v26 = vld [vmem:[%s8315_s1 + $0x5d4] ss:$20 sps:$4 sm:$0xff]  }
  0x59   :  { %v5911_v27 = vld [vmem:[%s8315_s1 + $0x5c8] ss:$20 sps:$4 sm:$0xff]  }
  0x5b   :  { %3512 = vmatpush1.bf16.msra.mxu0 %v5818_v28  ;;  %3813 = vmatpush1.bf16.msra.mxu1 %v5821_v29  ;;  %v5914_v28 = vld [vmem:[%s8315_s1 + $0x5d0] ss:$20 sps:$4 sm:$0xff]   ;;  %v5919_v29 = vld [vmem:[%s8315_s1 + $0x5f4] ss:$20 sps:$4 sm:$0xff]  }
  0x5c   :  { %3513 = vmatprep.subr.bf16.mxu0 %v5826_v31  ;;  %3814 = vmatprep.subr.bf16.mxu1 %v5829_v32  ;;  %v5917_v31 = vld [vmem:[%s8315_s1 + $0x5f0] ss:$20 sps:$4 sm:$0xff]   ;;  %v5920_v32 = vld [vmem:[%s8315_s1 + $0x5f8] ss:$20 sps:$4 sm:$0xff]  }
  0x5f   :  { %3514 = vmatpush1.bf16.msra.mxu0 %v5824_v33  ;;  %3815 = vmatpush1.bf16.msra.mxu1 %v5827_v34  ;;  %v5925_v33 = vld [vmem:[%s8315_s1 + $0x61c] ss:$20 sps:$4 sm:$0xff]   ;;  %v5928_v34 = vld [vmem:[%s8315_s1 + $0x624] ss:$20 sps:$4 sm:$0xff]  }
  0x60   :  { %3515 = vmatprep.subr.bf16.mxu0 %v5832_v35  ;;  %3816 = vmatprep.subr.bf16.mxu1 %v5835_v36  ;;  %v5923_v35 = vld [vmem:[%s8315_s1 + $0x618] ss:$20 sps:$4 sm:$0xff]   ;;  %v5926_v36 = vld [vmem:[%s8315_s1 + $0x620] ss:$20 sps:$4 sm:$0xff]  }
  0x63   :  { %3516 = vmatpush1.bf16.msra.mxu0 %v5830_v37  ;;  %3817 = vmatpush1.bf16.msra.mxu1 %v5833_v38  ;;  %v5931_v37 = vld [vmem:[%s8315_s1 + $0x644] ss:$20 sps:$4 sm:$0xff]   ;;  %v5934_v38 = vld [vmem:[%s8315_s1 + $0x64c] ss:$20 sps:$4 sm:$0xff]  }
  0x64   :  { %3517 = vmatprep.subr.bf16.mxu0 %v5838_v39  ;;  %3818 = vmatprep.subr.bf16.mxu1 %v5841_v40  ;;  %v5929_v39 = vld [vmem:[%s8315_s1 + $0x640] ss:$20 sps:$4 sm:$0xff]   ;;  %v5932_v40 = vld [vmem:[%s8315_s1 + $0x648] ss:$20 sps:$4 sm:$0xff]  }
  0x67   :  { %3518 = vmatpush1.bf16.msra.mxu0 %v5836_v41  ;;  %3819 = vmatpush1.bf16.msra.mxu1 %v5839_v42  ;;  %v5937_v41 = vld [vmem:[%s8315_s1 + $0x66c] ss:$20 sps:$4 sm:$0xff]   ;;  %v5940_v42 = vld [vmem:[%s8315_s1 + $0x674] ss:$20 sps:$4 sm:$0xff]  }
  0x68   :  { %3519 = vmatprep.subr.bf16.mxu0 %v5844_v43  ;;  %3820 = vmatprep.subr.bf16.mxu1 %v5847_v44  ;;  %v5935_v43 = vld [vmem:[%s8315_s1 + $0x668] ss:$20 sps:$4 sm:$0xff]   ;;  %v5938_v44 = vld [vmem:[%s8315_s1 + $0x670] ss:$20 sps:$4 sm:$0xff]  }
  0x6b   :  { %3520 = vmatpush1.bf16.msra.mxu0 %v5842_v45  ;;  %3821 = vmatpush1.bf16.msra.mxu1 %v5845_v46  ;;  %v5943_v45 = vld [vmem:[%s8315_s1 + $0x694] ss:$20 sps:$4 sm:$0xff]   ;;  %v5946_v46 = vld [vmem:[%s8315_s1 + $0x69c] ss:$20 sps:$4 sm:$0xff]  }
  0x6c   :  { %3521 = vmatprep.subr.bf16.mxu0 %v5850_v47  ;;  %3822 = vmatprep.subr.bf16.mxu1 %v5853_v48  ;;  %v5941_v47 = vld [vmem:[%s8315_s1 + $0x690] ss:$20 sps:$4 sm:$0xff]   ;;  %v5944_v48 = vld [vmem:[%s8315_s1 + $0x698] ss:$20 sps:$4 sm:$0xff]  }
  0x6f   :  { %3522 = vmatpush1.bf16.msra.mxu0 %v5848_v49  ;;  %3823 = vmatpush1.bf16.msra.mxu1 %v5851_v50  ;;  %v5949_v49 = vld [vmem:[%s8315_s1 + $0x6bc] ss:$20 sps:$4 sm:$0xff]   ;;  %v5952_v50 = vld [vmem:[%s8315_s1 + $0x6c4] ss:$20 sps:$4 sm:$0xff]  }
  0x70   :  { %3523 = vmatprep.subr.bf16.mxu0 %v5856_v51  ;;  %3824 = vmatprep.subr.bf16.mxu1 %v5859_v52  ;;  %v5947_v51 = vld [vmem:[%s8315_s1 + $0x6b8] ss:$20 sps:$4 sm:$0xff]   ;;  %v5950_v52 = vld [vmem:[%s8315_s1 + $0x6c0] ss:$20 sps:$4 sm:$0xff]  }
  0x73   :  { %3524 = vmatpush1.bf16.msra.mxu0 %v5854_v53  ;;  %3825 = vmatpush1.bf16.msra.mxu1 %v5857_v54  ;;  %v5955_v53 = vld [vmem:[%s8315_s1 + $0x6e4] ss:$20 sps:$4 sm:$0xff]   ;;  %v5958_v54 = vld [vmem:[%s8315_s1 + $0x6ec] ss:$20 sps:$4 sm:$0xff]  }
  0x74   :  { %3525 = vmatprep.subr.bf16.mxu0 %v5862_v55  ;;  %3826 = vmatprep.subr.bf16.mxu1 %v5865_v56  ;;  %v5953_v55 = vld [vmem:[%s8315_s1 + $0x6e0] ss:$20 sps:$4 sm:$0xff]   ;;  %v5956_v56 = vld [vmem:[%s8315_s1 + $0x6e8] ss:$20 sps:$4 sm:$0xff]  }
  0x77   :  { %3526 = vmatpush1.bf16.msra.mxu0 %v5860_v57  ;;  %3827 = vmatpush1.bf16.msra.mxu1 %v5863_v58  ;;  %v5961_v57 = vld [vmem:[%s8315_s1 + $0x70c] ss:$20 sps:$4 sm:$0xff]   ;;  %v5964_v58 = vld [vmem:[%s8315_s1 + $0x714] ss:$20 sps:$4 sm:$0xff]  }
  0x78   :  { %3527 = vmatprep.subr.bf16.mxu0 %v5868_v59  ;;  %3828 = vmatprep.subr.bf16.mxu1 %v5871_v60  ;;  %v5959_v59 = vld [vmem:[%s8315_s1 + $0x708] ss:$20 sps:$4 sm:$0xff]   ;;  %v5962_v60 = vld [vmem:[%s8315_s1 + $0x710] ss:$20 sps:$4 sm:$0xff]  }
  0x7b   :  { %3528 = vmatpush1.bf16.msra.mxu0 %v5866_v61  ;;  %3829 = vmatpush1.bf16.msra.mxu1 %v5869_v62  ;;  %v5967_v61 = vld [vmem:[%s8315_s1 + $0x734] ss:$20 sps:$4 sm:$0xff]   ;;  %v5970_v62 = vld [vmem:[%s8315_s1 + $0x73c] ss:$20 sps:$4 sm:$0xff]  }
  0x7c   :  { %3529 = vmatprep.subr.bf16.mxu0 %v5874_v63  ;;  %3830 = vmatprep.subr.bf16.mxu1 %v5877_v0  ;;  %v5965_v63 = vld [vmem:[%s8315_s1 + $0x730] ss:$20 sps:$4 sm:$0xff]   ;;  %v5968_v0 = vld [vmem:[%s8315_s1 + $0x738] ss:$20 sps:$4 sm:$0xff]  }
  0x7f   :  { %3530 = vmatpush1.bf16.msra.mxu0 %v5872_v1  ;;  %3831 = vmatpush1.bf16.msra.mxu1 %v5875_v2  ;;  %v5973_v1 = vld [vmem:[%s8315_s1 + $0x75c] ss:$20 sps:$4 sm:$0xff]   ;;  %v5976_v2 = vld [vmem:[%s8315_s1 + $0x764] ss:$20 sps:$4 sm:$0xff]  }
  0x80   :  { %3542 = vmatprep.subr.bf16.mxu0 %v5883_v3  ;;  %3843 = vmatprep.subr.bf16.mxu1 %v5886_v4  ;;  %v5971_v3 = vld [vmem:[%s8315_s1 + $0x758] ss:$20 sps:$4 sm:$0xff]   ;;  %v5974_v4 = vld [vmem:[%s8315_s1 + $0x760] ss:$20 sps:$4 sm:$0xff]  }
  0x82   :  { %3532 = vmatmul.mubr.bf16.vlgmr.msra.gmra.mrb[0].mxu0 %v5878_v5  ;;  %3833 = vmatmul.mubr.bf16.vlgmr.msra.gmra.mrb[0].mxu1 %v5878_v5  ;;  %v5982_v5 = vld [vmem:[%s8315_s1 + $0x784] ss:$20 sps:$4 sm:$0xff]  }
  0x83   :  { %3543 = vmatpush1.bf16.msra.mxu0 %v5881_v6  ;;  %3844 = vmatpush1.bf16.msra.mxu1 %v5884_v7  ;;  %v5985_v6 = vld [vmem:[%s8315_s1 + $0x78c] ss:$20 sps:$4 sm:$0xff]   ;;  %v5977_v7 = vld [vmem:[%s8316_s0 + $0x10] ss:$52 sps:$4 sm:$0xff]  }
  0x84   :  { %3544 = vmatprep.subr.bf16.mxu0 %v5889_v8  ;;  %3845 = vmatprep.subr.bf16.mxu1 %v5892_v9  ;;  %v5980_v8 = vld [vmem:[%s8315_s1 + $0x780] ss:$20 sps:$4 sm:$0xff]   ;;  %v5983_v9 = vld [vmem:[%s8315_s1 + $0x788] ss:$20 sps:$4 sm:$0xff]  }
  0x85   :  { %3574 = vmatprep.mubr.bf16.mxu0 %v5979_v12  ;;  %3875 = vmatprep.mubr.bf16.mxu1 %v5979_v12  ;;  %v6078_v12 = vld [vmem:[%s8316_s0 + $0x1c] ss:$52 sps:$4 sm:$0xff]  }
  0x87   :  { %3545 = vmatpush1.bf16.msra.mxu0 %v5887_v10  ;;  %3846 = vmatpush1.bf16.msra.mxu1 %v5890_v11  ;;  %v5988_v10 = vld [vmem:[%s8315_s1 + $0x7ac] ss:$20 sps:$4 sm:$0xff]   ;;  %v5991_v11 = vld [vmem:[%s8315_s1 + $0x7b4] ss:$20 sps:$4 sm:$0xff]  }
  0x88   :  { %3546 = vmatprep.subr.bf16.mxu0 %v5895_v13  ;;  %3847 = vmatprep.subr.bf16.mxu1 %v5898_v14  ;;  %v5986_v13 = vld [vmem:[%s8315_s1 + $0x7a8] ss:$20 sps:$4 sm:$0xff]   ;;  %v5989_v14 = vld [vmem:[%s8315_s1 + $0x7b0] ss:$20 sps:$4 sm:$0xff]  }
  0x8b   :  { %3547 = vmatpush1.bf16.msra.mxu0 %v5893_v15  ;;  %3848 = vmatpush1.bf16.msra.mxu1 %v5896_v16  ;;  %v5994_v15 = vld [vmem:[%s8315_s1 + $0x7d4] ss:$20 sps:$4 sm:$0xff]   ;;  %v5997_v16 = vld [vmem:[%s8315_s1 + $0x7dc] ss:$20 sps:$4 sm:$0xff]  }
  0x8c   :  { %3548 = vmatprep.subr.bf16.mxu0 %v5901_v17  ;;  %3849 = vmatprep.subr.bf16.mxu1 %v5904_v18  ;;  %v5992_v17 = vld [vmem:[%s8315_s1 + $0x7d0] ss:$20 sps:$4 sm:$0xff]   ;;  %v5995_v18 = vld [vmem:[%s8315_s1 + $0x7d8] ss:$20 sps:$4 sm:$0xff]  }
  0x8f   :  { %3549 = vmatpush1.bf16.msra.mxu0 %v5899_v19  ;;  %3850 = vmatpush1.bf16.msra.mxu1 %v5902_v20  ;;  %v6000_v19 = vld [vmem:[%s8315_s1 + $0x7fc] ss:$20 sps:$4 sm:$0xff]   ;;  %v6003_v20 = vld [vmem:[%s8315_s1 + $0x804] ss:$20 sps:$4 sm:$0xff]  }
  0x90   :  { %3550 = vmatprep.subr.bf16.mxu0 %v5907_v21  ;;  %3851 = vmatprep.subr.bf16.mxu1 %v5910_v22  ;;  %v5998_v21 = vld [vmem:[%s8315_s1 + $0x7f8] ss:$20 sps:$4 sm:$0xff]   ;;  %v6001_v22 = vld [vmem:[%s8315_s1 + $0x800] ss:$20 sps:$4 sm:$0xff]  }
  0x93   :  { %3551 = vmatpush1.bf16.msra.mxu0 %v5905_v23  ;;  %3852 = vmatpush1.bf16.msra.mxu1 %v5908_v24  ;;  %v6006_v23 = vld [vmem:[%s8315_s1 + $0x824] ss:$20 sps:$4 sm:$0xff]   ;;  %v6009_v24 = vld [vmem:[%s8315_s1 + $0x82c] ss:$20 sps:$4 sm:$0xff]  }
  0x94   :  { %3552 = vmatprep.subr.bf16.mxu0 %v5913_v25  ;;  %3853 = vmatprep.subr.bf16.mxu1 %v5916_v26  ;;  %v6004_v25 = vld [vmem:[%s8315_s1 + $0x820] ss:$20 sps:$4 sm:$0xff]   ;;  %v6007_v26 = vld [vmem:[%s8315_s1 + $0x828] ss:$20 sps:$4 sm:$0xff]  }
  0x97   :  { %3553 = vmatpush1.bf16.msra.mxu0 %v5911_v27  ;;  %3854 = vmatpush1.bf16.msra.mxu1 %v5914_v28  ;;  %v6012_v27 = vld [vmem:[%s8315_s1 + $0x84c] ss:$20 sps:$4 sm:$0xff]   ;;  %v6015_v28 = vld [vmem:[%s8315_s1 + $0x854] ss:$20 sps:$4 sm:$0xff]  }
  0x98   :  { %3554 = vmatprep.subr.bf16.mxu0 %v5919_v29  ;;  %3855 = vmatprep.subr.bf16.mxu1 %v5922_v30  ;;  %v6010_v29 = vld [vmem:[%s8315_s1 + $0x848] ss:$20 sps:$4 sm:$0xff]   ;;  %v6013_v30 = vld [vmem:[%s8315_s1 + $0x850] ss:$20 sps:$4 sm:$0xff]  }
  0x9b   :  { %3555 = vmatpush1.bf16.msra.mxu0 %v5917_v31  ;;  %3856 = vmatpush1.bf16.msra.mxu1 %v5920_v32  ;;  %v6018_v31 = vld [vmem:[%s8315_s1 + $0x874] ss:$20 sps:$4 sm:$0xff]   ;;  %v6021_v32 = vld [vmem:[%s8315_s1 + $0x87c] ss:$20 sps:$4 sm:$0xff]  }
  0x9c   :  { %3556 = vmatprep.subr.bf16.mxu0 %v5925_v33  ;;  %3857 = vmatprep.subr.bf16.mxu1 %v5928_v34  ;;  %v6016_v33 = vld [vmem:[%s8315_s1 + $0x870] ss:$20 sps:$4 sm:$0xff]   ;;  %v6019_v34 = vld [vmem:[%s8315_s1 + $0x878] ss:$20 sps:$4 sm:$0xff]  }
  0x9f   :  { %3557 = vmatpush1.bf16.msra.mxu0 %v5923_v35  ;;  %3858 = vmatpush1.bf16.msra.mxu1 %v5926_v36  ;;  %v6024_v35 = vld [vmem:[%s8315_s1 + $0x89c] ss:$20 sps:$4 sm:$0xff]   ;;  %v6027_v36 = vld [vmem:[%s8315_s1 + $0x8a4] ss:$20 sps:$4 sm:$0xff]  }
  0xa0   :  { %3558 = vmatprep.subr.bf16.mxu0 %v5931_v37  ;;  %3859 = vmatprep.subr.bf16.mxu1 %v5934_v38  ;;  %v6022_v37 = vld [vmem:[%s8315_s1 + $0x898] ss:$20 sps:$4 sm:$0xff]   ;;  %v6025_v38 = vld [vmem:[%s8315_s1 + $0x8a0] ss:$20 sps:$4 sm:$0xff]  }
  0xa3   :  { %3559 = vmatpush1.bf16.msra.mxu0 %v5929_v39  ;;  %3860 = vmatpush1.bf16.msra.mxu1 %v5932_v40  ;;  %v6030_v39 = vld [vmem:[%s8315_s1 + $0x8c4] ss:$20 sps:$4 sm:$0xff]   ;;  %v6033_v40 = vld [vmem:[%s8315_s1 + $0x8cc] ss:$20 sps:$4 sm:$0xff]  }
  0xa4   :  { %3560 = vmatprep.subr.bf16.mxu0 %v5937_v41  ;;  %3861 = vmatprep.subr.bf16.mxu1 %v5940_v42  ;;  %v6028_v41 = vld [vmem:[%s8315_s1 + $0x8c0] ss:$20 sps:$4 sm:$0xff]   ;;  %v6031_v42 = vld [vmem:[%s8315_s1 + $0x8c8] ss:$20 sps:$4 sm:$0xff]  }
  0xa7   :  { %3561 = vmatpush1.bf16.msra.mxu0 %v5935_v43  ;;  %3862 = vmatpush1.bf16.msra.mxu1 %v5938_v44  ;;  %v6036_v43 = vld [vmem:[%s8315_s1 + $0x8ec] ss:$20 sps:$4 sm:$0xff]   ;;  %v6039_v44 = vld [vmem:[%s8315_s1 + $0x8f4] ss:$20 sps:$4 sm:$0xff]  }
  0xa8   :  { %3562 = vmatprep.subr.bf16.mxu0 %v5943_v45  ;;  %3863 = vmatprep.subr.bf16.mxu1 %v5946_v46  ;;  %v6034_v45 = vld [vmem:[%s8315_s1 + $0x8e8] ss:$20 sps:$4 sm:$0xff]   ;;  %v6037_v46 = vld [vmem:[%s8315_s1 + $0x8f0] ss:$20 sps:$4 sm:$0xff]  }
  0xab   :  { %3563 = vmatpush1.bf16.msra.mxu0 %v5941_v47  ;;  %3864 = vmatpush1.bf16.msra.mxu1 %v5944_v48  ;;  %v6042_v47 = vld [vmem:[%s8315_s1 + $0x914] ss:$20 sps:$4 sm:$0xff]   ;;  %v6045_v48 = vld [vmem:[%s8315_s1 + $0x91c] ss:$20 sps:$4 sm:$0xff]  }
  0xac   :  { %3564 = vmatprep.subr.bf16.mxu0 %v5949_v49  ;;  %3865 = vmatprep.subr.bf16.mxu1 %v5952_v50  ;;  %v6040_v49 = vld [vmem:[%s8315_s1 + $0x910] ss:$20 sps:$4 sm:$0xff]   ;;  %v6043_v50 = vld [vmem:[%s8315_s1 + $0x918] ss:$20 sps:$4 sm:$0xff]  }
  0xaf   :  { %3565 = vmatpush1.bf16.msra.mxu0 %v5947_v51  ;;  %3866 = vmatpush1.bf16.msra.mxu1 %v5950_v52  ;;  %v6048_v51 = vld [vmem:[%s8315_s1 + $0x93c] ss:$20 sps:$4 sm:$0xff]   ;;  %v6051_v52 = vld [vmem:[%s8315_s1 + $0x944] ss:$20 sps:$4 sm:$0xff]  }
  0xb0   :  { %3566 = vmatprep.subr.bf16.mxu0 %v5955_v53  ;;  %3867 = vmatprep.subr.bf16.mxu1 %v5958_v54  ;;  %v6046_v53 = vld [vmem:[%s8315_s1 + $0x938] ss:$20 sps:$4 sm:$0xff]   ;;  %v6049_v54 = vld [vmem:[%s8315_s1 + $0x940] ss:$20 sps:$4 sm:$0xff]  }
  0xb3   :  { %3567 = vmatpush1.bf16.msra.mxu0 %v5953_v55  ;;  %3868 = vmatpush1.bf16.msra.mxu1 %v5956_v56  ;;  %v6054_v55 = vld [vmem:[%s8315_s1 + $0x964] ss:$20 sps:$4 sm:$0xff]   ;;  %v6057_v56 = vld [vmem:[%s8315_s1 + $0x96c] ss:$20 sps:$4 sm:$0xff]  }
  0xb4   :  { %3568 = vmatprep.subr.bf16.mxu0 %v5961_v57  ;;  %3869 = vmatprep.subr.bf16.mxu1 %v5964_v58  ;;  %v6052_v57 = vld [vmem:[%s8315_s1 + $0x960] ss:$20 sps:$4 sm:$0xff]   ;;  %v6055_v58 = vld [vmem:[%s8315_s1 + $0x968] ss:$20 sps:$4 sm:$0xff]  }
  0xb7   :  { %3569 = vmatpush1.bf16.msra.mxu0 %v5959_v59  ;;  %3870 = vmatpush1.bf16.msra.mxu1 %v5962_v60  ;;  %v6060_v59 = vld [vmem:[%s8315_s1 + $0x98c] ss:$20 sps:$4 sm:$0xff]   ;;  %v6063_v60 = vld [vmem:[%s8315_s1 + $0x994] ss:$20 sps:$4 sm:$0xff]  }
  0xb8   :  { %3570 = vmatprep.subr.bf16.mxu0 %v5967_v61  ;;  %3871 = vmatprep.subr.bf16.mxu1 %v5970_v62  ;;  %v6058_v61 = vld [vmem:[%s8315_s1 + $0x988] ss:$20 sps:$4 sm:$0xff]   ;;  %v6061_v62 = vld [vmem:[%s8315_s1 + $0x990] ss:$20 sps:$4 sm:$0xff]  }
  0xbb   :  { %3571 = vmatpush1.bf16.msra.mxu0 %v5965_v63  ;;  %3872 = vmatpush1.bf16.msra.mxu1 %v5968_v0  ;;  %v6066_v63 = vld [vmem:[%s8315_s1 + $0x9b4] ss:$20 sps:$4 sm:$0xff]   ;;  %v6069_v0 = vld [vmem:[%s8315_s1 + $0x9bc] ss:$20 sps:$4 sm:$0xff]  }
  0xbc   :  { %3572 = vmatprep.subr.bf16.mxu0 %v5973_v1  ;;  %3873 = vmatprep.subr.bf16.mxu1 %v5976_v2  ;;  %v6064_v1 = vld [vmem:[%s8315_s1 + $0x9b0] ss:$20 sps:$4 sm:$0xff]   ;;  %v6067_v2 = vld [vmem:[%s8315_s1 + $0x9b8] ss:$20 sps:$4 sm:$0xff]  }
  0xbf   :  { %3573 = vmatpush1.bf16.msra.mxu0 %v5971_v3  ;;  %3874 = vmatpush1.bf16.msra.mxu1 %v5974_v4  ;;  %v6072_v3 = vld [vmem:[%s8315_s1 + $0x9dc] ss:$20 sps:$4 sm:$0xff]   ;;  %v6075_v4 = vld [vmem:[%s8315_s1 + $0x9e4] ss:$20 sps:$4 sm:$0xff]  }
  0xc0   :  { %3585 = vmatprep.subr.bf16.mxu0 %v5982_v5  ;;  %3886 = vmatprep.subr.bf16.mxu1 %v5985_v6  ;;  %v6070_v5 = vld [vmem:[%s8315_s1 + $0x9d8] ss:$20 sps:$4 sm:$0xff]   ;;  %v6073_v6 = vld [vmem:[%s8315_s1 + $0x9e0] ss:$20 sps:$4 sm:$0xff]  }
  0xc2   :  { %3575 = vmatmul.mubr.bf16.vlgmr.msra.gmra.mrb[0].mxu0 %v5977_v7  ;;  %3876 = vmatmul.mubr.bf16.vlgmr.msra.gmra.mrb[0].mxu1 %v5977_v7  ;;  %v6081_v7 = vld [vmem:[%s8315_s1 + $0xa04] ss:$20 sps:$4 sm:$0xff]  }
  0xc3   :  { %3586 = vmatpush1.bf16.msra.mxu0 %v5980_v8  ;;  %3887 = vmatpush1.bf16.msra.mxu1 %v5983_v9  ;;  %v6084_v8 = vld [vmem:[%s8315_s1 + $0xa0c] ss:$20 sps:$4 sm:$0xff]  }
  0xc4   :  { %3587 = vmatprep.subr.bf16.mxu0 %v5988_v10  ;;  %3888 = vmatprep.subr.bf16.mxu1 %v5991_v11  ;;  %v6076_v9 = vld [vmem:[%s8316_s0 + $0x18] ss:$52 sps:$4 sm:$0xff]   ;;  %v6079_v10 = vld [vmem:[%s8315_s1 + $0xa00] ss:$20 sps:$4 sm:$0xff]   ;;  %v6082_v11 = vld [vmem:[%s8315_s1 + $0xa08] ss:$20 sps:$4 sm:$0xff]  }
  0xc5   :  { %3617 = vmatprep.mubr.bf16.mxu0 %v6078_v12  ;;  %3918 = vmatprep.mubr.bf16.mxu1 %v6078_v12  ;;  %v6087_v12 = vld [vmem:[%s8315_s1 + $0xa2c] ss:$20 sps:$4 sm:$0xff]  }
  0xc7   :  { %3588 = vmatpush1.bf16.msra.mxu0 %v5986_v13  ;;  %3889 = vmatpush1.bf16.msra.mxu1 %v5989_v14  ;;  %v6090_v13 = vld [vmem:[%s8315_s1 + $0xa34] ss:$20 sps:$4 sm:$0xff]   ;;  %v6177_v14 = vld [vmem:[%s8316_s0 + $0x24] ss:$52 sps:$4 sm:$0xff]  }
  0xc8   :  { %3589 = vmatprep.subr.bf16.mxu0 %v5994_v15  ;;  %3890 = vmatprep.subr.bf16.mxu1 %v5997_v16  ;;  %v6085_v15 = vld [vmem:[%s8315_s1 + $0xa28] ss:$20 sps:$4 sm:$0xff]   ;;  %v6088_v16 = vld [vmem:[%s8315_s1 + $0xa30] ss:$20 sps:$4 sm:$0xff]  }
  0xcb   :  { %3590 = vmatpush1.bf16.msra.mxu0 %v5992_v17  ;;  %3891 = vmatpush1.bf16.msra.mxu1 %v5995_v18  ;;  %v6093_v17 = vld [vmem:[%s8315_s1 + $0xa54] ss:$20 sps:$4 sm:$0xff]   ;;  %v6096_v18 = vld [vmem:[%s8315_s1 + $0xa5c] ss:$20 sps:$4 sm:$0xff]  }
  0xcc   :  { %3591 = vmatprep.subr.bf16.mxu0 %v6000_v19  ;;  %3892 = vmatprep.subr.bf16.mxu1 %v6003_v20  ;;  %v6091_v19 = vld [vmem:[%s8315_s1 + $0xa50] ss:$20 sps:$4 sm:$0xff]   ;;  %v6094_v20 = vld [vmem:[%s8315_s1 + $0xa58] ss:$20 sps:$4 sm:$0xff]  }
  0xcf   :  { %3592 = vmatpush1.bf16.msra.mxu0 %v5998_v21  ;;  %3893 = vmatpush1.bf16.msra.mxu1 %v6001_v22  ;;  %v6099_v21 = vld [vmem:[%s8315_s1 + $0xa7c] ss:$20 sps:$4 sm:$0xff]   ;;  %v6102_v22 = vld [vmem:[%s8315_s1 + $0xa84] ss:$20 sps:$4 sm:$0xff]  }
  0xd0   :  { %3593 = vmatprep.subr.bf16.mxu0 %v6006_v23  ;;  %3894 = vmatprep.subr.bf16.mxu1 %v6009_v24  ;;  %v6097_v23 = vld [vmem:[%s8315_s1 + $0xa78] ss:$20 sps:$4 sm:$0xff]   ;;  %v6100_v24 = vld [vmem:[%s8315_s1 + $0xa80] ss:$20 sps:$4 sm:$0xff]  }
  0xd3   :  { %3594 = vmatpush1.bf16.msra.mxu0 %v6004_v25  ;;  %3895 = vmatpush1.bf16.msra.mxu1 %v6007_v26  ;;  %v6105_v25 = vld [vmem:[%s8315_s1 + $0xaa4] ss:$20 sps:$4 sm:$0xff]   ;;  %v6108_v26 = vld [vmem:[%s8315_s1 + $0xaac] ss:$20 sps:$4 sm:$0xff]  }
  0xd4   :  { %3595 = vmatprep.subr.bf16.mxu0 %v6012_v27  ;;  %3896 = vmatprep.subr.bf16.mxu1 %v6015_v28  ;;  %v6103_v27 = vld [vmem:[%s8315_s1 + $0xaa0] ss:$20 sps:$4 sm:$0xff]   ;;  %v6106_v28 = vld [vmem:[%s8315_s1 + $0xaa8] ss:$20 sps:$4 sm:$0xff]  }
  0xd7   :  { %3596 = vmatpush1.bf16.msra.mxu0 %v6010_v29  ;;  %3897 = vmatpush1.bf16.msra.mxu1 %v6013_v30  ;;  %v6111_v29 = vld [vmem:[%s8315_s1 + $0xacc] ss:$20 sps:$4 sm:$0xff]   ;;  %v6114_v30 = vld [vmem:[%s8315_s1 + $0xad4] ss:$20 sps:$4 sm:$0xff]  }
  0xd8   :  { %3597 = vmatprep.subr.bf16.mxu0 %v6018_v31  ;;  %3898 = vmatprep.subr.bf16.mxu1 %v6021_v32  ;;  %v6109_v31 = vld [vmem:[%s8315_s1 + $0xac8] ss:$20 sps:$4 sm:$0xff]   ;;  %v6112_v32 = vld [vmem:[%s8315_s1 + $0xad0] ss:$20 sps:$4 sm:$0xff]  }
  0xdb   :  { %3598 = vmatpush1.bf16.msra.mxu0 %v6016_v33  ;;  %3899 = vmatpush1.bf16.msra.mxu1 %v6019_v34  ;;  %v6117_v33 = vld [vmem:[%s8315_s1 + $0xaf4] ss:$20 sps:$4 sm:$0xff]   ;;  %v6120_v34 = vld [vmem:[%s8315_s1 + $0xafc] ss:$20 sps:$4 sm:$0xff]  }
  0xdc   :  { %3599 = vmatprep.subr.bf16.mxu0 %v6024_v35  ;;  %3900 = vmatprep.subr.bf16.mxu1 %v6027_v36  ;;  %v6115_v35 = vld [vmem:[%s8315_s1 + $0xaf0] ss:$20 sps:$4 sm:$0xff]   ;;  %v6118_v36 = vld [vmem:[%s8315_s1 + $0xaf8] ss:$20 sps:$4 sm:$0xff]  }
  0xdf   :  { %3600 = vmatpush1.bf16.msra.mxu0 %v6022_v37  ;;  %3901 = vmatpush1.bf16.msra.mxu1 %v6025_v38  ;;  %v6123_v37 = vld [vmem:[%s8315_s1 + $0xb1c] ss:$20 sps:$4 sm:$0xff]   ;;  %v6126_v38 = vld [vmem:[%s8315_s1 + $0xb24] ss:$20 sps:$4 sm:$0xff]  }
  0xe0   :  { %3601 = vmatprep.subr.bf16.mxu0 %v6030_v39  ;;  %3902 = vmatprep.subr.bf16.mxu1 %v6033_v40  ;;  %v6121_v39 = vld [vmem:[%s8315_s1 + $0xb18] ss:$20 sps:$4 sm:$0xff]   ;;  %v6124_v40 = vld [vmem:[%s8315_s1 + $0xb20] ss:$20 sps:$4 sm:$0xff]  }
  0xe3   :  { %3602 = vmatpush1.bf16.msra.mxu0 %v6028_v41  ;;  %3903 = vmatpush1.bf16.msra.mxu1 %v6031_v42  ;;  %v6129_v41 = vld [vmem:[%s8315_s1 + $0xb44] ss:$20 sps:$4 sm:$0xff]   ;;  %v6132_v42 = vld [vmem:[%s8315_s1 + $0xb4c] ss:$20 sps:$4 sm:$0xff]  }
  0xe4   :  { %3603 = vmatprep.subr.bf16.mxu0 %v6036_v43  ;;  %3904 = vmatprep.subr.bf16.mxu1 %v6039_v44  ;;  %v6127_v43 = vld [vmem:[%s8315_s1 + $0xb40] ss:$20 sps:$4 sm:$0xff]   ;;  %v6130_v44 = vld [vmem:[%s8315_s1 + $0xb48] ss:$20 sps:$4 sm:$0xff]  }
  0xe7   :  { %3604 = vmatpush1.bf16.msra.mxu0 %v6034_v45  ;;  %3905 = vmatpush1.bf16.msra.mxu1 %v6037_v46  ;;  %v6135_v45 = vld [vmem:[%s8315_s1 + $0xb6c] ss:$20 sps:$4 sm:$0xff]   ;;  %v6138_v46 = vld [vmem:[%s8315_s1 + $0xb74] ss:$20 sps:$4 sm:$0xff]  }
  0xe8   :  { %3605 = vmatprep.subr.bf16.mxu0 %v6042_v47  ;;  %3906 = vmatprep.subr.bf16.mxu1 %v6045_v48  ;;  %v6133_v47 = vld [vmem:[%s8315_s1 + $0xb68] ss:$20 sps:$4 sm:$0xff]   ;;  %v6136_v48 = vld [vmem:[%s8315_s1 + $0xb70] ss:$20 sps:$4 sm:$0xff]  }
  0xeb   :  { %3606 = vmatpush1.bf16.msra.mxu0 %v6040_v49  ;;  %3907 = vmatpush1.bf16.msra.mxu1 %v6043_v50  ;;  %v6141_v49 = vld [vmem:[%s8315_s1 + $0xb94] ss:$20 sps:$4 sm:$0xff]   ;;  %v6144_v50 = vld [vmem:[%s8315_s1 + $0xb9c] ss:$20 sps:$4 sm:$0xff]  }
  0xec   :  { %3607 = vmatprep.subr.bf16.mxu0 %v6048_v51  ;;  %3908 = vmatprep.subr.bf16.mxu1 %v6051_v52  ;;  %v6139_v51 = vld [vmem:[%s8315_s1 + $0xb90] ss:$20 sps:$4 sm:$0xff]   ;;  %v6142_v52 = vld [vmem:[%s8315_s1 + $0xb98] ss:$20 sps:$4 sm:$0xff]  }
  0xef   :  { %3608 = vmatpush1.bf16.msra.mxu0 %v6046_v53  ;;  %3909 = vmatpush1.bf16.msra.mxu1 %v6049_v54  ;;  %v6147_v53 = vld [vmem:[%s8315_s1 + $0xbbc] ss:$20 sps:$4 sm:$0xff]   ;;  %v6150_v54 = vld [vmem:[%s8315_s1 + $0xbc4] ss:$20 sps:$4 sm:$0xff]  }
  0xf0   :  { %3609 = vmatprep.subr.bf16.mxu0 %v6054_v55  ;;  %3910 = vmatprep.subr.bf16.mxu1 %v6057_v56  ;;  %v6145_v55 = vld [vmem:[%s8315_s1 + $0xbb8] ss:$20 sps:$4 sm:$0xff]   ;;  %v6148_v56 = vld [vmem:[%s8315_s1 + $0xbc0] ss:$20 sps:$4 sm:$0xff]  }
  0xf3   :  { %3610 = vmatpush1.bf16.msra.mxu0 %v6052_v57  ;;  %3911 = vmatpush1.bf16.msra.mxu1 %v6055_v58  ;;  %v6153_v57 = vld [vmem:[%s8315_s1 + $0xbe4] ss:$20 sps:$4 sm:$0xff]   ;;  %v6156_v58 = vld [vmem:[%s8315_s1 + $0xbec] ss:$20 sps:$4 sm:$0xff]  }
  0xf4   :  { %3611 = vmatprep.subr.bf16.mxu0 %v6060_v59  ;;  %3912 = vmatprep.subr.bf16.mxu1 %v6063_v60  ;;  %v6151_v59 = vld [vmem:[%s8315_s1 + $0xbe0] ss:$20 sps:$4 sm:$0xff]   ;;  %v6154_v60 = vld [vmem:[%s8315_s1 + $0xbe8] ss:$20 sps:$4 sm:$0xff]  }
  0xf7   :  { %3612 = vmatpush1.bf16.msra.mxu0 %v6058_v61  ;;  %3913 = vmatpush1.bf16.msra.mxu1 %v6061_v62  ;;  %v6159_v61 = vld [vmem:[%s8315_s1 + $0xc0c] ss:$20 sps:$4 sm:$0xff]   ;;  %v6162_v62 = vld [vmem:[%s8315_s1 + $0xc14] ss:$20 sps:$4 sm:$0xff]  }
  0xf8   :  { %3613 = vmatprep.subr.bf16.mxu0 %v6066_v63  ;;  %3914 = vmatprep.subr.bf16.mxu1 %v6069_v0  ;;  %v6157_v63 = vld [vmem:[%s8315_s1 + $0xc08] ss:$20 sps:$4 sm:$0xff]   ;;  %v6160_v0 = vld [vmem:[%s8315_s1 + $0xc10] ss:$20 sps:$4 sm:$0xff]  }
  0xfb   :  { %3614 = vmatpush1.bf16.msra.mxu0 %v6064_v1  ;;  %3915 = vmatpush1.bf16.msra.mxu1 %v6067_v2  ;;  %v6165_v1 = vld [vmem:[%s8315_s1 + $0xc34] ss:$20 sps:$4 sm:$0xff]   ;;  %v6168_v2 = vld [vmem:[%s8315_s1 + $0xc3c] ss:$20 sps:$4 sm:$0xff]  }
  0xfc   :  { %3615 = vmatprep.subr.bf16.mxu0 %v6072_v3  ;;  %3916 = vmatprep.subr.bf16.mxu1 %v6075_v4  ;;  %v6163_v3 = vld [vmem:[%s8315_s1 + $0xc30] ss:$20 sps:$4 sm:$0xff]   ;;  %v6166_v4 = vld [vmem:[%s8315_s1 + $0xc38] ss:$20 sps:$4 sm:$0xff]  }
  0xff   :  { %3616 = vmatpush1.bf16.msra.mxu0 %v6070_v5  ;;  %3917 = vmatpush1.bf16.msra.mxu1 %v6073_v6  ;;  %v6171_v5 = vld [vmem:[%s8315_s1 + $0xc5c] ss:$20 sps:$4 sm:$0xff]   ;;  %v6174_v6 = vld [vmem:[%s8315_s1 + $0xc64] ss:$20 sps:$4 sm:$0xff]  }
 0x100   :  { %3628 = vmatprep.subr.bf16.mxu0 %v6081_v7  ;;  %3929 = vmatprep.subr.bf16.mxu1 %v6084_v8  ;;  %v6169_v7 = vld [vmem:[%s8315_s1 + $0xc58] ss:$20 sps:$4 sm:$0xff]   ;;  %v6172_v8 = vld [vmem:[%s8315_s1 + $0xc60] ss:$20 sps:$4 sm:$0xff]  }
 0x102   :  { %3618 = vmatmul.mubr.bf16.vlgmr.msra.gmra.mrb[0].mxu0 %v6076_v9  ;;  %3919 = vmatmul.mubr.bf16.vlgmr.msra.gmra.mrb[0].mxu1 %v6076_v9  ;;  %v6180_v9 = vld [vmem:[%s8315_s1 + $0xc84] ss:$20 sps:$4 sm:$0xff]  }
 0x103   :  { %3629 = vmatpush1.bf16.msra.mxu0 %v6079_v10  ;;  %3930 = vmatpush1.bf16.msra.mxu1 %v6082_v11  ;;  %v6175_v10 = vld [vmem:[%s8316_s0 + $0x20] ss:$52 sps:$4 sm:$0xff]  }
 0x104   :  { %3630 = vmatprep.subr.bf16.mxu0 %v6087_v12  ;;  %3931 = vmatprep.subr.bf16.mxu1 %v6090_v13  ;;  %v6183_v11 = vld [vmem:[%s8315_s1 + $0xc8c] ss:$20 sps:$4 sm:$0xff]   ;;  %v6181_v13 = vld [vmem:[%s8315_s1 + $0xc88] ss:$20 sps:$4 sm:$0xff]  }
 0x105   :  { %3660 = vmatprep.mubr.bf16.mxu0 %v6177_v14  ;;  %3961 = vmatprep.mubr.bf16.mxu1 %v6177_v14  ;;  %v6178_v12 = vld [vmem:[%s8315_s1 + $0xc80] ss:$20 sps:$4 sm:$0xff]  }
 0x106   :  { %v6186_v14 = vld [vmem:[%s8315_s1 + $0xcac] ss:$20 sps:$4 sm:$0xff]  }
 0x107   :  { %3631 = vmatpush1.bf16.msra.mxu0 %v6085_v15  ;;  %3932 = vmatpush1.bf16.msra.mxu1 %v6088_v16  ;;  %v6189_v15 = vld [vmem:[%s8315_s1 + $0xcb4] ss:$20 sps:$4 sm:$0xff]   ;;  %v6276_v16 = vld [vmem:[%s8316_s0 + $0x2c] ss:$52 sps:$4 sm:$0xff]  }
 0x108   :  { %3632 = vmatprep.subr.bf16.mxu0 %v6093_v17  ;;  %3933 = vmatprep.subr.bf16.mxu1 %v6096_v18  ;;  %v6184_v17 = vld [vmem:[%s8315_s1 + $0xca8] ss:$20 sps:$4 sm:$0xff]   ;;  %v6187_v18 = vld [vmem:[%s8315_s1 + $0xcb0] ss:$20 sps:$4 sm:$0xff]  }
 0x10b   :  { %3633 = vmatpush1.bf16.msra.mxu0 %v6091_v19  ;;  %3934 = vmatpush1.bf16.msra.mxu1 %v6094_v20  ;;  %v6192_v19 = vld [vmem:[%s8315_s1 + $0xcd4] ss:$20 sps:$4 sm:$0xff]   ;;  %v6195_v20 = vld [vmem:[%s8315_s1 + $0xcdc] ss:$20 sps:$4 sm:$0xff]  }
 0x10c   :  { %3634 = vmatprep.subr.bf16.mxu0 %v6099_v21  ;;  %3935 = vmatprep.subr.bf16.mxu1 %v6102_v22  ;;  %v6190_v21 = vld [vmem:[%s8315_s1 + $0xcd0] ss:$20 sps:$4 sm:$0xff]   ;;  %v6193_v22 = vld [vmem:[%s8315_s1 + $0xcd8] ss:$20 sps:$4 sm:$0xff]  }
 0x10f   :  { %3635 = vmatpush1.bf16.msra.mxu0 %v6097_v23  ;;  %3936 = vmatpush1.bf16.msra.mxu1 %v6100_v24  ;;  %v6198_v23 = vld [vmem:[%s8315_s1 + $0xcfc] ss:$20 sps:$4 sm:$0xff]   ;;  %v6201_v24 = vld [vmem:[%s8315_s1 + $0xd04] ss:$20 sps:$4 sm:$0xff]  }
 0x110   :  { %3636 = vmatprep.subr.bf16.mxu0 %v6105_v25  ;;  %3937 = vmatprep.subr.bf16.mxu1 %v6108_v26  ;;  %v6196_v25 = vld [vmem:[%s8315_s1 + $0xcf8] ss:$20 sps:$4 sm:$0xff]   ;;  %v6199_v26 = vld [vmem:[%s8315_s1 + $0xd00] ss:$20 sps:$4 sm:$0xff]  }
 0x113   :  { %3637 = vmatpush1.bf16.msra.mxu0 %v6103_v27  ;;  %3938 = vmatpush1.bf16.msra.mxu1 %v6106_v28  ;;  %v6204_v27 = vld [vmem:[%s8315_s1 + $0xd24] ss:$20 sps:$4 sm:$0xff]   ;;  %v6207_v28 = vld [vmem:[%s8315_s1 + $0xd2c] ss:$20 sps:$4 sm:$0xff]  }
 0x114   :  { %3638 = vmatprep.subr.bf16.mxu0 %v6111_v29  ;;  %3939 = vmatprep.subr.bf16.mxu1 %v6114_v30  ;;  %v6202_v29 = vld [vmem:[%s8315_s1 + $0xd20] ss:$20 sps:$4 sm:$0xff]   ;;  %v6205_v30 = vld [vmem:[%s8315_s1 + $0xd28] ss:$20 sps:$4 sm:$0xff]  }
 0x117   :  { %3639 = vmatpush1.bf16.msra.mxu0 %v6109_v31  ;;  %3940 = vmatpush1.bf16.msra.mxu1 %v6112_v32  ;;  %v6210_v31 = vld [vmem:[%s8315_s1 + $0xd4c] ss:$20 sps:$4 sm:$0xff]   ;;  %v6213_v32 = vld [vmem:[%s8315_s1 + $0xd54] ss:$20 sps:$4 sm:$0xff]  }
 0x118   :  { %3640 = vmatprep.subr.bf16.mxu0 %v6117_v33  ;;  %3941 = vmatprep.subr.bf16.mxu1 %v6120_v34  ;;  %v6208_v33 = vld [vmem:[%s8315_s1 + $0xd48] ss:$20 sps:$4 sm:$0xff]   ;;  %v6211_v34 = vld [vmem:[%s8315_s1 + $0xd50] ss:$20 sps:$4 sm:$0xff]  }
 0x11b   :  { %3641 = vmatpush1.bf16.msra.mxu0 %v6115_v35  ;;  %3942 = vmatpush1.bf16.msra.mxu1 %v6118_v36  ;;  %v6216_v35 = vld [vmem:[%s8315_s1 + $0xd74] ss:$20 sps:$4 sm:$0xff]   ;;  %v6219_v36 = vld [vmem:[%s8315_s1 + $0xd7c] ss:$20 sps:$4 sm:$0xff]  }
 0x11c   :  { %3642 = vmatprep.subr.bf16.mxu0 %v6123_v37  ;;  %3943 = vmatprep.subr.bf16.mxu1 %v6126_v38  ;;  %v6214_v37 = vld [vmem:[%s8315_s1 + $0xd70] ss:$20 sps:$4 sm:$0xff]   ;;  %v6217_v38 = vld [vmem:[%s8315_s1 + $0xd78] ss:$20 sps:$4 sm:$0xff]  }
 0x11f   :  { %3643 = vmatpush1.bf16.msra.mxu0 %v6121_v39  ;;  %3944 = vmatpush1.bf16.msra.mxu1 %v6124_v40  ;;  %v6222_v39 = vld [vmem:[%s8315_s1 + $0xd9c] ss:$20 sps:$4 sm:$0xff]   ;;  %v6225_v40 = vld [vmem:[%s8315_s1 + $0xda4] ss:$20 sps:$4 sm:$0xff]  }
 0x120   :  { %3644 = vmatprep.subr.bf16.mxu0 %v6129_v41  ;;  %3945 = vmatprep.subr.bf16.mxu1 %v6132_v42  ;;  %v6220_v41 = vld [vmem:[%s8315_s1 + $0xd98] ss:$20 sps:$4 sm:$0xff]   ;;  %v6223_v42 = vld [vmem:[%s8315_s1 + $0xda0] ss:$20 sps:$4 sm:$0xff]  }
 0x123   :  { %3645 = vmatpush1.bf16.msra.mxu0 %v6127_v43  ;;  %3946 = vmatpush1.bf16.msra.mxu1 %v6130_v44  ;;  %v6228_v43 = vld [vmem:[%s8315_s1 + $0xdc4] ss:$20 sps:$4 sm:$0xff]   ;;  %v6231_v44 = vld [vmem:[%s8315_s1 + $0xdcc] ss:$20 sps:$4 sm:$0xff]  }
 0x124   :  { %3646 = vmatprep.subr.bf16.mxu0 %v6135_v45  ;;  %3947 = vmatprep.subr.bf16.mxu1 %v6138_v46  ;;  %v6226_v45 = vld [vmem:[%s8315_s1 + $0xdc0] ss:$20 sps:$4 sm:$0xff]   ;;  %v6229_v46 = vld [vmem:[%s8315_s1 + $0xdc8] ss:$20 sps:$4 sm:$0xff]  }
 0x127   :  { %3647 = vmatpush1.bf16.msra.mxu0 %v6133_v47  ;;  %3948 = vmatpush1.bf16.msra.mxu1 %v6136_v48  ;;  %v6234_v47 = vld [vmem:[%s8315_s1 + $0xdec] ss:$20 sps:$4 sm:$0xff]   ;;  %v6237_v48 = vld [vmem:[%s8315_s1 + $0xdf4] ss:$20 sps:$4 sm:$0xff]  }
 0x128   :  { %3648 = vmatprep.subr.bf16.mxu0 %v6141_v49  ;;  %3949 = vmatprep.subr.bf16.mxu1 %v6144_v50  ;;  %v6232_v49 = vld [vmem:[%s8315_s1 + $0xde8] ss:$20 sps:$4 sm:$0xff]   ;;  %v6235_v50 = vld [vmem:[%s8315_s1 + $0xdf0] ss:$20 sps:$4 sm:$0xff]  }
 0x12b   :  { %3649 = vmatpush1.bf16.msra.mxu0 %v6139_v51  ;;  %3950 = vmatpush1.bf16.msra.mxu1 %v6142_v52  ;;  %v6240_v51 = vld [vmem:[%s8315_s1 + $0xe14] ss:$20 sps:$4 sm:$0xff]   ;;  %v6243_v52 = vld [vmem:[%s8315_s1 + $0xe1c] ss:$20 sps:$4 sm:$0xff]  }
 0x12c   :  { %3650 = vmatprep.subr.bf16.mxu0 %v6147_v53  ;;  %3951 = vmatprep.subr.bf16.mxu1 %v6150_v54  ;;  %v6238_v53 = vld [vmem:[%s8315_s1 + $0xe10] ss:$20 sps:$4 sm:$0xff]   ;;  %v6241_v54 = vld [vmem:[%s8315_s1 + $0xe18] ss:$20 sps:$4 sm:$0xff]  }
 0x12f   :  { %3651 = vmatpush1.bf16.msra.mxu0 %v6145_v55  ;;  %3952 = vmatpush1.bf16.msra.mxu1 %v6148_v56  ;;  %v6246_v55 = vld [vmem:[%s8315_s1 + $0xe3c] ss:$20 sps:$4 sm:$0xff]   ;;  %v6249_v56 = vld [vmem:[%s8315_s1 + $0xe44] ss:$20 sps:$4 sm:$0xff]  }
 0x130   :  { %3652 = vmatprep.subr.bf16.mxu0 %v6153_v57  ;;  %3953 = vmatprep.subr.bf16.mxu1 %v6156_v58  ;;  %v6244_v57 = vld [vmem:[%s8315_s1 + $0xe38] ss:$20 sps:$4 sm:$0xff]   ;;  %v6247_v58 = vld [vmem:[%s8315_s1 + $0xe40] ss:$20 sps:$4 sm:$0xff]  }
 0x133   :  { %3653 = vmatpush1.bf16.msra.mxu0 %v6151_v59  ;;  %3954 = vmatpush1.bf16.msra.mxu1 %v6154_v60  ;;  %v6252_v59 = vld [vmem:[%s8315_s1 + $0xe64] ss:$20 sps:$4 sm:$0xff]   ;;  %v6255_v60 = vld [vmem:[%s8315_s1 + $0xe6c] ss:$20 sps:$4 sm:$0xff]  }
 0x134   :  { %3654 = vmatprep.subr.bf16.mxu0 %v6159_v61  ;;  %3955 = vmatprep.subr.bf16.mxu1 %v6162_v62  ;;  %v6250_v61 = vld [vmem:[%s8315_s1 + $0xe60] ss:$20 sps:$4 sm:$0xff]   ;;  %v6253_v62 = vld [vmem:[%s8315_s1 + $0xe68] ss:$20 sps:$4 sm:$0xff]  }
 0x137   :  { %3655 = vmatpush1.bf16.msra.mxu0 %v6157_v63  ;;  %3956 = vmatpush1.bf16.msra.mxu1 %v6160_v0  ;;  %v6258_v63 = vld [vmem:[%s8315_s1 + $0xe8c] ss:$20 sps:$4 sm:$0xff]   ;;  %v6261_v0 = vld [vmem:[%s8315_s1 + $0xe94] ss:$20 sps:$4 sm:$0xff]  }
 0x138   :  { %3656 = vmatprep.subr.bf16.mxu0 %v6165_v1  ;;  %3957 = vmatprep.subr.bf16.mxu1 %v6168_v2  ;;  %v6256_v1 = vld [vmem:[%s8315_s1 + $0xe88] ss:$20 sps:$4 sm:$0xff]   ;;  %v6259_v2 = vld [vmem:[%s8315_s1 + $0xe90] ss:$20 sps:$4 sm:$0xff]  }
 0x13b   :  { %3657 = vmatpush1.bf16.msra.mxu0 %v6163_v3  ;;  %3958 = vmatpush1.bf16.msra.mxu1 %v6166_v4  ;;  %v6264_v3 = vld [vmem:[%s8315_s1 + $0xeb4] ss:$20 sps:$4 sm:$0xff]   ;;  %v6267_v4 = vld [vmem:[%s8315_s1 + $0xebc] ss:$20 sps:$4 sm:$0xff]  }
 0x13c   :  { %3658 = vmatprep.subr.bf16.mxu0 %v6171_v5  ;;  %3959 = vmatprep.subr.bf16.mxu1 %v6174_v6  ;;  %v6262_v5 = vld [vmem:[%s8315_s1 + $0xeb0] ss:$20 sps:$4 sm:$0xff]   ;;  %v6265_v6 = vld [vmem:[%s8315_s1 + $0xeb8] ss:$20 sps:$4 sm:$0xff]  }
 0x13f   :  { %3659 = vmatpush1.bf16.msra.mxu0 %v6169_v7  ;;  %3960 = vmatpush1.bf16.msra.mxu1 %v6172_v8  ;;  %v6270_v7 = vld [vmem:[%s8315_s1 + $0xedc] ss:$20 sps:$4 sm:$0xff]   ;;  %v6273_v8 = vld [vmem:[%s8315_s1 + $0xee4] ss:$20 sps:$4 sm:$0xff]  }
 0x140   :  { %3671 = vmatprep.subr.bf16.mxu0 %v6180_v9  ;;  %3972 = vmatprep.subr.bf16.mxu1 %v6183_v11  ;;  %v6268_v9 = vld [vmem:[%s8315_s1 + $0xed8] ss:$20 sps:$4 sm:$0xff]  }
 0x141   :  { %v6279_v11 = vld [vmem:[%s8315_s1 + $0xf04] ss:$20 sps:$4 sm:$0xff]  }
 0x142   :  { %3661 = vmatmul.mubr.bf16.vlgmr.msra.gmra.mrb[0].mxu0 %v6175_v10  ;;  %3962 = vmatmul.mubr.bf16.vlgmr.msra.gmra.mrb[0].mxu1 %v6175_v10  ;;  %v6271_v10 = vld [vmem:[%s8315_s1 + $0xee0] ss:$20 sps:$4 sm:$0xff]  }
 0x143   :  { %3672 = vmatpush1.bf16.msra.mxu0 %v6178_v12  ;;  %3973 = vmatpush1.bf16.msra.mxu1 %v6181_v13  ;;  %v7705_v12 = vld [vmem:[%s8316_s0 + $0x28] ss:$52 sps:$4 sm:$0xff]   ;;  %v6282_v13 = vld [vmem:[%s8315_s1 + $0xf0c] ss:$20 sps:$4 sm:$0xff]  }
 0x144   :  { %3673 = vmatprep.subr.bf16.mxu0 %v6186_v14  ;;  %3974 = vmatprep.subr.bf16.mxu1 %v6189_v15  ;;  %v6277_v14 = vld [vmem:[%s8315_s1 + $0xf00] ss:$20 sps:$4 sm:$0xff]   ;;  %v6280_v15 = vld [vmem:[%s8315_s1 + $0xf08] ss:$20 sps:$4 sm:$0xff]  }
 0x145   :  { %3703 = vmatprep.mubr.bf16.mxu0 %v6276_v16  ;;  %4004 = vmatprep.mubr.bf16.mxu1 %v6276_v16  ;;  %v6285_v16 = vld [vmem:[%s8315_s1 + $0xf2c] ss:$20 sps:$4 sm:$0xff]  }
 0x147   :  { %3674 = vmatpush1.bf16.msra.mxu0 %v6184_v17  ;;  %3975 = vmatpush1.bf16.msra.mxu1 %v6187_v18  ;;  %v6288_v17 = vld [vmem:[%s8315_s1 + $0xf34] ss:$20 sps:$4 sm:$0xff]  }
 0x148   :  { %3675 = vmatprep.subr.bf16.mxu0 %v6192_v19  ;;  %3976 = vmatprep.subr.bf16.mxu1 %v6195_v20  ;;  %v6283_v18 = vld [vmem:[%s8315_s1 + $0xf28] ss:$20 sps:$4 sm:$0xff]   ;;  %v6286_v19 = vld [vmem:[%s8315_s1 + $0xf30] ss:$20 sps:$4 sm:$0xff]  }
 0x149   :  { %v6291_v20 = vld [vmem:[%s8315_s1 + $0xf54] ss:$20 sps:$4 sm:$0xff]  }
 0x14b   :  { %3676 = vmatpush1.bf16.msra.mxu0 %v6190_v21  ;;  %3977 = vmatpush1.bf16.msra.mxu1 %v6193_v22  ;;  %v6294_v21 = vld [vmem:[%s8315_s1 + $0xf5c] ss:$20 sps:$4 sm:$0xff]   ;;  %v6481_v22 = vmov 0  }
 0x14c   :  { %3677 = vmatprep.subr.bf16.mxu0 %v6198_v23  ;;  %3978 = vmatprep.subr.bf16.mxu1 %v6201_v24  ;;  %v6289_v23 = vld [vmem:[%s8315_s1 + $0xf50] ss:$20 sps:$4 sm:$0xff]   ;;  %v6292_v24 = vld [vmem:[%s8315_s1 + $0xf58] ss:$20 sps:$4 sm:$0xff]  }
 0x14f   :  { %3678 = vmatpush1.bf16.msra.mxu0 %v6196_v25  ;;  %3979 = vmatpush1.bf16.msra.mxu1 %v6199_v26  ;;  %v6297_v25 = vld [vmem:[%s8315_s1 + $0xf7c] ss:$20 sps:$4 sm:$0xff]   ;;  %v6300_v26 = vld [vmem:[%s8315_s1 + $0xf84] ss:$20 sps:$4 sm:$0xff]  }
 0x150   :  { %3679 = vmatprep.subr.bf16.mxu0 %v6204_v27  ;;  %3980 = vmatprep.subr.bf16.mxu1 %v6207_v28  ;;  %v6295_v27 = vld [vmem:[%s8315_s1 + $0xf78] ss:$20 sps:$4 sm:$0xff]   ;;  %v6298_v28 = vld [vmem:[%s8315_s1 + $0xf80] ss:$20 sps:$4 sm:$0xff]  }
 0x153   :  { %3680 = vmatpush1.bf16.msra.mxu0 %v6202_v29  ;;  %3981 = vmatpush1.bf16.msra.mxu1 %v6205_v30  ;;  %v6303_v29 = vld [vmem:[%s8315_s1 + $0xfa4] ss:$20 sps:$4 sm:$0xff]   ;;  %v6306_v30 = vld [vmem:[%s8315_s1 + $0xfac] ss:$20 sps:$4 sm:$0xff]  }
 0x154   :  { %3681 = vmatprep.subr.bf16.mxu0 %v6210_v31  ;;  %3982 = vmatprep.subr.bf16.mxu1 %v6213_v32  ;;  %v6301_v31 = vld [vmem:[%s8315_s1 + $0xfa0] ss:$20 sps:$4 sm:$0xff]   ;;  %v6304_v32 = vld [vmem:[%s8315_s1 + $0xfa8] ss:$20 sps:$4 sm:$0xff]  }
 0x157   :  { %3682 = vmatpush1.bf16.msra.mxu0 %v6208_v33  ;;  %3983 = vmatpush1.bf16.msra.mxu1 %v6211_v34  ;;  %v6309_v33 = vld [vmem:[%s8315_s1 + $0xfcc] ss:$20 sps:$4 sm:$0xff]   ;;  %v6312_v34 = vld [vmem:[%s8315_s1 + $0xfd4] ss:$20 sps:$4 sm:$0xff]  }
 0x158   :  { %3683 = vmatprep.subr.bf16.mxu0 %v6216_v35  ;;  %3984 = vmatprep.subr.bf16.mxu1 %v6219_v36  ;;  %v6307_v35 = vld [vmem:[%s8315_s1 + $0xfc8] ss:$20 sps:$4 sm:$0xff]   ;;  %v6310_v36 = vld [vmem:[%s8315_s1 + $0xfd0] ss:$20 sps:$4 sm:$0xff]  }
 0x15b   :  { %3684 = vmatpush1.bf16.msra.mxu0 %v6214_v37  ;;  %3985 = vmatpush1.bf16.msra.mxu1 %v6217_v38  ;;  %v6315_v37 = vld [vmem:[%s8315_s1 + $0xff4] ss:$20 sps:$4 sm:$0xff]   ;;  %v6318_v38 = vld [vmem:[%s8315_s1 + $0xffc] ss:$20 sps:$4 sm:$0xff]  }
 0x15c   :  { %3685 = vmatprep.subr.bf16.mxu0 %v6222_v39  ;;  %3986 = vmatprep.subr.bf16.mxu1 %v6225_v40  ;;  %v6313_v39 = vld [vmem:[%s8315_s1 + $0xff0] ss:$20 sps:$4 sm:$0xff]   ;;  %v6316_v40 = vld [vmem:[%s8315_s1 + $0xff8] ss:$20 sps:$4 sm:$0xff]  }
 0x15f   :  { %3686 = vmatpush1.bf16.msra.mxu0 %v6220_v41  ;;  %3987 = vmatpush1.bf16.msra.mxu1 %v6223_v42  ;;  %v6321_v41 = vld [vmem:[%s8315_s1 + $0x101c] ss:$20 sps:$4 sm:$0xff]   ;;  %v6324_v42 = vld [vmem:[%s8315_s1 + $0x1024] ss:$20 sps:$4 sm:$0xff]  }
 0x160   :  { %3687 = vmatprep.subr.bf16.mxu0 %v6228_v43  ;;  %3988 = vmatprep.subr.bf16.mxu1 %v6231_v44  ;;  %v6319_v43 = vld [vmem:[%s8315_s1 + $0x1018] ss:$20 sps:$4 sm:$0xff]   ;;  %v6322_v44 = vld [vmem:[%s8315_s1 + $0x1020] ss:$20 sps:$4 sm:$0xff]  }
 0x163   :  { %3688 = vmatpush1.bf16.msra.mxu0 %v6226_v45  ;;  %3989 = vmatpush1.bf16.msra.mxu1 %v6229_v46  ;;  %v6326_v45 = vld [vmem:[%s8315_s1 + $0x150] ss:$20 sps:$4 sm:$0xff]  }
 0x164   :  { %3689 = vmatprep.subr.bf16.mxu0 %v6234_v47  ;;  %3990 = vmatprep.subr.bf16.mxu1 %v6237_v48  ;;  %v6328_v46 = vld [vmem:[%s8315_s1 + $0x3d0] ss:$20 sps:$4 sm:$0xff]  }
 0x165   :  { %v7811_v47 = vld [vmem:[%s8316_s0 + $0x30] ss:$52 sps:$4 sm:$0xff]  }
 0x166   :  { %v6327_v48 = vld [vmem:[%s8315_s1 + $0x10] ss:$20 sps:$4 sm:$0xff]  }
 0x167   :  { %3690 = vmatpush1.bf16.msra.mxu0 %v6232_v49  ;;  %3991 = vmatpush1.bf16.msra.mxu1 %v6235_v50  ;;  %v6329_v49 = vld [vmem:[%s8315_s1 + $0x290] ss:$20 sps:$4 sm:$0xff]   ;;  %v6330_v50 = vld [vmem:[%s8315_s1 + $0x178] ss:$20 sps:$4 sm:$0xff]  }
 0x168   :  { %3691 = vmatprep.subr.bf16.mxu0 %v6240_v51  ;;  %3992 = vmatprep.subr.bf16.mxu1 %v6243_v52  ;;  %v6332_v51 = vld [vmem:[%s8315_s1 + $0x3f8] ss:$20 sps:$4 sm:$0xff]  }
 0x169   :  { %v6331_v52 = vld [vmem:[%s8315_s1 + $0x38] ss:$20 sps:$4 sm:$0xff]  }
 0x16b   :  { %3692 = vmatpush1.bf16.msra.mxu0 %v6238_v53  ;;  %3993 = vmatpush1.bf16.msra.mxu1 %v6241_v54  ;;  %v6333_v53 = vld [vmem:[%s8315_s1 + $0x2b8] ss:$20 sps:$4 sm:$0xff]   ;;  %v6334_v54 = vld [vmem:[%s8315_s1 + $0x1a0] ss:$20 sps:$4 sm:$0xff]  }
 0x16c   :  { %3693 = vmatprep.subr.bf16.mxu0 %v6246_v55  ;;  %3994 = vmatprep.subr.bf16.mxu1 %v6249_v56  ;;  %v6336_v55 = vld [vmem:[%s8315_s1 + $0x420] ss:$20 sps:$4 sm:$0xff]  }
 0x16d   :  { %v6335_v56 = vld [vmem:[%s8315_s1 + $0x60] ss:$20 sps:$4 sm:$0xff]  }
 0x16f   :  { %3694 = vmatpush1.bf16.msra.mxu0 %v6244_v57  ;;  %3995 = vmatpush1.bf16.msra.mxu1 %v6247_v58  ;;  %v6470_v57 = vld [vmem:[%s8316_s0 + $0x4] ss:$52 sps:$4 sm:$0xff]   ;;  %v6471_v58 = vld [vmem:[%s8316_s0 + $0xc] ss:$52 sps:$4 sm:$0xff]  }
 0x170   :  { %3695 = vmatprep.subr.bf16.mxu0 %v6252_v59  ;;  %3996 = vmatprep.subr.bf16.mxu1 %v6255_v60  ;;  %v6337_v59 = vld [vmem:[%s8315_s1 + $0x2e0] ss:$20 sps:$4 sm:$0xff]   ;;  %v6338_v60 = vld [vmem:[%s8315_s1 + $0x1c8] ss:$20 sps:$4 sm:$0xff]  }
 0x173   :  { %3696 = vmatpush1.bf16.msra.mxu0 %v6250_v61  ;;  %3997 = vmatpush1.bf16.msra.mxu1 %v6253_v62  ;;  %v6340_v61 = vld [vmem:[%s8315_s1 + $0x448] ss:$20 sps:$4 sm:$0xff]  }
 0x174   :  { %3697 = vmatprep.subr.bf16.mxu0 %v6258_v63  ;;  %3998 = vmatprep.subr.bf16.mxu1 %v6261_v0  ;;  %v6339_v62 = vld [vmem:[%s8315_s1 + $0x88] ss:$20 sps:$4 sm:$0xff]   ;;  %v6342_v0 = vld [vmem:[%s8315_s1 + $0x1f0] ss:$20 sps:$4 sm:$0xff]  }
 0x175   :  { %v6341_v63 = vld [vmem:[%s8315_s1 + $0x308] ss:$20 sps:$4 sm:$0xff]  }
 0x177   :  { %3698 = vmatpush1.bf16.msra.mxu0 %v6256_v1  ;;  %3999 = vmatpush1.bf16.msra.mxu1 %v6259_v2  ;;  %v6344_v1 = vld [vmem:[%s8315_s1 + $0x470] ss:$20 sps:$4 sm:$0xff]  }
 0x178   :  { %3699 = vmatprep.subr.bf16.mxu0 %v6264_v3  ;;  %4000 = vmatprep.subr.bf16.mxu1 %v6267_v4  ;;  %v6343_v2 = vld [vmem:[%s8315_s1 + $0xb0] ss:$20 sps:$4 sm:$0xff]   ;;  %v6346_v4 = vld [vmem:[%s8315_s1 + $0x218] ss:$20 sps:$4 sm:$0xff]  }
 0x179   :  { %v6345_v3 = vld [vmem:[%s8315_s1 + $0x330] ss:$20 sps:$4 sm:$0xff]  }
 0x17b   :  { %3700 = vmatpush1.bf16.msra.mxu0 %v6262_v5  ;;  %4001 = vmatpush1.bf16.msra.mxu1 %v6265_v6  ;;  %v6348_v5 = vld [vmem:[%s8315_s1 + $0x498] ss:$20 sps:$4 sm:$0xff]  }
 0x17c   :  { %3701 = vmatprep.subr.bf16.mxu0 %v6270_v7  ;;  %4002 = vmatprep.subr.bf16.mxu1 %v6273_v8  ;;  %v6347_v6 = vld [vmem:[%s8315_s1 + $0xd8] ss:$20 sps:$4 sm:$0xff]   ;;  %v6350_v8 = vld [vmem:[%s8315_s1 + $0x240] ss:$20 sps:$4 sm:$0xff]  }
 0x17d   :  { %v6349_v7 = vld [vmem:[%s8315_s1 + $0x358] ss:$20 sps:$4 sm:$0xff]  }
 0x17f   :  { %3702 = vmatpush1.bf16.msra.mxu0 %v6268_v9  ;;  %4003 = vmatpush1.bf16.msra.mxu1 %v6271_v10  ;;  %v6352_v9 = vld [vmem:[%s8315_s1 + $0x4c0] ss:$20 sps:$4 sm:$0xff]  }
 0x180   :  { %3714 = vmatprep.subr.bf16.mxu0 %v6279_v11  ;;  %4015 = vmatprep.subr.bf16.mxu1 %v6282_v13  ;;  %v6351_v10 = vld [vmem:[%s8315_s1 + $0x100] ss:$20 sps:$4 sm:$0xff]   ;;  %v6354_v13 = vld [vmem:[%s8315_s1 + $0x268] ss:$20 sps:$4 sm:$0xff]  }
 0x181   :  { %v6353_v11 = vld [vmem:[%s8315_s1 + $0x380] ss:$20 sps:$4 sm:$0xff]  }
 0x182   :  { %3704 = vmatmul.mubr.bf16.vlgmr.msra.gmra.mrb[0].mxu0 %v7705_v12  ;;  %4005 = vmatmul.mubr.bf16.vlgmr.msra.gmra.mrb[0].mxu1 %v7705_v12 }
 0x183   :  { %3715 = vmatpush1.bf16.msra.mxu0 %v6277_v14  ;;  %4016 = vmatpush1.bf16.msra.mxu1 %v6280_v15  ;;  %v6356_v14 = vld [vmem:[%s8315_s1 + $0x4e8] ss:$20 sps:$4 sm:$0xff]  }
 0x184   :  { %3716 = vmatprep.subr.bf16.mxu0 %v6285_v16  ;;  %4017 = vmatprep.subr.bf16.mxu1 %v6288_v17  ;;  %v6355_v15 = vld [vmem:[%s8315_s1 + $0x128] ss:$20 sps:$4 sm:$0xff]   ;;  %v6358_v17 = vld [vmem:[%s8315_s1 + $0x650] ss:$20 sps:$4 sm:$0xff]  }
 0x185   :  { %3746 = vmatprep.mubr.bf16.mxu0 %v6481_v22  ;;  %4047 = vmatprep.mubr.bf16.mxu1 %v6481_v22  ;;  %v6357_v16 = vld [vmem:[%s8315_s1 + $0x3a8] ss:$20 sps:$4 sm:$0xff]   ;;  %v6364_v22 = vld [vmem:[%s8315_s1 + $0x8f8] ss:$20 sps:$4 sm:$0xff]  }
 0x187   :  { %3717 = vmatpush1.bf16.msra.mxu0 %v6283_v18  ;;  %4018 = vmatpush1.bf16.msra.mxu1 %v6286_v19  ;;  %v6360_v18 = vld [vmem:[%s8315_s1 + $0x8d0] ss:$20 sps:$4 sm:$0xff]  }
 0x188   :  { %3718 = vmatprep.subr.bf16.mxu0 %v6291_v20  ;;  %4019 = vmatprep.subr.bf16.mxu1 %v6294_v21  ;;  %v6359_v19 = vld [vmem:[%s8315_s1 + $0x510] ss:$20 sps:$4 sm:$0xff]   ;;  %v6362_v21 = vld [vmem:[%s8315_s1 + $0x678] ss:$20 sps:$4 sm:$0xff]  }
 0x189   :  { %v6361_v20 = vld [vmem:[%s8315_s1 + $0x790] ss:$20 sps:$4 sm:$0xff]  }
 0x18b   :  { %3719 = vmatpush1.bf16.msra.mxu0 %v6289_v23  ;;  %4020 = vmatpush1.bf16.msra.mxu1 %v6292_v24  ;;  %v6363_v23 = vld [vmem:[%s8315_s1 + $0x538] ss:$20 sps:$4 sm:$0xff]  }
 0x18c   :  { %3720 = vmatprep.subr.bf16.mxu0 %v6297_v25  ;;  %4021 = vmatprep.subr.bf16.mxu1 %v6300_v26  ;;  %v6365_v24 = vld [vmem:[%s8315_s1 + $0x7b8] ss:$20 sps:$4 sm:$0xff]   ;;  %v6472_v25 = vld [vmem:[%s8316_s0] ss:$52 sps:$4 sm:$0xff]   ;;  %v6473_v26 = vld [vmem:[%s8316_s0 + $0x8] ss:$52 sps:$4 sm:$0xff]  }
 0x18f   :  { %3721 = vmatpush1.bf16.msra.mxu0 %v6295_v27  ;;  %4022 = vmatpush1.bf16.msra.mxu1 %v6298_v28  ;;  %v6366_v27 = vld [vmem:[%s8315_s1 + $0x6a0] ss:$20 sps:$4 sm:$0xff]  }
 0x190   :  { %3722 = vmatprep.subr.bf16.mxu0 %v6303_v29  ;;  %4023 = vmatprep.subr.bf16.mxu1 %v6306_v30  ;;  %v6368_v28 = vld [vmem:[%s8315_s1 + $0x920] ss:$20 sps:$4 sm:$0xff]   ;;  %v6475_v30 = vld [vmem:[%s8316_s0 + $0x1c] ss:$52 sps:$4 sm:$0xff]  }
 0x191   :  { %v6474_v29 = vld [vmem:[%s8316_s0 + $0x14] ss:$52 sps:$4 sm:$0xff]  }
 0x193   :  { %3723 = vmatpush1.bf16.msra.mxu0 %v6301_v31  ;;  %4024 = vmatpush1.bf16.msra.mxu1 %v6304_v32  ;;  %v6367_v31 = vld [vmem:[%s8315_s1 + $0x560] ss:$20 sps:$4 sm:$0xff]  }
 0x194   :  { %3724 = vmatprep.subr.bf16.mxu0 %v6309_v33  ;;  %4025 = vmatprep.subr.bf16.mxu1 %v6312_v34  ;;  %v6369_v32 = vld [vmem:[%s8315_s1 + $0x7e0] ss:$20 sps:$4 sm:$0xff]   ;;  %v6370_v33 = vld [vmem:[%s8315_s1 + $0x6c8] ss:$20 sps:$4 sm:$0xff]  }
 0x195   :  { %v6372_v34 = vld [vmem:[%s8315_s1 + $0x948] ss:$20 sps:$4 sm:$0xff]  }
 0x197   :  { %3725 = vmatpush1.bf16.msra.mxu0 %v6307_v35  ;;  %4026 = vmatpush1.bf16.msra.mxu1 %v6310_v36  ;;  %v6371_v35 = vld [vmem:[%s8315_s1 + $0x588] ss:$20 sps:$4 sm:$0xff]  }
 0x198   :  { %3726 = vmatprep.subr.bf16.mxu0 %v6315_v37  ;;  %4027 = vmatprep.subr.bf16.mxu1 %v6318_v38  ;;  %v6373_v36 = vld [vmem:[%s8315_s1 + $0x808] ss:$20 sps:$4 sm:$0xff]   ;;  %v6374_v37 = vld [vmem:[%s8315_s1 + $0x6f0] ss:$20 sps:$4 sm:$0xff]  }
 0x199   :  { %v6376_v38 = vld [vmem:[%s8315_s1 + $0x970] ss:$20 sps:$4 sm:$0xff]  }
 0x19b   :  { %3727 = vmatpush1.bf16.msra.mxu0 %v6313_v39  ;;  %4028 = vmatpush1.bf16.msra.mxu1 %v6316_v40  ;;  %v6375_v39 = vld [vmem:[%s8315_s1 + $0x5b0] ss:$20 sps:$4 sm:$0xff]  }
 0x19c   :  { %3728 = vmatprep.subr.bf16.mxu0 %v6321_v41  ;;  %4029 = vmatprep.subr.bf16.mxu1 %v6324_v42  ;;  %v6377_v40 = vld [vmem:[%s8315_s1 + $0x830] ss:$20 sps:$4 sm:$0xff]   ;;  %v6378_v41 = vld [vmem:[%s8315_s1 + $0x718] ss:$20 sps:$4 sm:$0xff]  }
 0x19d   :  { %v6380_v42 = vld [vmem:[%s8315_s1 + $0x998] ss:$20 sps:$4 sm:$0xff]  }
 0x19f   :  { %3729 = vmatpush1.bf16.msra.mxu0 %v6319_v43  ;;  %4030 = vmatpush1.bf16.msra.mxu1 %v6322_v44  ;;  %v6379_v43 = vld [vmem:[%s8315_s1 + $0x5d8] ss:$20 sps:$4 sm:$0xff]  }
 0x1a0   :  { %5390 = vmatprep.subr.bf16.mxu0 %v6326_v45  ;;  %5412 = vmatprep.subr.bf16.mxu1 %v6328_v46  ;;  %v6381_v44 = vld [vmem:[%s8315_s1 + $0x858] ss:$20 sps:$4 sm:$0xff]   ;;  %v6382_v45 = vld [vmem:[%s8315_s1 + $0x740] ss:$20 sps:$4 sm:$0xff]  }
 0x1a1   :  { %v6384_v46 = vld [vmem:[%s8315_s1 + $0x9c0] ss:$20 sps:$4 sm:$0xff]  }
 0x1a2   :  { %3747 = vmatmul.mubr.bf16.vlgmr.msra.gmra.mrb[0].mxu0 %v7811_v47  ;;  %4048 = vmatmul.mubr.bf16.vlgmr.msra.gmra.mrb[0].mxu1 %v7811_v47 }
 0x1a3   :  { %5391 = vmatpush3.bf16.msra.mxu0 %v6327_v48  ;;  %5413 = vmatpush3.bf16.msra.mxu1 %v6329_v49  ;;  %v6383_v48 = vld [vmem:[%s8315_s1 + $0x600] ss:$20 sps:$4 sm:$0xff]  }
 0x1a4   :  { %5392 = vmatprep.subr.bf16.mxu0 %v6330_v50  ;;  %5414 = vmatprep.subr.bf16.mxu1 %v6332_v51  ;;  %v6385_v49 = vld [vmem:[%s8315_s1 + $0x880] ss:$20 sps:$4 sm:$0xff]   ;;  %v6386_v50 = vld [vmem:[%s8315_s1 + $0x768] ss:$20 sps:$4 sm:$0xff]  }
 0x1a5   :  { %4090 = vmatprep.mubr.bf16.mxu0 %v6470_v57  ;;  %4131 = vmatprep.mubr.bf16.mxu1 %v6471_v58  ;;  %v6388_v51 = vld [vmem:[%s8315_s1 + $0x9e8] ss:$20 sps:$4 sm:$0xff]   ;;  %v6393_v57 = vld [vmem:[%s8315_s1 + $0xc90] ss:$20 sps:$4 sm:$0xff]   ;;  %v6394_v58 = vld [vmem:[%s8315_s1 + $0xb78] ss:$20 sps:$4 sm:$0xff]  }
 0x1a7   :  { %5393 = vmatpush3.bf16.msra.mxu0 %v6331_v52  ;;  %5415 = vmatpush3.bf16.msra.mxu1 %v6333_v53  ;;  %v6387_v52 = vld [vmem:[%s8315_s1 + $0x628] ss:$20 sps:$4 sm:$0xff]  }
 0x1a8   :  { %5394 = vmatprep.subr.bf16.mxu0 %v6334_v54  ;;  %5416 = vmatprep.subr.bf16.mxu1 %v6336_v55  ;;  %v6389_v53 = vld [vmem:[%s8315_s1 + $0x8a8] ss:$20 sps:$4 sm:$0xff]   ;;  %v6390_v54 = vld [vmem:[%s8315_s1 + $0xb50] ss:$20 sps:$4 sm:$0xff]  }
 0x1a9   :  { %v6392_v55 = vld [vmem:[%s8315_s1 + $0xdd0] ss:$20 sps:$4 sm:$0xff]  }
 0x1ab   :  { %5395 = vmatpush3.bf16.msra.mxu0 %v6335_v56  ;;  %5417 = vmatpush3.bf16.msra.mxu1 %v6337_v59  ;;  %v6391_v56 = vld [vmem:[%s8315_s1 + $0xa10] ss:$20 sps:$4 sm:$0xff]   ;;  %v6396_v59 = vld [vmem:[%s8315_s1 + $0xdf8] ss:$20 sps:$4 sm:$0xff]  }
 0x1ac   :  { %5396 = vmatprep.subr.bf16.mxu0 %v6338_v60  ;;  %5418 = vmatprep.subr.bf16.mxu1 %v6340_v61  ;;  %v6476_v60 = vld [vmem:[%s8316_s0 + $0x10] ss:$52 sps:$4 sm:$0xff]   ;;  %v6477_v61 = vld [vmem:[%s8316_s0 + $0x18] ss:$52 sps:$4 sm:$0xff]  }
 0x1af   :  { %5397 = vmatpush3.bf16.msra.mxu0 %v6339_v62  ;;  %5419 = vmatpush3.bf16.msra.mxu1 %v6341_v63  ;;  %v6395_v62 = vld [vmem:[%s8315_s1 + $0xa38] ss:$20 sps:$4 sm:$0xff]  }
 0x1b0   :  { %5398 = vmatprep.subr.bf16.mxu0 %v6342_v0  ;;  %5420 = vmatprep.subr.bf16.mxu1 %v6344_v1  ;;  %v6397_v63 = vld [vmem:[%s8315_s1 + $0xcb8] ss:$20 sps:$4 sm:$0xff]   ;;  %v6398_v0 = vld [vmem:[%s8315_s1 + $0xba0] ss:$20 sps:$4 sm:$0xff]  }
 0x1b1   :  { %v6400_v1 = vld [vmem:[%s8315_s1 + $0xe20] ss:$20 sps:$4 sm:$0xff]  }
 0x1b3   :  { %5399 = vmatpush3.bf16.msra.mxu0 %v6343_v2  ;;  %5421 = vmatpush3.bf16.msra.mxu1 %v6345_v3  ;;  %v6478_v2 = vld [vmem:[%s8316_s0 + $0x24] ss:$52 sps:$4 sm:$0xff]   ;;  %v6479_v3 = vld [vmem:[%s8316_s0 + $0x2c] ss:$52 sps:$4 sm:$0xff]  }
 0x1b4   :  { %5400 = vmatprep.subr.bf16.mxu0 %v6346_v4  ;;  %5422 = vmatprep.subr.bf16.mxu1 %v6348_v5  ;;  %v6399_v4 = vld [vmem:[%s8315_s1 + $0xa60] ss:$20 sps:$4 sm:$0xff]  }
 0x1b5   :  { %v6401_v5 = vld [vmem:[%s8315_s1 + $0xce0] ss:$20 sps:$4 sm:$0xff]  }
 0x1b7   :  { %5401 = vmatpush3.bf16.msra.mxu0 %v6347_v6  ;;  %5423 = vmatpush3.bf16.msra.mxu1 %v6349_v7  ;;  %v6402_v6 = vld [vmem:[%s8315_s1 + $0xbc8] ss:$20 sps:$4 sm:$0xff]  }
 0x1b8   :  { %5402 = vmatprep.subr.bf16.mxu0 %v6350_v8  ;;  %5424 = vmatprep.subr.bf16.mxu1 %v6352_v9  ;;  %v6404_v7 = vld [vmem:[%s8315_s1 + $0xe48] ss:$20 sps:$4 sm:$0xff]  }
 0x1b9   :  { %v6403_v8 = vld [vmem:[%s8315_s1 + $0xa88] ss:$20 sps:$4 sm:$0xff]  }
 0x1ba   :  { %v6405_v9 = vld [vmem:[%s8315_s1 + $0xd08] ss:$20 sps:$4 sm:$0xff]  }
 0x1bb   :  { %5403 = vmatpush3.bf16.msra.mxu0 %v6351_v10  ;;  %5425 = vmatpush3.bf16.msra.mxu1 %v6353_v11  ;;  %v6406_v10 = vld [vmem:[%s8315_s1 + $0xbf0] ss:$20 sps:$4 sm:$0xff]  }
 0x1bc   :  { %5404 = vmatprep.subr.bf16.mxu0 %v6354_v13  ;;  %5426 = vmatprep.subr.bf16.mxu1 %v6356_v14  ;;  %v6408_v11 = vld [vmem:[%s8315_s1 + $0xe70] ss:$20 sps:$4 sm:$0xff]  }
 0x1bd   :  { %v6407_v13 = vld [vmem:[%s8315_s1 + $0xab0] ss:$20 sps:$4 sm:$0xff]  }
 0x1be   :  { %v6409_v14 = vld [vmem:[%s8315_s1 + $0xd30] ss:$20 sps:$4 sm:$0xff]  }
 0x1bf   :  { %5405 = vmatpush3.bf16.msra.mxu0 %v6355_v15  ;;  %5427 = vmatpush3.bf16.msra.mxu1 %v6357_v16  ;;  %v6410_v15 = vld [vmem:[%s8315_s1 + $0xc18] ss:$20 sps:$4 sm:$0xff]  }
 0x1c0   :  { %5434 = vmatprep.subr.bf16.mxu0 %v6358_v17  ;;  %5456 = vmatprep.subr.bf16.mxu1 %v6360_v18  ;;  %v6412_v16 = vld [vmem:[%s8315_s1 + $0xe98] ss:$20 sps:$4 sm:$0xff]  }
 0x1c1   :  { %v6411_v17 = vld [vmem:[%s8315_s1 + $0xad8] ss:$20 sps:$4 sm:$0xff]  }
 0x1c2   :  { %4091 = vmatmul.mubr.bf16.vlgmr.msra.gmra.mrb[4].mxu0 %v6472_v25  ;;  %4132 = vmatmul.mubr.bf16.vlgmr.msra.gmra.mrb[4].mxu1 %v6473_v26  ;;  %v6413_v18 = vld [vmem:[%s8315_s1 + $0xd58] ss:$20 sps:$4 sm:$0xff]   ;;  %v6419_v25 = vld [vmem:[%s8315_s1 + $0xb28] ss:$20 sps:$4 sm:$0xff]  }
 0x1c3   :  { %5435 = vmatpush3.bf16.msra.mxu0 %v6359_v19  ;;  %5457 = vmatpush3.bf16.msra.mxu1 %v6361_v20  ;;  %v6414_v19 = vld [vmem:[%s8315_s1 + $0xc40] ss:$20 sps:$4 sm:$0xff]   ;;  %v6421_v26 = vld [vmem:[%s8315_s1 + $0xda8] ss:$20 sps:$4 sm:$0xff]  }
 0x1c4   :  { %5436 = vmatprep.subr.bf16.mxu0 %v6362_v21  ;;  %5458 = vmatprep.subr.bf16.mxu1 %v6364_v22  ;;  %v6416_v20 = vld [vmem:[%s8315_s1 + $0xec0] ss:$20 sps:$4 sm:$0xff]  }
 0x1c5   :  { %4172 = vmatprep.mubr.bf16.mxu0 %v6474_v29  ;;  %4213 = vmatprep.mubr.bf16.mxu1 %v6475_v30  ;;  %v6415_v21 = vld [vmem:[%s8315_s1 + $0xb00] ss:$20 sps:$4 sm:$0xff]   ;;  %v6482_v29 = vmov 0.0  }
 0x1c6   :  { %v6417_v22 = vld [vmem:[%s8315_s1 + $0xd80] ss:$20 sps:$4 sm:$0xff]  }
 0x1c7   :  { %5437 = vmatpush3.bf16.msra.mxu0 %v6363_v23  ;;  %5459 = vmatpush3.bf16.msra.mxu1 %v6365_v24  ;;  %v6418_v23 = vld [vmem:[%s8315_s1 + $0xc68] ss:$20 sps:$4 sm:$0xff]   ;;  %v6432_v30 = vld [vmem:[%s8317_s3] sm:$0xff]  }
 0x1c8   :  { %5438 = vmatprep.subr.bf16.mxu0 %v6366_v27  ;;  %5460 = vmatprep.subr.bf16.mxu1 %v6368_v28  ;;  %v6420_v24 = vld [vmem:[%s8315_s1 + $0xee8] ss:$20 sps:$4 sm:$0xff]   ;;  %v6430_v27 = vld [vmem:[%s8317_s3 + $0x40] sm:$0xff]  }
 0x1c9   :  { %v6422_v28 = vld [vmem:[%s8315_s1 + $0xf10] ss:$20 sps:$4 sm:$0xff]  }
 0x1cb   :  { %5439 = vmatpush3.bf16.msra.mxu0 %v6367_v31  ;;  %5461 = vmatpush3.bf16.msra.mxu1 %v6369_v32  ;;  %v6434_v31 = vld [vmem:[%s8317_s3 + $0x48] sm:$0xff]   ;;  %v6480_v32 = vld [vmem:[%s8316_s0 + $0x20] ss:$52 sps:$4 sm:$0xff]  }
 0x1cc   :  { %5440 = vmatprep.subr.bf16.mxu0 %v6370_v33  ;;  %5462 = vmatprep.subr.bf16.mxu1 %v6372_v34  ;;  %v6423_v33 = vld [vmem:[%s8315_s1 + $0xf38] ss:$20 sps:$4 sm:$0xff]  }
 0x1cd   :  { %v6436_v34 = vld [vmem:[%s8317_s3 + $0x8] sm:$0xff]  }
 0x1cf   :  { %5441 = vmatpush3.bf16.msra.mxu0 %v6371_v35  ;;  %5463 = vmatpush3.bf16.msra.mxu1 %v6373_v36  ;;  %v6424_v35 = vld [vmem:[%s8315_s1 + $0xf60] ss:$20 sps:$4 sm:$0xff]  }
 0x1d0   :  { %5442 = vmatprep.subr.bf16.mxu0 %v6374_v37  ;;  %5464 = vmatprep.subr.bf16.mxu1 %v6376_v38  ;;  %v6440_v36 = vld [vmem:[%s8317_s3 + $0x10] sm:$0xff]   ;;  %v6442_v37 = vld [vmem:[%s8317_s3 + $0x58] sm:$0xff]  }
 0x1d1   :  { %v6425_v38 = vld [vmem:[%s8315_s1 + $0xf88] ss:$20 sps:$4 sm:$0xff]  }
 0x1d3   :  { %5443 = vmatpush3.bf16.msra.mxu0 %v6375_v39  ;;  %5465 = vmatpush3.bf16.msra.mxu1 %v6377_v40  ;;  %v6444_v39 = vld [vmem:[%s8317_s3 + $0x18] sm:$0xff]   ;;  %v6446_v40 = vld [vmem:[%s8317_s3 + $0x60] sm:$0xff]  }
 0x1d4   :  { %5444 = vmatprep.subr.bf16.mxu0 %v6378_v41  ;;  %5466 = vmatprep.subr.bf16.mxu1 %v6380_v42  ;;  %v6426_v41 = vld [vmem:[%s8315_s1 + $0xfb0] ss:$20 sps:$4 sm:$0xff]  }
 0x1d5   :  { %v6448_v42 = vld [vmem:[%s8317_s3 + $0x20] sm:$0xff]  }
 0x1d7   :  { %5445 = vmatpush3.bf16.msra.mxu0 %v6379_v43  ;;  %5467 = vmatpush3.bf16.msra.mxu1 %v6381_v44  ;;  %v6450_v43 = vld [vmem:[%s8317_s3 + $0x68] sm:$0xff]  }
 0x1d8   :  { %5446 = vmatprep.subr.bf16.mxu0 %v6382_v45  ;;  %5468 = vmatprep.subr.bf16.mxu1 %v6384_v46  ;;  %v6427_v44 = vld [vmem:[%s8315_s1 + $0xfd8] ss:$20 sps:$4 sm:$0xff]   ;;  %v6454_v46 = vld [vmem:[%s8317_s3 + $0x70] sm:$0xff]  }
 0x1d9   :  { %v6452_v45 = vld [vmem:[%s8317_s3 + $0x28] sm:$0xff]  }
 0x1db   :  { %5447 = vmatpush3.bf16.msra.mxu0 %v6383_v48  ;;  %5469 = vmatpush3.bf16.msra.mxu1 %v6385_v49  ;;  %v6428_v48 = vld [vmem:[%s8315_s1 + $0x1000] ss:$20 sps:$4 sm:$0xff]  }
 0x1dc   :  { %5448 = vmatprep.subr.bf16.mxu0 %v6386_v50  ;;  %5470 = vmatprep.subr.bf16.mxu1 %v6388_v51  ;;  %v6456_v49 = vld [vmem:[%s8317_s3 + $0x30] sm:$0xff]   ;;  %v6458_v50 = vld [vmem:[%s8317_s3 + $0x78] sm:$0xff]  }
 0x1dd   :  { %v6429_v51 = vld [vmem:[%s8315_s1 + $0x1028] ss:$20 sps:$4 sm:$0xff]  }
 0x1df   :  { %5449 = vmatpush3.bf16.msra.mxu0 %v6387_v52  ;;  %5471 = vmatpush3.bf16.msra.mxu1 %v6389_v53  ;;  %v6431_v52 = vld [vmem:[%s8317_s3 + $0xc0] sm:$0xff]   ;;  %v6460_v53 = vld [vmem:[%s8317_s3 + $0x38] sm:$0xff]  }
 0x1e0   :  { %5478 = vmatprep.subr.bf16.mxu0 %v6390_v54  ;;  %5500 = vmatprep.subr.bf16.mxu1 %v6392_v55  ;;  %v6433_v54 = vld [vmem:[%s8317_s3 + $0x80] sm:$0xff]   ;;  %v6435_v55 = vld [vmem:[%s8317_s3 + $0xc8] sm:$0xff]  }
 0x1e2   :  { %4173 = vmatmul.mubr.bf16.vlgmr.msra.gmra.mrb[8].mxu0 %v6476_v60  ;;  %4214 = vmatmul.mubr.bf16.vlgmr.msra.gmra.mrb[8].mxu1 %v6477_v61  ;;  %v6447_v60 = vld [vmem:[%s8317_s3 + $0xe0] sm:$0xff]  }
 0x1e3   :  { %5479 = vmatpush3.bf16.msra.mxu0 %v6391_v56  ;;  %5501 = vmatpush3.bf16.msra.mxu1 %v6393_v57  ;;  %v6437_v56 = vld [vmem:[%s8317_s3 + $0x88] sm:$0xff]   ;;  %v6439_v57 = vld [vmem:[%s8317_s3 + $0xd0] sm:$0xff]   ;;  %v6449_v61 = vld [vmem:[%s8317_s3 + $0xa0] sm:$0xff]  }
 0x1e4   :  { %5480 = vmatprep.subr.bf16.mxu0 %v6394_v58  ;;  %5502 = vmatprep.subr.bf16.mxu1 %v6396_v59  ;;  %v6441_v58 = vld [vmem:[%s8317_s3 + $0x90] sm:$0xff]   ;;  %v6445_v59 = vld [vmem:[%s8317_s3 + $0x98] sm:$0xff]  }
 0x1e5   :  { %4254 = vmatprep.mubr.bf16.mxu0 %v6478_v2  ;;  %4295 = vmatprep.mubr.bf16.mxu1 %v6479_v3  ;;  %v6459_v2 = vld [vmem:[%s8317_s3 + $0xf8] sm:$0xff]  }
 0x1e6   :  { %v6461_v3 = vld [vmem:[%s8317_s3 + $0xb8] sm:$0xff]  }
 0x1e7   :  { %5481 = vmatpush3.bf16.msra.mxu0 %v6395_v62  ;;  %5503 = vmatpush3.bf16.msra.mxu1 %v6397_v63  ;;  %v6451_v62 = vld [vmem:[%s8317_s3 + $0xe8] sm:$0xff]  }
 0x1e8   :  { %5482 = vmatprep.subr.bf16.mxu0 %v6398_v0  ;;  %5504 = vmatprep.subr.bf16.mxu1 %v6400_v1  ;;  %v6453_v63 = vld [vmem:[%s8317_s3 + $0xa8] sm:$0xff]   ;;  %v6455_v0 = vld [vmem:[%s8317_s3 + $0xf0] sm:$0xff]  }
 0x1e9   :  { %v6457_v1 = vld [vmem:[%s8317_s3 + $0xb0] sm:$0xff]  }
 0x1eb   :  { %5483 = vmatpush3.bf16.msra.mxu0 %v6399_v4  ;;  %5505 = vmatpush3.bf16.msra.mxu1 %v6401_v5  ;;  %v661_v4 = vlaneseq }
 0x1ec   :  { %5484 = vmatprep.subr.bf16.mxu0 %v6402_v6  ;;  %5506 = vmatprep.subr.bf16.mxu1 %v6404_v7 }
 0x1ed   :  { %v8263_v5 = vshrl.u32 %v661_v4, 7 }
 0x1ef   :  { %5485 = vmatpush3.bf16.msra.mxu0 %v6403_v8  ;;  %5507 = vmatpush3.bf16.msra.mxu1 %v6405_v9  ;;  %v663_v6 = vsub.s32 0, %v8263_v5  ;;  %v671_v7 = vsub.s32 2, %v8263_v5  ;;  %v659_v8 = vld [vmem:[%s8318_s2] sm:$0x1f]  ;;  %v667_v9 = vsub.s32 1, %v8263_v5 }
 0x1f0   :  { %5486 = vmatprep.subr.bf16.mxu0 %v6406_v10  ;;  %5508 = vmatprep.subr.bf16.mxu1 %v6408_v11  ;;  %v675_v10 = vsub.s32 3, %v8263_v5 }
 0x1f1   :  { %v664_v11 = vrot.slane %v659_v8, %v663_v6 }
 0x1f3   :  { %5487 = vmatpush3.bf16.msra.mxu0 %v6407_v13  ;;  %5509 = vmatpush3.bf16.msra.mxu1 %v6409_v14  ;;  %v672_v13 = vrot.slane %v659_v8, %v671_v7  ;;  %v668_v14 = vrot.slane %v659_v8, %v667_v9 }
 0x1f4   :  { %5488 = vmatprep.subr.bf16.mxu0 %v6410_v15  ;;  %5510 = vmatprep.subr.bf16.mxu1 %v6412_v16  ;;  %v676_v15 = vrot.slane %v659_v8, %v675_v10 }
 0x1f7   :  { %5489 = vmatpush3.bf16.msra.mxu0 %v6411_v17  ;;  %5511 = vmatpush3.bf16.msra.mxu1 %v6413_v18 }
 0x1f8   :  { %5490 = vmatprep.subr.bf16.mxu0 %v6414_v19  ;;  %5512 = vmatprep.subr.bf16.mxu1 %v6416_v20 }
 0x1fb   :  { %5491 = vmatpush3.bf16.msra.mxu0 %v6415_v21  ;;  %5513 = vmatpush3.bf16.msra.mxu1 %v6417_v22 }
 0x1fc   :  { %5492 = vmatprep.subr.bf16.mxu0 %v6418_v23  ;;  %5514 = vmatprep.subr.bf16.mxu1 %v6420_v24 }
 0x1ff   :  { %5493 = vmatpush3.bf16.msra.mxu0 %v6419_v25  ;;  %5515 = vmatpush3.bf16.msra.mxu1 %v6421_v26 }
 0x200   :  { %5584 = vmatprep.subr.bf16.mxu0 %v6482_v29  ;;  %5531 = vmatprep.subr.bf16.mxu1 %v6430_v27 }
 0x202   :  { %4255 = vmatmul.mubr.bf16.vlgmr.msra.gmra.mrb[12].mxu0 %v6480_v32  ;;  %4296 = vmatmul.mubr.bf16.vlgmr.msra.gmra.mrb[12].mxu1 %v7705_v12  ;;  %v6438_v12 = vld [vmem:[%s8317_s3 + $0x50] sm:$0xff]  }
 0x203   :  { %5585 = vmatpush3.bf16.msra.mxu0 %v6422_v28  ;;  %5600 = vmatprep.mubr.msk.bf16.mxu0 %vm6483_vm0, %v6482_v29 }
 0x204   :  { %5586 = vmatprep.subr.bf16.mxu0 %v6482_v29  ;;  %5532 = vmatpush3.bf16.msra.mxu1 %v6432_v30 }
 0x205   :  { %5533 = vmatprep.subr.bf16.mxu1 %v6434_v31 }
 0x207   :  { %5587 = vmatpush3.bf16.msra.mxu0 %v6423_v33 }
 0x208   :  { %5588 = vmatprep.subr.bf16.mxu0 %v6482_v29  ;;  %5534 = vmatpush3.bf16.msra.mxu1 %v6436_v34 }
 0x209   :  { %5535 = vmatprep.subr.bf16.mxu1 %v6438_v12 }
 0x20b   :  { %5589 = vmatpush3.bf16.msra.mxu0 %v6424_v35 }
 0x20c   :  { %5590 = vmatprep.subr.bf16.mxu0 %v6482_v29  ;;  %5536 = vmatpush3.bf16.msra.mxu1 %v6440_v36 }
 0x20d   :  { %5537 = vmatprep.subr.bf16.mxu1 %v6442_v37 }
 0x20f   :  { %5591 = vmatpush3.bf16.msra.mxu0 %v6425_v38 }
 0x210   :  { %5592 = vmatprep.subr.bf16.mxu0 %v6482_v29  ;;  %5538 = vmatpush3.bf16.msra.mxu1 %v6444_v39 }
 0x211   :  { %5539 = vmatprep.subr.bf16.mxu1 %v6446_v40 }
 0x213   :  { %5593 = vmatpush3.bf16.msra.mxu0 %v6426_v41 }
 0x214   :  { %5594 = vmatprep.subr.bf16.mxu0 %v6482_v29  ;;  %5540 = vmatpush3.bf16.msra.mxu1 %v6448_v42 }
 0x215   :  { %5541 = vmatprep.subr.bf16.mxu1 %v6450_v43 }
 0x217   :  { %5595 = vmatpush3.bf16.msra.mxu0 %v6427_v44  ;;  %v6462_v44 = vld [vmem:[%s8317_s3 + $0x100] sm:$0xff]  }
 0x218   :  { %5596 = vmatprep.subr.bf16.mxu0 %v6482_v29  ;;  %5542 = vmatpush3.bf16.msra.mxu1 %v6452_v45  ;;  %v6463_v45 = vld [vmem:[%s8317_s3 + $0x108] sm:$0xff]  }
 0x219   :  { %5543 = vmatprep.subr.bf16.mxu1 %v6454_v46  ;;  %v6464_v46 = vld [vmem:[%s8317_s3 + $0x110] sm:$0xff]  }
 0x21b   :  { %5597 = vmatpush3.bf16.msra.mxu0 %v6428_v48  ;;  %v6465_v48 = vld [vmem:[%s8317_s3 + $0x118] sm:$0xff]  }
 0x21c   :  { %5598 = vmatprep.subr.bf16.mxu0 %v6482_v29  ;;  %5544 = vmatpush3.bf16.msra.mxu1 %v6456_v49  ;;  %v6466_v49 = vld [vmem:[%s8317_s3 + $0x120] sm:$0xff]  }
 0x21d   :  { %5545 = vmatprep.subr.bf16.mxu1 %v6458_v50  ;;  %v679_v50 = vsub.s32 4, %v8263_v5 }
 0x21f   :  { %5599 = vmatpush3.bf16.msra.mxu0 %v6429_v51  ;;  %v6467_v51 = vld [vmem:[%s8317_s3 + $0x128] sm:$0xff]  }
 0x220   :  { %5553 = vmatprep.subr.bf16.mxu0 %v6431_v52  ;;  %5546 = vmatpush3.bf16.msra.mxu1 %v6460_v53  ;;  %v680_v53 = vrot.slane %v659_v8, %v679_v50  ;;  %v5349_v50 = vld [vmem:[%s8319_s4] ss:$0 sm:$0xff] }
 0x221   :  { %5604 = vmatprep.subr.bf16.mxu1 %v6482_v29 }
 0x222   :  { %5601 = vmatmul.mubr.bf16.vlgmr.msra.gmra.mrb[16].mxu0 %v7811_v47  ;;  %v6443_v47 = vld [vmem:[%s8317_s3 + $0xd8] sm:$0xff]  }
 0x223   :  { %5554 = vmatpush3.bf16.msra.mxu0 %v6433_v54 }
 0x224   :  { %5555 = vmatprep.subr.bf16.mxu0 %v6435_v55  ;;  %v6468_v55 = vld [vmem:[%s8317_s3 + $0x130] sm:$0xff]  }
 0x227   :  { %5556 = vmatpush3.bf16.msra.mxu0 %v6437_v56 }
 0x228   :  { %5557 = vmatprep.subr.bf16.mxu0 %v6439_v57 }
 0x22b   :  { %5558 = vmatpush3.bf16.msra.mxu0 %v6441_v58 }
 0x22c   :  { %5559 = vmatprep.subr.bf16.mxu0 %v6443_v47 }
 0x22f   :  { %5560 = vmatpush3.bf16.msra.mxu0 %v6445_v59 }
 0x230   :  { %5561 = vmatprep.subr.bf16.mxu0 %v6447_v60 }
 0x233   :  { %5562 = vmatpush3.bf16.msra.mxu0 %v6449_v61 }
 0x234   :  { %5563 = vmatprep.subr.bf16.mxu0 %v6451_v62 }
 0x237   :  { %5564 = vmatpush3.bf16.msra.mxu0 %v6453_v63 }
 0x238   :  { %5565 = vmatprep.subr.bf16.mxu0 %v6455_v0 }
 0x23b   :  { %5566 = vmatpush3.bf16.msra.mxu0 %v6457_v1 }
 0x23c   :  { %5567 = vmatprep.subr.bf16.mxu0 %v6459_v2  ;;  %v6469_v2 = vld [vmem:[%s8317_s3 + $0x138] sm:$0xff]  }
 0x23f   :  { %5568 = vmatpush3.bf16.msra.mxu0 %v6461_v3 }
 0x275   :  { %v3748_v16 = vpop.f32.mrb[0].mxu0  ;;  %v4049_v17 = vpop.f32.mrb[0].mxu1 }
 0x276   :  { %v5624_v18 = vadd.f32 %v3748_v16, %v664_v11  ;;  %v5628_v19 = vadd.f32 %v4049_v17, %v672_v13  ;;  %v3750_v20 = vpop.f32.mrb[1].mxu0  ;;  %v4051_v21 = vpop.f32.mrb[1].mxu1 }
 0x277   :  { %v5625_v22 = vadd.f32 %v3750_v20, %v668_v14  ;;  %v5629_v23 = vadd.f32 %v4051_v21, %v676_v15  ;;  %v3752_v24 = vpop.f32.mrb[2].mxu0  ;;  %v4053_v25 = vpop.f32.mrb[2].mxu1 }
 0x278   :  { %v5626_v26 = vadd.f32 %v3752_v24, %v664_v11  ;;  %v5630_v27 = vadd.f32 %v4053_v25, %v672_v13  ;;  %v3754_v28 = vpop.f32.mrb[3].mxu0  ;;  %v4055_v30 = vpop.f32.mrb[3].mxu1  ;;  %v4345_v33 = vmax.f32 %v5624_v18, 0.0  ;;  %v4347_v34 = vmax.f32 %v5628_v19, 0.0 }
 0x279   :  { %v5627_v31 = vadd.f32 %v3754_v28, %v668_v14  ;;  %v5631_v32 = vadd.f32 %v4055_v30, %v676_v15  ;;  %v4346_v36 = vmax.f32 %v5625_v22, 0.0  ;;  %v4348_v37 = vmax.f32 %v5629_v23, 0.0 }
 0x27a   :  { %v4350_v12 = vmax.f32 %v5626_v26, 0.0  ;;  %v4352_v35 = vmax.f32 %v5630_v27, 0.0 }
 0x27b   :  { %v4351_v38 = vmax.f32 %v5627_v31, 0.0  ;;  %v4353_v39 = vmax.f32 %v5631_v32, 0.0 }
 0x27c   :  { %v4355_v40 = vpack.c.bf16 %v4350_v12, %v4345_v33  ;;  %v4357_v41 = vpack.c.bf16 %v4352_v35, %v4347_v34 }
 0x27d   :  { %v4356_v42 = vpack.c.bf16 %v4351_v38, %v4346_v36  ;;  %v4358_v43 = vpack.c.bf16 %v4353_v39, %v4348_v37 }
 0x27f   :  { %4719 = vmatprep.mubr.bf16.mxu1 %v4356_v42  ;;  %4760 = vmatprep.mubr.bf16.mxu0 %v4358_v43 }
 0x280   :  { %4720 = vmatmul.mubr.bf16.vlgmr.msra.gmra.mrb[16].mxu1 %v4355_v40  ;;  %4761 = vmatmul.mubr.bf16.vlgmr.msra.gmra.mrb[20].mxu0 %v4357_v41 }
 0x281   :  { %5605 = vmatpush3.bf16.msra.mxu1 %v6462_v44  ;;  %5620 = vmatprep.mubr.msk.bf16.mxu1 %vm6483_vm0, %v6482_v29 }
 0x282   :  { %5606 = vmatprep.subr.bf16.mxu1 %v6482_v29 }
 0x285   :  { %5607 = vmatpush3.bf16.msra.mxu1 %v6463_v45 }
 0x286   :  { %5608 = vmatprep.subr.bf16.mxu1 %v6482_v29 }
 0x289   :  { %5609 = vmatpush3.bf16.msra.mxu1 %v6464_v46 }
 0x28a   :  { %5610 = vmatprep.subr.bf16.mxu1 %v6482_v29 }
 0x28d   :  { %5611 = vmatpush3.bf16.msra.mxu1 %v6465_v48 }
 0x28e   :  { %5612 = vmatprep.subr.bf16.mxu1 %v6482_v29 }
 0x291   :  { %5613 = vmatpush3.bf16.msra.mxu1 %v6466_v49 }
 0x292   :  { %5614 = vmatprep.subr.bf16.mxu1 %v6482_v29 }
 0x295   :  { %v5406_v52 = vpop.f32.mrb[4].mxu0  ;;  %v5428_v54 = vpop.f32.mrb[4].mxu1  ;;  %5615 = vmatpush3.bf16.msra.mxu1 %v6467_v51 }
 0x296   :  { %v5407_v56 = vpop.f32.mrb[5].mxu0  ;;  %v5429_v57 = vpop.f32.mrb[5].mxu1  ;;  %5616 = vmatprep.subr.bf16.mxu1 %v6482_v29 }
 0x297   :  { %v5408_v58 = vadd.f32 %v5407_v56, %v5406_v52  ;;  %v5409_v47 = vpop.f32.mrb[6].mxu0  ;;  %v5430_v59 = vadd.f32 %v5429_v57, %v5428_v54  ;;  %v5431_v60 = vpop.f32.mrb[6].mxu1 }
 0x298   :  { %v5410_v61 = vpop.f32.mrb[7].mxu0  ;;  %v5432_v62 = vpop.f32.mrb[7].mxu1 }
 0x299   :  { %v4093_v63 = vadd.f32 %v5408_v58, %v680_v53  ;;  %v5411_v0 = vadd.f32 %v5410_v61, %v5409_v47  ;;  %v5433_v1 = vadd.f32 %v5432_v62, %v5431_v60  ;;  %5617 = vmatpush3.bf16.msra.mxu1 %v6468_v55 }
 0x29a   :  { %5618 = vmatprep.subr.bf16.mxu1 %v6482_v29 }
 0x29b   :  { %v4096_v3 = vadd.f32 %v5411_v0, %v680_v53  ;;  %v4134_v4 = vadd.f32 %v5430_v59, %v4093_v63 }
 0x29d   :  { %v4137_v5 = vadd.f32 %v5433_v1, %v4096_v3  ;;  %5619 = vmatpush3.bf16.msra.mxu1 %v6469_v2 }
 0x2b5   :  { %v5450_v6 = vpop.f32.mrb[8].mxu0  ;;  %v5472_v7 = vpop.f32.mrb[8].mxu1 }
 0x2b6   :  { %v5451_v8 = vpop.f32.mrb[9].mxu0  ;;  %v5473_v9 = vpop.f32.mrb[9].mxu1 }
 0x2b7   :  { %v5452_v10 = vadd.f32 %v5451_v8, %v5450_v6  ;;  %v5453_v11 = vpop.f32.mrb[10].mxu0  ;;  %v5474_v13 = vadd.f32 %v5473_v9, %v5472_v7  ;;  %v5475_v14 = vpop.f32.mrb[10].mxu1 }
 0x2b8   :  { %v5454_v15 = vpop.f32.mrb[11].mxu0  ;;  %v5476_v16 = vpop.f32.mrb[11].mxu1 }
 0x2b9   :  { %v4175_v17 = vadd.f32 %v5452_v10, %v4134_v4  ;;  %v5455_v18 = vadd.f32 %v5454_v15, %v5453_v11  ;;  %v5477_v19 = vadd.f32 %v5476_v16, %v5475_v14 }
 0x2bb   :  { %v4178_v20 = vadd.f32 %v5455_v18, %v4137_v5  ;;  %v4216_v21 = vadd.f32 %v5474_v13, %v4175_v17 }
 0x2bd   :  { %v4219_v29 = vadd.f32 %v5477_v19, %v4178_v20 }
 0x2d5   :  { %v5494_v22 = vpop.f32.mrb[12].mxu0  ;;  %v5516_v23 = vpop.f32.mrb[12].mxu1 }
 0x2d6   :  { %v5495_v24 = vpop.f32.mrb[13].mxu0  ;;  %v5517_v25 = vpop.f32.mrb[13].mxu1 }
 0x2d7   :  { %v5496_v26 = vadd.f32 %v5495_v24, %v5494_v22  ;;  %v5497_v27 = vpop.f32.mrb[14].mxu0  ;;  %v5518_v28 = vadd.f32 %v5517_v25, %v5516_v23  ;;  %v5519_v30 = vpop.f32.mrb[14].mxu1 }
 0x2d8   :  { %v5498_v31 = vpop.f32.mrb[15].mxu0  ;;  %v5520_v32 = vpop.f32.mrb[15].mxu1 }
 0x2d9   :  { %v4257_v33 = vadd.f32 %v5496_v26, %v4216_v21  ;;  %v5499_v34 = vadd.f32 %v5498_v31, %v5497_v27  ;;  %v5521_v12 = vadd.f32 %v5520_v32, %v5519_v30 }
 0x2db   :  { %v4260_v35 = vadd.f32 %v5499_v34, %v4219_v29  ;;  %v4298_v36 = vadd.f32 %v5518_v28, %v4257_v33 }
 0x2dd   :  { %v4301_v37 = vadd.f32 %v5521_v12, %v4260_v35 }
 0x2f5   :  { %v4338_v38 = vpop.f32.mrb[16].mxu0 }
 0x2f6   :  { %v4339_v39 = vadd.f32 %v4338_v38, %v4298_v36  ;;  %v5602_v40 = vpop.f32.mrb[17].mxu0 }
 0x2f7   :  { %v4341_v41 = vpop.f32.mrb[18].mxu0 }
 0x2f8   :  { %v4342_v42 = vadd.f32 %v4341_v41, %v4301_v37  ;;  %v5603_v43 = vpop.f32.mrb[19].mxu0  ;;  %v4349_v44 = vmax.f32 %v4339_v39, 0.0 }
 0x2fa   :  { %v4354_v45 = vmax.f32 %v4342_v42, 0.0 }
 0x2fc   :  { %v4359_v46 = vpack.c.bf16 %v4354_v45, %v4349_v44 }
 0x2fe   :  { %5621 = vmatmul.mubr.bf16.vlgmr.msra.gmra.mrb[20].mxu1 %v4359_v46 }
 0x353   :  { %v5547_v48 = vpop.f32.mrb[16].mxu1  ;;  %v5569_v49 = vpop.f32.mrb[20].mxu0 }
 0x354   :  { %v5548_v51 = vpop.f32.mrb[17].mxu1  ;;  %v5570_v52 = vpop.f32.mrb[21].mxu0 }
 0x355   :  { %v5549_v53 = vadd.f32 %v5548_v51, %v5547_v48  ;;  %v5571_v54 = vadd.f32 %v5570_v52, %v5569_v49  ;;  %v5550_v55 = vpop.f32.mrb[18].mxu1  ;;  %v5572_v56 = vpop.f32.mrb[22].mxu0 }
 0x356   :  { %v5551_v57 = vpop.f32.mrb[19].mxu1  ;;  %v5573_v58 = vpop.f32.mrb[23].mxu0 }
 0x357   :  { %v4722_v47 = vadd.f32 %v5549_v53, %v5349_v50  ;;  %v5552_v59 = vadd.f32 %v5551_v57, %v5550_v55  ;;  %v5574_v60 = vadd.f32 %v5573_v58, %v5572_v56 }
 0x359   :  { %v4725_v61 = vadd.f32 %v5552_v59, %v5349_v50  ;;  %v4763_v62 = vadd.f32 %v5571_v54, %v4722_v47 }
 0x35b   :  { %v4766_v63 = vadd.f32 %v5574_v60, %v4725_v61 }
 0x3d1   :  { %v4803_v0 = vpop.f32.mrb[20].mxu1 }
 0x3d2   :  { %v4804_v1 = vadd.f32 %v4803_v0, %v4763_v62  ;;  %v5622_v2 = vpop.f32.mrb[21].mxu1 }
 0x3d3   :  { %v4806_v3 = vpop.f32.mrb[22].mxu1 }
 0x3d4   :  { %4810 = vst [vmem:[%s8320_s5] sm:$0xff] %v4804_v1  ;;  %v4807_v4 = vadd.f32 %v4806_v3, %v4766_v63  ;;  %v5623_v5 = vpop.f32.mrb[23].mxu1 }
 0x3d6   :  { %4811 = vst [vmem:[%s8320_s5 + $0x8] sm:$0xff] %v4807_v4 }

</bundles_post_ra>
